<compile_context>
chip_gen: v7x
topology: tpu7x:2x2x1
jax: 0.10.0
libtpu: 0.0.40
codegen_flags: <defaults>
</compile_context>

<pallas_src>
import functools

import numpy as np

import jax
import jax.numpy as jnp
from jax import lax
from jax.experimental import pallas as pl
from jax.experimental.pallas import tpu as pltpu

LRELU_SLOPE = 0.2
IN_EPS = 1e-5  # PyTorch InstanceNorm2d default eps


# ----------------------------------------------------------------------------
# In-kernel helpers (traced inside the Pallas kernel).
# ----------------------------------------------------------------------------
def _row_select(Ho, H, i, dtype):
    """(Ho, H) 0/1 matrix: output row a reads input row (2a + i - 1); zero row
    when out of range (H-direction stride-2 + pad-1 access)."""
    r = lax.broadcasted_iota(jnp.int32, (Ho, H), 0)
    c = lax.broadcasted_iota(jnp.int32, (Ho, H), 1)
    return (c == 2 * r + (i - 1)).astype(dtype)


def _group_mat(Wo, Cout):
    """(Wo*Cout, Cout) 0/1 matrix mapping flattened column (wo*Cout + co) -> co."""
    a = lax.broadcasted_iota(jnp.int32, (Wo, Cout, Cout), 1)
    b = lax.broadcasted_iota(jnp.int32, (Wo, Cout, Cout), 2)
    # Leading-dim merge only (Cout is a multiple of 8) -> layout-preserving.
    return (a == b).astype(jnp.float32).reshape(Wo * Cout, Cout)


# ----------------------------------------------------------------------------
# Fused critic kernel: one grid step == one sample, all 5 layers in VMEM.
# ----------------------------------------------------------------------------
def _critic_kernel(x_ref, m0_ref, m1_ref, m2_ref, m3_ref, b0_ref,
                   g1_ref, be1_ref, g2_ref, be2_ref, g3_ref, be3_ref,
                   w4_ref, b4_ref, o_ref, *, dims):
    m_refs = (m0_ref, m1_ref, m2_ref, m3_ref)
    affine = (None, (g1_ref, be1_ref), (g2_ref, be2_ref), (g3_ref, be3_ref))

    y = x_ref[0]                                         # (H0, W0*Cin0), f32
    for l in range(4):
        H, Cin, Cout = dims[l]
        Ho = H // 2
        Wo = Ho

        # conv as structured GEMM (bf16 inputs, f32 accumulation):
        #   Y = sum_i (Sel_i @ X) @ M_i
        yb = y.astype(jnp.bfloat16)
        acc = jnp.zeros((Ho, Wo * Cout), jnp.float32)
        for i in range(4):
            sel = _row_select(Ho, H, i, jnp.bfloat16)                     # (Ho, H)
            rows = jnp.dot(sel, yb,
                           preferred_element_type=jnp.float32)            # exact copy
            rows = rows.astype(jnp.bfloat16)                              # (Ho, W*Cin)
            acc = acc + jnp.dot(rows, m_refs[l][i],
                                preferred_element_type=jnp.float32)       # (Ho, Wo*Cout)

        if l == 0:
            acc = acc + b0_ref[...]                      # bias only on conv0
        else:
            # Single-pass InstanceNorm2d (biased var) fused with affine, f32.
            g, be = affine[l]
            S = _group_mat(Wo, Cout)                     # (Wo*Cout, Cout)
            n = float(Ho * Wo)
            csum = jnp.sum(acc, axis=0, keepdims=True)         # (1, Wo*Cout)
            csq = jnp.sum(acc * acc, axis=0, keepdims=True)
            mean = jnp.dot(csum, S, preferred_element_type=jnp.float32) / n
            ex2 = jnp.dot(csq, S, preferred_element_type=jnp.float32) / n
            var = jnp.maximum(ex2 - mean * mean, 0.0)
            scale_c = g[...] * lax.rsqrt(var + IN_EPS)         # (1, Cout)
            shift_c = be[...] - mean * scale_c
            # expand per-channel scale/shift back to (1, Wo*Cout) via S^T matmul
            scale = lax.dot_general(scale_c, S, (((1,), (1,)), ((), ())),
                                    preferred_element_type=jnp.float32)
            shift = lax.dot_general(shift_c, S, (((1,), (1,)), ((), ())),
                                    preferred_element_type=jnp.float32)
            acc = acc * scale + shift

        y = jnp.where(acc > 0, acc, LRELU_SLOPE * acc)   # LeakyReLU(0.2), f32

    # Final Conv(4,4,s2,p0) on the 4x4 map == weighted sum over all elements.
    o_ref[0] = jnp.sum(y * w4_ref[...], axis=(0, 1), keepdims=True) + b4_ref[...]


# ----------------------------------------------------------------------------
# Host-side (numpy) one-time weight preparation.
# ----------------------------------------------------------------------------
def prepare_critic_params(params, image_hw=64):
    """Build the structured GEMM weights used by the fused kernel."""
    assert image_hw == 64, "Critic expects 64x64 inputs"
    prep = {}
    H = image_hw
    for l in range(4):
        w = np.asarray(params[l]['w'], dtype=np.float32)   # (Cout, Cin, 4, 4)
        Cout, Cin, _, _ = w.shape
        W_in = H
        Wo = W_in // 2
        M = np.zeros((4, W_in * Cin, Wo * Cout), np.float32)
        for i in range(4):
            for wo in range(Wo):
                for j in range(4):
                    wi = 2 * wo + j - 1                    # stride 2, pad 1
                    if 0 <= wi < W_in:
                        M[i, wi * Cin:(wi + 1) * Cin,
                          wo * Cout:(wo + 1) * Cout] = w[:, :, i, j].T
        # Stored in bf16: halves HBM->VMEM DMA and lets the MXU run bf16.
        prep[f'M{l}'] = jnp.asarray(M, dtype=jnp.bfloat16)
        H //= 2

    # conv0 bias tiled over output width (column layout = wo*Cout + co).
    b0 = np.asarray(params[0]['b'], dtype=np.float32)
    prep['b0'] = jnp.asarray(np.tile(b0, image_hw // 2).reshape(1, -1))

    for l in (1, 2, 3):
        prep[f'g{l}'] = jnp.asarray(
            np.asarray(params[l]['gamma'], dtype=np.float32).reshape(1, -1))
        prep[f'be{l}'] = jnp.asarray(
            np.asarray(params[l]['beta'], dtype=np.float32).reshape(1, -1))

    # Final conv (1, Cin, 4, 4) -> (4, 4*Cin) with element [i, j*Cin+ci].
    w4 = np.asarray(params[4]['w'], dtype=np.float32)
    Cin4 = w4.shape[1]
    prep['w4'] = jnp.asarray(w4[0].transpose(1, 2, 0).reshape(4, 4 * Cin4))
    prep['b4'] = jnp.asarray(
        np.asarray(params[4]['b'], dtype=np.float32).reshape(1, 1))
    return prep


# ----------------------------------------------------------------------------
# Wrapper: single pallas_call for the whole forward pass.
# ----------------------------------------------------------------------------
def critic_apply(prep, x):
    N, C, H, W = x.shape
    assert H == 64 and W == 64, "Critic expects 64x64 inputs"
    # NCHW -> channel-last rows: (N, H, W*C) with column index = w*C + c.
    x2 = x.transpose(0, 2, 3, 1).reshape(N, H, W * C)

    fd = prep['b0'].shape[1] // (H // 2)
    c1, c2, c3 = (prep['g1'].shape[1], prep['g2'].shape[1], prep['g3'].shape[1])
    dims = ((H, C, fd), (H // 2, fd, c1), (H // 4, c1, c2), (H // 8, c2, c3))

    def full_spec(a):
        nd = a.ndim
        return pl.BlockSpec(a.shape, lambda n, _nd=nd: (0,) * _nd)

    names = ('M0', 'M1', 'M2', 'M3', 'b0', 'g1', 'be1', 'g2', 'be2',
             'g3', 'be3', 'w4', 'b4')
    in_specs = [pl.BlockSpec((1, H, W * C), lambda n: (n, 0, 0))]
    args = [x2]
    for name in names:
        a = prep[name]
        in_specs.append(full_spec(a))
        args.append(a)

    # Advisory cost estimate for XLA scheduling around the custom call.
    flops = 0
    for (Hl, Cin, Cout) in dims:
        Ho = Hl // 2
        flops += 4 * 2 * Ho * Hl * (Hl * Cin)              # row-selection GEMMs
        flops += 4 * 2 * Ho * (Hl * Cin) * (Ho * Cout)     # structured conv GEMMs
    flops *= N
    bytes_accessed = sum(int(np.prod(a.shape)) * a.dtype.itemsize for a in args)
    bytes_accessed += N * 4

    out = pl.pallas_call(
        functools.partial(_critic_kernel, dims=dims),
        grid=(N,),
        in_specs=in_specs,
        out_specs=pl.BlockSpec((1, 1, 1), lambda n: (n, 0, 0)),
        out_shape=jax.ShapeDtypeStruct((N, 1, 1), jnp.float32),
        compiler_params=pltpu.CompilerParams(
            dimension_semantics=("parallel",)),
        cost_estimate=pl.CostEstimate(
            flops=int(flops), transcendentals=int(N * 128),
            bytes_accessed=int(bytes_accessed)),
    )(*args)
    return out.reshape(N, 1, 1, 1)


# ----------------------------------------------------------------------------
# Parameter init (mimics initialize_model: conv weights ~ N(0, 0.02),
# norm gamma ~ N(1, 0.02), beta = 0, biases = 0).
# ----------------------------------------------------------------------------
def init_critic_params(key, image_channels, fd):
    specs = [
        (fd, image_channels),      # conv0          (LeakyReLU, bias)
        (fd * 2, fd),              # downscale 1    (InstanceNorm + LeakyReLU)
        (fd * 4, fd * 2),          # downscale 2
        (fd * 8, fd * 4),          # downscale 3
        (1, fd * 8),               # final conv     (bias, no act)
    ]
    params = []
    for i, (cout, cin) in enumerate(specs):
        key, kw_, kg = jax.random.split(key, 3)
        w = 0.02 * jax.random.normal(kw_, (cout, cin, 4, 4), jnp.float32)
        b = jnp.zeros((cout,), jnp.float32)
        if i in (1, 2, 3):
            gamma = 1.0 + 0.02 * jax.random.normal(kg, (cout,), jnp.float32)
        else:
            gamma = jnp.ones((cout,), jnp.float32)
        beta = jnp.zeros((cout,), jnp.float32)
        params.append(dict(w=w, b=b, gamma=gamma, beta=beta))
    return params


# ----------------------------------------------------------------------------
# Plain-JAX reference (correctness check).
# ----------------------------------------------------------------------------
def _ref_conv(x, w, b, stride, pad):
    y = lax.conv_general_dilated(
        x, w, (stride, stride), [(pad, pad), (pad, pad)],
        dimension_numbers=('NCHW', 'OIHW', 'NCHW'),
        precision=lax.Precision.HIGHEST)
    return y + b.reshape(1, -1, 1, 1)


def _ref_instance_norm(x, gamma, beta):
    mean = jnp.mean(x, axis=(2, 3), keepdims=True)
    var = jnp.mean(jnp.square(x - mean), axis=(2, 3), keepdims=True)
    y = (x - mean) * lax.rsqrt(var + IN_EPS)
    return y * gamma.reshape(1, -1, 1, 1) + beta.reshape(1, -1, 1, 1)


def critic_forward_ref(params, x):
    x = _ref_conv(x, params[0]['w'], params[0]['b'], 2, 1)
    x = jnp.where(x > 0, x, LRELU_SLOPE * x)
    for i in (1, 2, 3):
        x = _ref_conv(x, params[i]['w'], params[i]['b'], 2, 1)
        x = _ref_instance_norm(x, params[i]['gamma'], params[i]['beta'])
        x = jnp.where(x > 0, x, LRELU_SLOPE * x)
    x = _ref_conv(x, params[4]['w'], params[4]['b'], 2, 0)
    return x


if __name__ == "__main__":
    key = jax.random.PRNGKey(0)
    kx, kp = jax.random.split(key)

    # 64x64 input is required so the final 4x4/s2/p0 conv produces a 1x1 map.
    N, C, H, W = 2, 3, 64, 64
    FD = 8

    x = jax.random.normal(kx, (N, C, H, W), jnp.float32)
    params = init_critic_params(kp, C, FD)
    prep = prepare_critic_params(params, image_hw=H)

    out = jax.jit(critic_apply)(prep, x)
    out = jax.block_until_ready(out)

    assert out.shape == (N, 1, 1, 1), out.shape
    assert bool(jnp.all(jnp.isfinite(out)))

    ref = critic_forward_ref(params, x)
    assert bool(jnp.allclose(out, ref, atol=5e-2, rtol=5e-2)), (
        float(jnp.max(jnp.abs(out - ref))))

    print("KERNEL_OK")
</pallas_src>

<mosaic_0001>
module attributes {stable_mosaic.version = 11 : i64} {
  func.func @_critic_kernel(%arg0: i32, %arg1: memref<1x64x192xf32, #tpu.memory_space<vmem>>, %arg2: memref<4x192x256xbf16, #tpu.memory_space<vmem>>, %arg3: memref<4x256x256xbf16, #tpu.memory_space<vmem>>, %arg4: memref<4x256x256xbf16, #tpu.memory_space<vmem>>, %arg5: memref<4x256x256xbf16, #tpu.memory_space<vmem>>, %arg6: memref<1x256xf32, #tpu.memory_space<vmem>>, %arg7: memref<1x16xf32, #tpu.memory_space<vmem>>, %arg8: memref<1x16xf32, #tpu.memory_space<vmem>>, %arg9: memref<1x32xf32, #tpu.memory_space<vmem>>, %arg10: memref<1x32xf32, #tpu.memory_space<vmem>>, %arg11: memref<1x64xf32, #tpu.memory_space<vmem>>, %arg12: memref<1x64xf32, #tpu.memory_space<vmem>>, %arg13: memref<4x256xf32, #tpu.memory_space<vmem>>, %arg14: memref<1x1xf32, #tpu.memory_space<vmem>>, %arg15: memref<1x1x1xf32, #tpu.memory_space<vmem>>) attributes {dimension_semantics = [#tpu.dimension_semantics<parallel>], iteration_bounds = array<i64: 2>, scalar_prefetch = 0 : i64, scratch_operands = 0 : i64, tpu.core_type = #tpu.core_type<tc>, window_params = [{transform_indices = @transform_0, window_bounds = array<i64: 1, 64, 192>}, {pipeline_mode = #tpu.pipeline_mode<synchronous>, transform_indices = @transform_1, window_bounds = array<i64: 4, 192, 256>}, {pipeline_mode = #tpu.pipeline_mode<synchronous>, transform_indices = @transform_2, window_bounds = array<i64: 4, 256, 256>}, {pipeline_mode = #tpu.pipeline_mode<synchronous>, transform_indices = @transform_3, window_bounds = array<i64: 4, 256, 256>}, {pipeline_mode = #tpu.pipeline_mode<synchronous>, transform_indices = @transform_4, window_bounds = array<i64: 4, 256, 256>}, {pipeline_mode = #tpu.pipeline_mode<synchronous>, transform_indices = @transform_5, window_bounds = array<i64: 1, 256>}, {pipeline_mode = #tpu.pipeline_mode<synchronous>, transform_indices = @transform_6, window_bounds = array<i64: 1, 16>}, {pipeline_mode = #tpu.pipeline_mode<synchronous>, transform_indices = @transform_7, window_bounds = array<i64: 1, 16>}, {pipeline_mode = #tpu.pipeline_mode<synchronous>, transform_indices = @transform_8, window_bounds = array<i64: 1, 32>}, {pipeline_mode = #tpu.pipeline_mode<synchronous>, transform_indices = @transform_9, window_bounds = array<i64: 1, 32>}, {pipeline_mode = #tpu.pipeline_mode<synchronous>, transform_indices = @transform_10, window_bounds = array<i64: 1, 64>}, {pipeline_mode = #tpu.pipeline_mode<synchronous>, transform_indices = @transform_11, window_bounds = array<i64: 1, 64>}, {pipeline_mode = #tpu.pipeline_mode<synchronous>, transform_indices = @transform_12, window_bounds = array<i64: 4, 256>}, {pipeline_mode = #tpu.pipeline_mode<synchronous>, transform_indices = @transform_13, window_bounds = array<i64: 1, 1>}, {transform_indices = @transform_14, window_bounds = array<i64: 1, 1, 1>}]} {
    %c0 = arith.constant 0 : index
    %c0_0 = arith.constant 0 : index
    %c0_1 = arith.constant 0 : index
    %0 = vector.load %arg1[%c0, %c0_0, %c0_1] : memref<1x64x192xf32, #tpu.memory_space<vmem>>, vector<1x64x192xf32>
    %1 = vector.shape_cast %0 : vector<1x64x192xf32> to vector<64x192xf32>
    %2 = arith.truncf %1 : vector<64x192xf32> to vector<64x192xbf16>
    %cst = arith.constant 0.000000e+00 : f32
    %3 = vector.broadcast %cst : f32 to vector<32x256xf32>
    %4 = tpu.iota {dimensions = array<i32: 0>} : vector<32x64xi32>
    %5 = tpu.iota {dimensions = array<i32: 1>} : vector<32x64xi32>
    %c2_i32 = arith.constant 2 : i32
    %6 = vector.broadcast %c2_i32 : i32 to vector<32x64xi32>
    %7 = arith.muli %6, %4 : vector<32x64xi32>
    %c-1_i32 = arith.constant -1 : i32
    %8 = vector.broadcast %c-1_i32 : i32 to vector<32x64xi32>
    %9 = arith.addi %7, %8 : vector<32x64xi32>
    %10 = arith.cmpi eq, %5, %9 : vector<32x64xi32>
    %11 = arith.extui %10 : vector<32x64xi1> to vector<32x64xi32>
    %12 = arith.sitofp %11 : vector<32x64xi32> to vector<32x64xf32>
    %13 = arith.truncf %12 : vector<32x64xf32> to vector<32x64xbf16>
    %cst_2 = arith.constant dense<0.000000e+00> : vector<32x192xf32>
    %14 = tpu.matmul %13, %2, %cst_2 {dimension_numbers = #tpu.dot_dimension_numbers<[1], [0], [0], [1], [0, 0, 1, 1], [], []>} : vector<32x64xbf16>, vector<64x192xbf16>, vector<32x192xf32> -> vector<32x192xf32>
    %15 = arith.truncf %14 : vector<32x192xf32> to vector<32x192xbf16>
    %c0_3 = arith.constant 0 : index
    %c0_4 = arith.constant 0 : index
    %c0_5 = arith.constant 0 : index
    %16 = vector.load %arg2[%c0_3, %c0_4, %c0_5] : memref<4x192x256xbf16, #tpu.memory_space<vmem>>, vector<1x192x256xbf16>
    %17 = vector.shape_cast %16 : vector<1x192x256xbf16> to vector<192x256xbf16>
    %cst_6 = arith.constant dense<0.000000e+00> : vector<32x256xf32>
    %18 = tpu.matmul %15, %17, %cst_6 {dimension_numbers = #tpu.dot_dimension_numbers<[1], [0], [0], [1], [0, 0, 1, 1], [], []>} : vector<32x192xbf16>, vector<192x256xbf16>, vector<32x256xf32> -> vector<32x256xf32>
    %19 = arith.addf %3, %18 : vector<32x256xf32>
    %20 = tpu.iota {dimensions = array<i32: 0>} : vector<32x64xi32>
    %21 = tpu.iota {dimensions = array<i32: 1>} : vector<32x64xi32>
    %c2_i32_7 = arith.constant 2 : i32
    %22 = vector.broadcast %c2_i32_7 : i32 to vector<32x64xi32>
    %23 = arith.muli %22, %20 : vector<32x64xi32>
    %c0_i32 = arith.constant 0 : i32
    %24 = vector.broadcast %c0_i32 : i32 to vector<32x64xi32>
    %25 = arith.addi %23, %24 : vector<32x64xi32>
    %26 = arith.cmpi eq, %21, %25 : vector<32x64xi32>
    %27 = arith.extui %26 : vector<32x64xi1> to vector<32x64xi32>
    %28 = arith.sitofp %27 : vector<32x64xi32> to vector<32x64xf32>
    %29 = arith.truncf %28 : vector<32x64xf32> to vector<32x64xbf16>
    %cst_8 = arith.constant dense<0.000000e+00> : vector<32x192xf32>
    %30 = tpu.matmul %29, %2, %cst_8 {dimension_numbers = #tpu.dot_dimension_numbers<[1], [0], [0], [1], [0, 0, 1, 1], [], []>} : vector<32x64xbf16>, vector<64x192xbf16>, vector<32x192xf32> -> vector<32x192xf32>
    %31 = arith.truncf %30 : vector<32x192xf32> to vector<32x192xbf16>
    %c1 = arith.constant 1 : index
    %c0_9 = arith.constant 0 : index
    %c0_10 = arith.constant 0 : index
    %32 = vector.load %arg2[%c1, %c0_9, %c0_10] : memref<4x192x256xbf16, #tpu.memory_space<vmem>>, vector<1x192x256xbf16>
    %33 = vector.shape_cast %32 : vector<1x192x256xbf16> to vector<192x256xbf16>
    %cst_11 = arith.constant dense<0.000000e+00> : vector<32x256xf32>
    %34 = tpu.matmul %31, %33, %cst_11 {dimension_numbers = #tpu.dot_dimension_numbers<[1], [0], [0], [1], [0, 0, 1, 1], [], []>} : vector<32x192xbf16>, vector<192x256xbf16>, vector<32x256xf32> -> vector<32x256xf32>
    %35 = arith.addf %19, %34 : vector<32x256xf32>
    %36 = tpu.iota {dimensions = array<i32: 0>} : vector<32x64xi32>
    %37 = tpu.iota {dimensions = array<i32: 1>} : vector<32x64xi32>
    %c2_i32_12 = arith.constant 2 : i32
    %38 = vector.broadcast %c2_i32_12 : i32 to vector<32x64xi32>
    %39 = arith.muli %38, %36 : vector<32x64xi32>
    %c1_i32 = arith.constant 1 : i32
    %40 = vector.broadcast %c1_i32 : i32 to vector<32x64xi32>
    %41 = arith.addi %39, %40 : vector<32x64xi32>
    %42 = arith.cmpi eq, %37, %41 : vector<32x64xi32>
    %43 = arith.extui %42 : vector<32x64xi1> to vector<32x64xi32>
    %44 = arith.sitofp %43 : vector<32x64xi32> to vector<32x64xf32>
    %45 = arith.truncf %44 : vector<32x64xf32> to vector<32x64xbf16>
    %cst_13 = arith.constant dense<0.000000e+00> : vector<32x192xf32>
    %46 = tpu.matmul %45, %2, %cst_13 {dimension_numbers = #tpu.dot_dimension_numbers<[1], [0], [0], [1], [0, 0, 1, 1], [], []>} : vector<32x64xbf16>, vector<64x192xbf16>, vector<32x192xf32> -> vector<32x192xf32>
    %47 = arith.truncf %46 : vector<32x192xf32> to vector<32x192xbf16>
    %c2 = arith.constant 2 : index
    %c0_14 = arith.constant 0 : index
    %c0_15 = arith.constant 0 : index
    %48 = vector.load %arg2[%c2, %c0_14, %c0_15] : memref<4x192x256xbf16, #tpu.memory_space<vmem>>, vector<1x192x256xbf16>
    %49 = vector.shape_cast %48 : vector<1x192x256xbf16> to vector<192x256xbf16>
    %cst_16 = arith.constant dense<0.000000e+00> : vector<32x256xf32>
    %50 = tpu.matmul %47, %49, %cst_16 {dimension_numbers = #tpu.dot_dimension_numbers<[1], [0], [0], [1], [0, 0, 1, 1], [], []>} : vector<32x192xbf16>, vector<192x256xbf16>, vector<32x256xf32> -> vector<32x256xf32>
    %51 = arith.addf %35, %50 : vector<32x256xf32>
    %52 = tpu.iota {dimensions = array<i32: 0>} : vector<32x64xi32>
    %53 = tpu.iota {dimensions = array<i32: 1>} : vector<32x64xi32>
    %c2_i32_17 = arith.constant 2 : i32
    %54 = vector.broadcast %c2_i32_17 : i32 to vector<32x64xi32>
    %55 = arith.muli %54, %52 : vector<32x64xi32>
    %c2_i32_18 = arith.constant 2 : i32
    %56 = vector.broadcast %c2_i32_18 : i32 to vector<32x64xi32>
    %57 = arith.addi %55, %56 : vector<32x64xi32>
    %58 = arith.cmpi eq, %53, %57 : vector<32x64xi32>
    %59 = arith.extui %58 : vector<32x64xi1> to vector<32x64xi32>
    %60 = arith.sitofp %59 : vector<32x64xi32> to vector<32x64xf32>
    %61 = arith.truncf %60 : vector<32x64xf32> to vector<32x64xbf16>
    %cst_19 = arith.constant dense<0.000000e+00> : vector<32x192xf32>
    %62 = tpu.matmul %61, %2, %cst_19 {dimension_numbers = #tpu.dot_dimension_numbers<[1], [0], [0], [1], [0, 0, 1, 1], [], []>} : vector<32x64xbf16>, vector<64x192xbf16>, vector<32x192xf32> -> vector<32x192xf32>
    %63 = arith.truncf %62 : vector<32x192xf32> to vector<32x192xbf16>
    %c3 = arith.constant 3 : index
    %c0_20 = arith.constant 0 : index
    %c0_21 = arith.constant 0 : index
    %64 = vector.load %arg2[%c3, %c0_20, %c0_21] : memref<4x192x256xbf16, #tpu.memory_space<vmem>>, vector<1x192x256xbf16>
    %65 = vector.shape_cast %64 : vector<1x192x256xbf16> to vector<192x256xbf16>
    %cst_22 = arith.constant dense<0.000000e+00> : vector<32x256xf32>
    %66 = tpu.matmul %63, %65, %cst_22 {dimension_numbers = #tpu.dot_dimension_numbers<[1], [0], [0], [1], [0, 0, 1, 1], [], []>} : vector<32x192xbf16>, vector<192x256xbf16>, vector<32x256xf32> -> vector<32x256xf32>
    %67 = arith.addf %51, %66 : vector<32x256xf32>
    %c0_23 = arith.constant 0 : index
    %c0_24 = arith.constant 0 : index
    %68 = vector.load %arg6[%c0_23, %c0_24] : memref<1x256xf32, #tpu.memory_space<vmem>>, vector<1x256xf32>
    %69 = vector.broadcast %68 : vector<1x256xf32> to vector<32x256xf32>
    %70 = arith.addf %67, %69 : vector<32x256xf32>
    %cst_25 = arith.constant 0.000000e+00 : f32
    %71 = vector.broadcast %cst_25 : f32 to vector<32x256xf32>
    %72 = arith.cmpf ogt, %70, %71 : vector<32x256xf32>
    %cst_26 = arith.constant 2.000000e-01 : f32
    %73 = vector.broadcast %cst_26 : f32 to vector<32x256xf32>
    %74 = arith.mulf %73, %70 : vector<32x256xf32>
    %75 = arith.select %72, %70, %74 : vector<32x256xi1>, vector<32x256xf32>
    %76 = arith.truncf %75 : vector<32x256xf32> to vector<32x256xbf16>
    %cst_27 = arith.constant 0.000000e+00 : f32
    %77 = vector.broadcast %cst_27 : f32 to vector<16x256xf32>
    %78 = tpu.iota {dimensions = array<i32: 0>} : vector<16x32xi32>
    %79 = tpu.iota {dimensions = array<i32: 1>} : vector<16x32xi32>
    %c2_i32_28 = arith.constant 2 : i32
    %80 = vector.broadcast %c2_i32_28 : i32 to vector<16x32xi32>
    %81 = arith.muli %80, %78 : vector<16x32xi32>
    %c-1_i32_29 = arith.constant -1 : i32
    %82 = vector.broadcast %c-1_i32_29 : i32 to vector<16x32xi32>
    %83 = arith.addi %81, %82 : vector<16x32xi32>
    %84 = arith.cmpi eq, %79, %83 : vector<16x32xi32>
    %85 = arith.extui %84 : vector<16x32xi1> to vector<16x32xi32>
    %86 = arith.sitofp %85 : vector<16x32xi32> to vector<16x32xf32>
    %87 = arith.truncf %86 : vector<16x32xf32> to vector<16x32xbf16>
    %cst_30 = arith.constant dense<0.000000e+00> : vector<16x256xf32>
    %88 = tpu.matmul %87, %76, %cst_30 {dimension_numbers = #tpu.dot_dimension_numbers<[1], [0], [0], [1], [0, 0, 1, 1], [], []>} : vector<16x32xbf16>, vector<32x256xbf16>, vector<16x256xf32> -> vector<16x256xf32>
    %89 = arith.truncf %88 : vector<16x256xf32> to vector<16x256xbf16>
    %c0_31 = arith.constant 0 : index
    %c0_32 = arith.constant 0 : index
    %c0_33 = arith.constant 0 : index
    %90 = vector.load %arg3[%c0_31, %c0_32, %c0_33] : memref<4x256x256xbf16, #tpu.memory_space<vmem>>, vector<1x256x256xbf16>
    %91 = vector.shape_cast %90 : vector<1x256x256xbf16> to vector<256x256xbf16>
    %cst_34 = arith.constant dense<0.000000e+00> : vector<16x256xf32>
    %92 = tpu.matmul %89, %91, %cst_34 {dimension_numbers = #tpu.dot_dimension_numbers<[1], [0], [0], [1], [0, 0, 1, 1], [], []>} : vector<16x256xbf16>, vector<256x256xbf16>, vector<16x256xf32> -> vector<16x256xf32>
    %93 = arith.addf %77, %92 : vector<16x256xf32>
    %94 = tpu.iota {dimensions = array<i32: 0>} : vector<16x32xi32>
    %95 = tpu.iota {dimensions = array<i32: 1>} : vector<16x32xi32>
    %c2_i32_35 = arith.constant 2 : i32
    %96 = vector.broadcast %c2_i32_35 : i32 to vector<16x32xi32>
    %97 = arith.muli %96, %94 : vector<16x32xi32>
    %c0_i32_36 = arith.constant 0 : i32
    %98 = vector.broadcast %c0_i32_36 : i32 to vector<16x32xi32>
    %99 = arith.addi %97, %98 : vector<16x32xi32>
    %100 = arith.cmpi eq, %95, %99 : vector<16x32xi32>
    %101 = arith.extui %100 : vector<16x32xi1> to vector<16x32xi32>
    %102 = arith.sitofp %101 : vector<16x32xi32> to vector<16x32xf32>
    %103 = arith.truncf %102 : vector<16x32xf32> to vector<16x32xbf16>
    %cst_37 = arith.constant dense<0.000000e+00> : vector<16x256xf32>
    %104 = tpu.matmul %103, %76, %cst_37 {dimension_numbers = #tpu.dot_dimension_numbers<[1], [0], [0], [1], [0, 0, 1, 1], [], []>} : vector<16x32xbf16>, vector<32x256xbf16>, vector<16x256xf32> -> vector<16x256xf32>
    %105 = arith.truncf %104 : vector<16x256xf32> to vector<16x256xbf16>
    %c1_38 = arith.constant 1 : index
    %c0_39 = arith.constant 0 : index
    %c0_40 = arith.constant 0 : index
    %106 = vector.load %arg3[%c1_38, %c0_39, %c0_40] : memref<4x256x256xbf16, #tpu.memory_space<vmem>>, vector<1x256x256xbf16>
    %107 = vector.shape_cast %106 : vector<1x256x256xbf16> to vector<256x256xbf16>
    %cst_41 = arith.constant dense<0.000000e+00> : vector<16x256xf32>
    %108 = tpu.matmul %105, %107, %cst_41 {dimension_numbers = #tpu.dot_dimension_numbers<[1], [0], [0], [1], [0, 0, 1, 1], [], []>} : vector<16x256xbf16>, vector<256x256xbf16>, vector<16x256xf32> -> vector<16x256xf32>
    %109 = arith.addf %93, %108 : vector<16x256xf32>
    %110 = tpu.iota {dimensions = array<i32: 0>} : vector<16x32xi32>
    %111 = tpu.iota {dimensions = array<i32: 1>} : vector<16x32xi32>
    %c2_i32_42 = arith.constant 2 : i32
    %112 = vector.broadcast %c2_i32_42 : i32 to vector<16x32xi32>
    %113 = arith.muli %112, %110 : vector<16x32xi32>
    %c1_i32_43 = arith.constant 1 : i32
    %114 = vector.broadcast %c1_i32_43 : i32 to vector<16x32xi32>
    %115 = arith.addi %113, %114 : vector<16x32xi32>
    %116 = arith.cmpi eq, %111, %115 : vector<16x32xi32>
    %117 = arith.extui %116 : vector<16x32xi1> to vector<16x32xi32>
    %118 = arith.sitofp %117 : vector<16x32xi32> to vector<16x32xf32>
    %119 = arith.truncf %118 : vector<16x32xf32> to vector<16x32xbf16>
    %cst_44 = arith.constant dense<0.000000e+00> : vector<16x256xf32>
    %120 = tpu.matmul %119, %76, %cst_44 {dimension_numbers = #tpu.dot_dimension_numbers<[1], [0], [0], [1], [0, 0, 1, 1], [], []>} : vector<16x32xbf16>, vector<32x256xbf16>, vector<16x256xf32> -> vector<16x256xf32>
    %121 = arith.truncf %120 : vector<16x256xf32> to vector<16x256xbf16>
    %c2_45 = arith.constant 2 : index
    %c0_46 = arith.constant 0 : index
    %c0_47 = arith.constant 0 : index
    %122 = vector.load %arg3[%c2_45, %c0_46, %c0_47] : memref<4x256x256xbf16, #tpu.memory_space<vmem>>, vector<1x256x256xbf16>
    %123 = vector.shape_cast %122 : vector<1x256x256xbf16> to vector<256x256xbf16>
    %cst_48 = arith.constant dense<0.000000e+00> : vector<16x256xf32>
    %124 = tpu.matmul %121, %123, %cst_48 {dimension_numbers = #tpu.dot_dimension_numbers<[1], [0], [0], [1], [0, 0, 1, 1], [], []>} : vector<16x256xbf16>, vector<256x256xbf16>, vector<16x256xf32> -> vector<16x256xf32>
    %125 = arith.addf %109, %124 : vector<16x256xf32>
    %126 = tpu.iota {dimensions = array<i32: 0>} : vector<16x32xi32>
    %127 = tpu.iota {dimensions = array<i32: 1>} : vector<16x32xi32>
    %c2_i32_49 = arith.constant 2 : i32
    %128 = vector.broadcast %c2_i32_49 : i32 to vector<16x32xi32>
    %129 = arith.muli %128, %126 : vector<16x32xi32>
    %c2_i32_50 = arith.constant 2 : i32
    %130 = vector.broadcast %c2_i32_50 : i32 to vector<16x32xi32>
    %131 = arith.addi %129, %130 : vector<16x32xi32>
    %132 = arith.cmpi eq, %127, %131 : vector<16x32xi32>
    %133 = arith.extui %132 : vector<16x32xi1> to vector<16x32xi32>
    %134 = arith.sitofp %133 : vector<16x32xi32> to vector<16x32xf32>
    %135 = arith.truncf %134 : vector<16x32xf32> to vector<16x32xbf16>
    %cst_51 = arith.constant dense<0.000000e+00> : vector<16x256xf32>
    %136 = tpu.matmul %135, %76, %cst_51 {dimension_numbers = #tpu.dot_dimension_numbers<[1], [0], [0], [1], [0, 0, 1, 1], [], []>} : vector<16x32xbf16>, vector<32x256xbf16>, vector<16x256xf32> -> vector<16x256xf32>
    %137 = arith.truncf %136 : vector<16x256xf32> to vector<16x256xbf16>
    %c3_52 = arith.constant 3 : index
    %c0_53 = arith.constant 0 : index
    %c0_54 = arith.constant 0 : index
    %138 = vector.load %arg3[%c3_52, %c0_53, %c0_54] : memref<4x256x256xbf16, #tpu.memory_space<vmem>>, vector<1x256x256xbf16>
    %139 = vector.shape_cast %138 : vector<1x256x256xbf16> to vector<256x256xbf16>
    %cst_55 = arith.constant dense<0.000000e+00> : vector<16x256xf32>
    %140 = tpu.matmul %137, %139, %cst_55 {dimension_numbers = #tpu.dot_dimension_numbers<[1], [0], [0], [1], [0, 0, 1, 1], [], []>} : vector<16x256xbf16>, vector<256x256xbf16>, vector<16x256xf32> -> vector<16x256xf32>
    %141 = arith.addf %125, %140 : vector<16x256xf32>
    %142 = tpu.iota {dimensions = array<i32: 1>} : vector<16x16x16xi32>
    %143 = tpu.iota {dimensions = array<i32: 2>} : vector<16x16x16xi32>
    %144 = arith.cmpi eq, %142, %143 : vector<16x16x16xi32>
    %145 = arith.extui %144 : vector<16x16x16xi1> to vector<16x16x16xi32>
    %146 = arith.sitofp %145 : vector<16x16x16xi32> to vector<16x16x16xf32>
    %147 = vector.shape_cast %146 : vector<16x16x16xf32> to vector<256x16xf32>
    %cst_56 = arith.constant dense<0.000000e+00> : vector<256xf32>
    %148 = vector.multi_reduction <add>, %141, %cst_56 [0] : vector<16x256xf32> to vector<256xf32>
    %149 = vector.shape_cast %148 : vector<256xf32> to vector<1x256xf32>
    %150 = arith.mulf %141, %141 : vector<16x256xf32>
    %cst_57 = arith.constant dense<0.000000e+00> : vector<256xf32>
    %151 = vector.multi_reduction <add>, %150, %cst_57 [0] : vector<16x256xf32> to vector<256xf32>
    %152 = vector.shape_cast %151 : vector<256xf32> to vector<1x256xf32>
    %cst_58 = arith.constant dense<0.000000e+00> : vector<1x16xf32>
    %153 = tpu.matmul %149, %147, %cst_58 {dimension_numbers = #tpu.dot_dimension_numbers<[1], [0], [0], [1], [0, 0, 1, 1], [], []>} : vector<1x256xf32>, vector<256x16xf32>, vector<1x16xf32> -> vector<1x16xf32>
    %cst_59 = arith.constant 2.560000e+02 : f32
    %154 = vector.broadcast %cst_59 : f32 to vector<1x16xf32>
    %155 = arith.divf %153, %154 : vector<1x16xf32>
    %cst_60 = arith.constant dense<0.000000e+00> : vector<1x16xf32>
    %156 = tpu.matmul %152, %147, %cst_60 {dimension_numbers = #tpu.dot_dimension_numbers<[1], [0], [0], [1], [0, 0, 1, 1], [], []>} : vector<1x256xf32>, vector<256x16xf32>, vector<1x16xf32> -> vector<1x16xf32>
    %cst_61 = arith.constant 2.560000e+02 : f32
    %157 = vector.broadcast %cst_61 : f32 to vector<1x16xf32>
    %158 = arith.divf %156, %157 : vector<1x16xf32>
    %159 = arith.mulf %155, %155 : vector<1x16xf32>
    %160 = arith.subf %158, %159 : vector<1x16xf32>
    %cst_62 = arith.constant 0.000000e+00 : f32
    %161 = vector.broadcast %cst_62 : f32 to vector<1x16xf32>
    %162 = arith.maximumf %160, %161 : vector<1x16xf32>
    %c0_63 = arith.constant 0 : index
    %c0_64 = arith.constant 0 : index
    %163 = vector.load %arg7[%c0_63, %c0_64] : memref<1x16xf32, #tpu.memory_space<vmem>>, vector<1x16xf32>
    %cst_65 = arith.constant 9.99999974E-6 : f32
    %164 = vector.broadcast %cst_65 : f32 to vector<1x16xf32>
    %165 = arith.addf %162, %164 : vector<1x16xf32>
    %166 = math.rsqrt %165 : vector<1x16xf32>
    %167 = arith.mulf %163, %166 : vector<1x16xf32>
    %c0_66 = arith.constant 0 : index
    %c0_67 = arith.constant 0 : index
    %168 = vector.load %arg8[%c0_66, %c0_67] : memref<1x16xf32, #tpu.memory_space<vmem>>, vector<1x16xf32>
    %169 = arith.mulf %155, %167 : vector<1x16xf32>
    %170 = arith.subf %168, %169 : vector<1x16xf32>
    %cst_68 = arith.constant dense<0.000000e+00> : vector<1x256xf32>
    %171 = tpu.matmul %167, %147, %cst_68 {dimension_numbers = #tpu.dot_dimension_numbers<[1], [1], [0], [0], [0, 0, 1, 0], [], []>} : vector<1x16xf32>, vector<256x16xf32>, vector<1x256xf32> -> vector<1x256xf32>
    %cst_69 = arith.constant dense<0.000000e+00> : vector<1x256xf32>
    %172 = tpu.matmul %170, %147, %cst_69 {dimension_numbers = #tpu.dot_dimension_numbers<[1], [1], [0], [0], [0, 0, 1, 0], [], []>} : vector<1x16xf32>, vector<256x16xf32>, vector<1x256xf32> -> vector<1x256xf32>
    %173 = vector.broadcast %171 : vector<1x256xf32> to vector<16x256xf32>
    %174 = arith.mulf %141, %173 : vector<16x256xf32>
    %175 = vector.broadcast %172 : vector<1x256xf32> to vector<16x256xf32>
    %176 = arith.addf %174, %175 : vector<16x256xf32>
    %cst_70 = arith.constant 0.000000e+00 : f32
    %177 = vector.broadcast %cst_70 : f32 to vector<16x256xf32>
    %178 = arith.cmpf ogt, %176, %177 : vector<16x256xf32>
    %cst_71 = arith.constant 2.000000e-01 : f32
    %179 = vector.broadcast %cst_71 : f32 to vector<16x256xf32>
    %180 = arith.mulf %179, %176 : vector<16x256xf32>
    %181 = arith.select %178, %176, %180 : vector<16x256xi1>, vector<16x256xf32>
    %182 = arith.truncf %181 : vector<16x256xf32> to vector<16x256xbf16>
    %cst_72 = arith.constant 0.000000e+00 : f32
    %183 = vector.broadcast %cst_72 : f32 to vector<8x256xf32>
    %184 = tpu.iota {dimensions = array<i32: 0>} : vector<8x16xi32>
    %185 = tpu.iota {dimensions = array<i32: 1>} : vector<8x16xi32>
    %c2_i32_73 = arith.constant 2 : i32
    %186 = vector.broadcast %c2_i32_73 : i32 to vector<8x16xi32>
    %187 = arith.muli %186, %184 : vector<8x16xi32>
    %c-1_i32_74 = arith.constant -1 : i32
    %188 = vector.broadcast %c-1_i32_74 : i32 to vector<8x16xi32>
    %189 = arith.addi %187, %188 : vector<8x16xi32>
    %190 = arith.cmpi eq, %185, %189 : vector<8x16xi32>
    %191 = arith.extui %190 : vector<8x16xi1> to vector<8x16xi32>
    %192 = arith.sitofp %191 : vector<8x16xi32> to vector<8x16xf32>
    %193 = arith.truncf %192 : vector<8x16xf32> to vector<8x16xbf16>
    %cst_75 = arith.constant dense<0.000000e+00> : vector<8x256xf32>
    %194 = tpu.matmul %193, %182, %cst_75 {dimension_numbers = #tpu.dot_dimension_numbers<[1], [0], [0], [1], [0, 0, 1, 1], [], []>} : vector<8x16xbf16>, vector<16x256xbf16>, vector<8x256xf32> -> vector<8x256xf32>
    %195 = arith.truncf %194 : vector<8x256xf32> to vector<8x256xbf16>
    %c0_76 = arith.constant 0 : index
    %c0_77 = arith.constant 0 : index
    %c0_78 = arith.constant 0 : index
    %196 = vector.load %arg4[%c0_76, %c0_77, %c0_78] : memref<4x256x256xbf16, #tpu.memory_space<vmem>>, vector<1x256x256xbf16>
    %197 = vector.shape_cast %196 : vector<1x256x256xbf16> to vector<256x256xbf16>
    %cst_79 = arith.constant dense<0.000000e+00> : vector<8x256xf32>
    %198 = tpu.matmul %195, %197, %cst_79 {dimension_numbers = #tpu.dot_dimension_numbers<[1], [0], [0], [1], [0, 0, 1, 1], [], []>} : vector<8x256xbf16>, vector<256x256xbf16>, vector<8x256xf32> -> vector<8x256xf32>
    %199 = arith.addf %183, %198 : vector<8x256xf32>
    %200 = tpu.iota {dimensions = array<i32: 0>} : vector<8x16xi32>
    %201 = tpu.iota {dimensions = array<i32: 1>} : vector<8x16xi32>
    %c2_i32_80 = arith.constant 2 : i32
    %202 = vector.broadcast %c2_i32_80 : i32 to vector<8x16xi32>
    %203 = arith.muli %202, %200 : vector<8x16xi32>
    %c0_i32_81 = arith.constant 0 : i32
    %204 = vector.broadcast %c0_i32_81 : i32 to vector<8x16xi32>
    %205 = arith.addi %203, %204 : vector<8x16xi32>
    %206 = arith.cmpi eq, %201, %205 : vector<8x16xi32>
    %207 = arith.extui %206 : vector<8x16xi1> to vector<8x16xi32>
    %208 = arith.sitofp %207 : vector<8x16xi32> to vector<8x16xf32>
    %209 = arith.truncf %208 : vector<8x16xf32> to vector<8x16xbf16>
    %cst_82 = arith.constant dense<0.000000e+00> : vector<8x256xf32>
    %210 = tpu.matmul %209, %182, %cst_82 {dimension_numbers = #tpu.dot_dimension_numbers<[1], [0], [0], [1], [0, 0, 1, 1], [], []>} : vector<8x16xbf16>, vector<16x256xbf16>, vector<8x256xf32> -> vector<8x256xf32>
    %211 = arith.truncf %210 : vector<8x256xf32> to vector<8x256xbf16>
    %c1_83 = arith.constant 1 : index
    %c0_84 = arith.constant 0 : index
    %c0_85 = arith.constant 0 : index
    %212 = vector.load %arg4[%c1_83, %c0_84, %c0_85] : memref<4x256x256xbf16, #tpu.memory_space<vmem>>, vector<1x256x256xbf16>
    %213 = vector.shape_cast %212 : vector<1x256x256xbf16> to vector<256x256xbf16>
    %cst_86 = arith.constant dense<0.000000e+00> : vector<8x256xf32>
    %214 = tpu.matmul %211, %213, %cst_86 {dimension_numbers = #tpu.dot_dimension_numbers<[1], [0], [0], [1], [0, 0, 1, 1], [], []>} : vector<8x256xbf16>, vector<256x256xbf16>, vector<8x256xf32> -> vector<8x256xf32>
    %215 = arith.addf %199, %214 : vector<8x256xf32>
    %216 = tpu.iota {dimensions = array<i32: 0>} : vector<8x16xi32>
    %217 = tpu.iota {dimensions = array<i32: 1>} : vector<8x16xi32>
    %c2_i32_87 = arith.constant 2 : i32
    %218 = vector.broadcast %c2_i32_87 : i32 to vector<8x16xi32>
    %219 = arith.muli %218, %216 : vector<8x16xi32>
    %c1_i32_88 = arith.constant 1 : i32
    %220 = vector.broadcast %c1_i32_88 : i32 to vector<8x16xi32>
    %221 = arith.addi %219, %220 : vector<8x16xi32>
    %222 = arith.cmpi eq, %217, %221 : vector<8x16xi32>
    %223 = arith.extui %222 : vector<8x16xi1> to vector<8x16xi32>
    %224 = arith.sitofp %223 : vector<8x16xi32> to vector<8x16xf32>
    %225 = arith.truncf %224 : vector<8x16xf32> to vector<8x16xbf16>
    %cst_89 = arith.constant dense<0.000000e+00> : vector<8x256xf32>
    %226 = tpu.matmul %225, %182, %cst_89 {dimension_numbers = #tpu.dot_dimension_numbers<[1], [0], [0], [1], [0, 0, 1, 1], [], []>} : vector<8x16xbf16>, vector<16x256xbf16>, vector<8x256xf32> -> vector<8x256xf32>
    %227 = arith.truncf %226 : vector<8x256xf32> to vector<8x256xbf16>
    %c2_90 = arith.constant 2 : index
    %c0_91 = arith.constant 0 : index
    %c0_92 = arith.constant 0 : index
    %228 = vector.load %arg4[%c2_90, %c0_91, %c0_92] : memref<4x256x256xbf16, #tpu.memory_space<vmem>>, vector<1x256x256xbf16>
    %229 = vector.shape_cast %228 : vector<1x256x256xbf16> to vector<256x256xbf16>
    %cst_93 = arith.constant dense<0.000000e+00> : vector<8x256xf32>
    %230 = tpu.matmul %227, %229, %cst_93 {dimension_numbers = #tpu.dot_dimension_numbers<[1], [0], [0], [1], [0, 0, 1, 1], [], []>} : vector<8x256xbf16>, vector<256x256xbf16>, vector<8x256xf32> -> vector<8x256xf32>
    %231 = arith.addf %215, %230 : vector<8x256xf32>
    %232 = tpu.iota {dimensions = array<i32: 0>} : vector<8x16xi32>
    %233 = tpu.iota {dimensions = array<i32: 1>} : vector<8x16xi32>
    %c2_i32_94 = arith.constant 2 : i32
    %234 = vector.broadcast %c2_i32_94 : i32 to vector<8x16xi32>
    %235 = arith.muli %234, %232 : vector<8x16xi32>
    %c2_i32_95 = arith.constant 2 : i32
    %236 = vector.broadcast %c2_i32_95 : i32 to vector<8x16xi32>
    %237 = arith.addi %235, %236 : vector<8x16xi32>
    %238 = arith.cmpi eq, %233, %237 : vector<8x16xi32>
    %239 = arith.extui %238 : vector<8x16xi1> to vector<8x16xi32>
    %240 = arith.sitofp %239 : vector<8x16xi32> to vector<8x16xf32>
    %241 = arith.truncf %240 : vector<8x16xf32> to vector<8x16xbf16>
    %cst_96 = arith.constant dense<0.000000e+00> : vector<8x256xf32>
    %242 = tpu.matmul %241, %182, %cst_96 {dimension_numbers = #tpu.dot_dimension_numbers<[1], [0], [0], [1], [0, 0, 1, 1], [], []>} : vector<8x16xbf16>, vector<16x256xbf16>, vector<8x256xf32> -> vector<8x256xf32>
    %243 = arith.truncf %242 : vector<8x256xf32> to vector<8x256xbf16>
    %c3_97 = arith.constant 3 : index
    %c0_98 = arith.constant 0 : index
    %c0_99 = arith.constant 0 : index
    %244 = vector.load %arg4[%c3_97, %c0_98, %c0_99] : memref<4x256x256xbf16, #tpu.memory_space<vmem>>, vector<1x256x256xbf16>
    %245 = vector.shape_cast %244 : vector<1x256x256xbf16> to vector<256x256xbf16>
    %cst_100 = arith.constant dense<0.000000e+00> : vector<8x256xf32>
    %246 = tpu.matmul %243, %245, %cst_100 {dimension_numbers = #tpu.dot_dimension_numbers<[1], [0], [0], [1], [0, 0, 1, 1], [], []>} : vector<8x256xbf16>, vector<256x256xbf16>, vector<8x256xf32> -> vector<8x256xf32>
    %247 = arith.addf %231, %246 : vector<8x256xf32>
    %248 = tpu.iota {dimensions = array<i32: 1>} : vector<8x32x32xi32>
    %249 = tpu.iota {dimensions = array<i32: 2>} : vector<8x32x32xi32>
    %250 = arith.cmpi eq, %248, %249 : vector<8x32x32xi32>
    %251 = arith.extui %250 : vector<8x32x32xi1> to vector<8x32x32xi32>
    %252 = arith.sitofp %251 : vector<8x32x32xi32> to vector<8x32x32xf32>
    %253 = vector.shape_cast %252 : vector<8x32x32xf32> to vector<256x32xf32>
    %cst_101 = arith.constant dense<0.000000e+00> : vector<256xf32>
    %254 = vector.multi_reduction <add>, %247, %cst_101 [0] : vector<8x256xf32> to vector<256xf32>
    %255 = vector.shape_cast %254 : vector<256xf32> to vector<1x256xf32>
    %256 = arith.mulf %247, %247 : vector<8x256xf32>
    %cst_102 = arith.constant dense<0.000000e+00> : vector<256xf32>
    %257 = vector.multi_reduction <add>, %256, %cst_102 [0] : vector<8x256xf32> to vector<256xf32>
    %258 = vector.shape_cast %257 : vector<256xf32> to vector<1x256xf32>
    %cst_103 = arith.constant dense<0.000000e+00> : vector<1x32xf32>
    %259 = tpu.matmul %255, %253, %cst_103 {dimension_numbers = #tpu.dot_dimension_numbers<[1], [0], [0], [1], [0, 0, 1, 1], [], []>} : vector<1x256xf32>, vector<256x32xf32>, vector<1x32xf32> -> vector<1x32xf32>
    %cst_104 = arith.constant 6.400000e+01 : f32
    %260 = vector.broadcast %cst_104 : f32 to vector<1x32xf32>
    %261 = arith.divf %259, %260 : vector<1x32xf32>
    %cst_105 = arith.constant dense<0.000000e+00> : vector<1x32xf32>
    %262 = tpu.matmul %258, %253, %cst_105 {dimension_numbers = #tpu.dot_dimension_numbers<[1], [0], [0], [1], [0, 0, 1, 1], [], []>} : vector<1x256xf32>, vector<256x32xf32>, vector<1x32xf32> -> vector<1x32xf32>
    %cst_106 = arith.constant 6.400000e+01 : f32
    %263 = vector.broadcast %cst_106 : f32 to vector<1x32xf32>
    %264 = arith.divf %262, %263 : vector<1x32xf32>
    %265 = arith.mulf %261, %261 : vector<1x32xf32>
    %266 = arith.subf %264, %265 : vector<1x32xf32>
    %cst_107 = arith.constant 0.000000e+00 : f32
    %267 = vector.broadcast %cst_107 : f32 to vector<1x32xf32>
    %268 = arith.maximumf %266, %267 : vector<1x32xf32>
    %c0_108 = arith.constant 0 : index
    %c0_109 = arith.constant 0 : index
    %269 = vector.load %arg9[%c0_108, %c0_109] : memref<1x32xf32, #tpu.memory_space<vmem>>, vector<1x32xf32>
    %cst_110 = arith.constant 9.99999974E-6 : f32
    %270 = vector.broadcast %cst_110 : f32 to vector<1x32xf32>
    %271 = arith.addf %268, %270 : vector<1x32xf32>
    %272 = math.rsqrt %271 : vector<1x32xf32>
    %273 = arith.mulf %269, %272 : vector<1x32xf32>
    %c0_111 = arith.constant 0 : index
    %c0_112 = arith.constant 0 : index
    %274 = vector.load %arg10[%c0_111, %c0_112] : memref<1x32xf32, #tpu.memory_space<vmem>>, vector<1x32xf32>
    %275 = arith.mulf %261, %273 : vector<1x32xf32>
    %276 = arith.subf %274, %275 : vector<1x32xf32>
    %cst_113 = arith.constant dense<0.000000e+00> : vector<1x256xf32>
    %277 = tpu.matmul %273, %253, %cst_113 {dimension_numbers = #tpu.dot_dimension_numbers<[1], [1], [0], [0], [0, 0, 1, 0], [], []>} : vector<1x32xf32>, vector<256x32xf32>, vector<1x256xf32> -> vector<1x256xf32>
    %cst_114 = arith.constant dense<0.000000e+00> : vector<1x256xf32>
    %278 = tpu.matmul %276, %253, %cst_114 {dimension_numbers = #tpu.dot_dimension_numbers<[1], [1], [0], [0], [0, 0, 1, 0], [], []>} : vector<1x32xf32>, vector<256x32xf32>, vector<1x256xf32> -> vector<1x256xf32>
    %279 = vector.broadcast %277 : vector<1x256xf32> to vector<8x256xf32>
    %280 = arith.mulf %247, %279 : vector<8x256xf32>
    %281 = vector.broadcast %278 : vector<1x256xf32> to vector<8x256xf32>
    %282 = arith.addf %280, %281 : vector<8x256xf32>
    %cst_115 = arith.constant 0.000000e+00 : f32
    %283 = vector.broadcast %cst_115 : f32 to vector<8x256xf32>
    %284 = arith.cmpf ogt, %282, %283 : vector<8x256xf32>
    %cst_116 = arith.constant 2.000000e-01 : f32
    %285 = vector.broadcast %cst_116 : f32 to vector<8x256xf32>
    %286 = arith.mulf %285, %282 : vector<8x256xf32>
    %287 = arith.select %284, %282, %286 : vector<8x256xi1>, vector<8x256xf32>
    %288 = arith.truncf %287 : vector<8x256xf32> to vector<8x256xbf16>
    %cst_117 = arith.constant 0.000000e+00 : f32
    %289 = vector.broadcast %cst_117 : f32 to vector<4x256xf32>
    %290 = tpu.iota {dimensions = array<i32: 0>} : vector<4x8xi32>
    %291 = tpu.iota {dimensions = array<i32: 1>} : vector<4x8xi32>
    %c2_i32_118 = arith.constant 2 : i32
    %292 = vector.broadcast %c2_i32_118 : i32 to vector<4x8xi32>
    %293 = arith.muli %292, %290 : vector<4x8xi32>
    %c-1_i32_119 = arith.constant -1 : i32
    %294 = vector.broadcast %c-1_i32_119 : i32 to vector<4x8xi32>
    %295 = arith.addi %293, %294 : vector<4x8xi32>
    %296 = arith.cmpi eq, %291, %295 : vector<4x8xi32>
    %297 = arith.extui %296 : vector<4x8xi1> to vector<4x8xi32>
    %298 = arith.sitofp %297 : vector<4x8xi32> to vector<4x8xf32>
    %299 = arith.truncf %298 : vector<4x8xf32> to vector<4x8xbf16>
    %cst_120 = arith.constant dense<0.000000e+00> : vector<4x256xf32>
    %300 = tpu.matmul %299, %288, %cst_120 {dimension_numbers = #tpu.dot_dimension_numbers<[1], [0], [0], [1], [0, 0, 1, 1], [], []>} : vector<4x8xbf16>, vector<8x256xbf16>, vector<4x256xf32> -> vector<4x256xf32>
    %301 = arith.truncf %300 : vector<4x256xf32> to vector<4x256xbf16>
    %c0_121 = arith.constant 0 : index
    %c0_122 = arith.constant 0 : index
    %c0_123 = arith.constant 0 : index
    %302 = vector.load %arg5[%c0_121, %c0_122, %c0_123] : memref<4x256x256xbf16, #tpu.memory_space<vmem>>, vector<1x256x256xbf16>
    %303 = vector.shape_cast %302 : vector<1x256x256xbf16> to vector<256x256xbf16>
    %cst_124 = arith.constant dense<0.000000e+00> : vector<4x256xf32>
    %304 = tpu.matmul %301, %303, %cst_124 {dimension_numbers = #tpu.dot_dimension_numbers<[1], [0], [0], [1], [0, 0, 1, 1], [], []>} : vector<4x256xbf16>, vector<256x256xbf16>, vector<4x256xf32> -> vector<4x256xf32>
    %305 = arith.addf %289, %304 : vector<4x256xf32>
    %306 = tpu.iota {dimensions = array<i32: 0>} : vector<4x8xi32>
    %307 = tpu.iota {dimensions = array<i32: 1>} : vector<4x8xi32>
    %c2_i32_125 = arith.constant 2 : i32
    %308 = vector.broadcast %c2_i32_125 : i32 to vector<4x8xi32>
    %309 = arith.muli %308, %306 : vector<4x8xi32>
    %c0_i32_126 = arith.constant 0 : i32
    %310 = vector.broadcast %c0_i32_126 : i32 to vector<4x8xi32>
    %311 = arith.addi %309, %310 : vector<4x8xi32>
    %312 = arith.cmpi eq, %307, %311 : vector<4x8xi32>
    %313 = arith.extui %312 : vector<4x8xi1> to vector<4x8xi32>
    %314 = arith.sitofp %313 : vector<4x8xi32> to vector<4x8xf32>
    %315 = arith.truncf %314 : vector<4x8xf32> to vector<4x8xbf16>
    %cst_127 = arith.constant dense<0.000000e+00> : vector<4x256xf32>
    %316 = tpu.matmul %315, %288, %cst_127 {dimension_numbers = #tpu.dot_dimension_numbers<[1], [0], [0], [1], [0, 0, 1, 1], [], []>} : vector<4x8xbf16>, vector<8x256xbf16>, vector<4x256xf32> -> vector<4x256xf32>
    %317 = arith.truncf %316 : vector<4x256xf32> to vector<4x256xbf16>
    %c1_128 = arith.constant 1 : index
    %c0_129 = arith.constant 0 : index
    %c0_130 = arith.constant 0 : index
    %318 = vector.load %arg5[%c1_128, %c0_129, %c0_130] : memref<4x256x256xbf16, #tpu.memory_space<vmem>>, vector<1x256x256xbf16>
    %319 = vector.shape_cast %318 : vector<1x256x256xbf16> to vector<256x256xbf16>
    %cst_131 = arith.constant dense<0.000000e+00> : vector<4x256xf32>
    %320 = tpu.matmul %317, %319, %cst_131 {dimension_numbers = #tpu.dot_dimension_numbers<[1], [0], [0], [1], [0, 0, 1, 1], [], []>} : vector<4x256xbf16>, vector<256x256xbf16>, vector<4x256xf32> -> vector<4x256xf32>
    %321 = arith.addf %305, %320 : vector<4x256xf32>
    %322 = tpu.iota {dimensions = array<i32: 0>} : vector<4x8xi32>
    %323 = tpu.iota {dimensions = array<i32: 1>} : vector<4x8xi32>
    %c2_i32_132 = arith.constant 2 : i32
    %324 = vector.broadcast %c2_i32_132 : i32 to vector<4x8xi32>
    %325 = arith.muli %324, %322 : vector<4x8xi32>
    %c1_i32_133 = arith.constant 1 : i32
    %326 = vector.broadcast %c1_i32_133 : i32 to vector<4x8xi32>
    %327 = arith.addi %325, %326 : vector<4x8xi32>
    %328 = arith.cmpi eq, %323, %327 : vector<4x8xi32>
    %329 = arith.extui %328 : vector<4x8xi1> to vector<4x8xi32>
    %330 = arith.sitofp %329 : vector<4x8xi32> to vector<4x8xf32>
    %331 = arith.truncf %330 : vector<4x8xf32> to vector<4x8xbf16>
    %cst_134 = arith.constant dense<0.000000e+00> : vector<4x256xf32>
    %332 = tpu.matmul %331, %288, %cst_134 {dimension_numbers = #tpu.dot_dimension_numbers<[1], [0], [0], [1], [0, 0, 1, 1], [], []>} : vector<4x8xbf16>, vector<8x256xbf16>, vector<4x256xf32> -> vector<4x256xf32>
    %333 = arith.truncf %332 : vector<4x256xf32> to vector<4x256xbf16>
    %c2_135 = arith.constant 2 : index
    %c0_136 = arith.constant 0 : index
    %c0_137 = arith.constant 0 : index
    %334 = vector.load %arg5[%c2_135, %c0_136, %c0_137] : memref<4x256x256xbf16, #tpu.memory_space<vmem>>, vector<1x256x256xbf16>
    %335 = vector.shape_cast %334 : vector<1x256x256xbf16> to vector<256x256xbf16>
    %cst_138 = arith.constant dense<0.000000e+00> : vector<4x256xf32>
    %336 = tpu.matmul %333, %335, %cst_138 {dimension_numbers = #tpu.dot_dimension_numbers<[1], [0], [0], [1], [0, 0, 1, 1], [], []>} : vector<4x256xbf16>, vector<256x256xbf16>, vector<4x256xf32> -> vector<4x256xf32>
    %337 = arith.addf %321, %336 : vector<4x256xf32>
    %338 = tpu.iota {dimensions = array<i32: 0>} : vector<4x8xi32>
    %339 = tpu.iota {dimensions = array<i32: 1>} : vector<4x8xi32>
    %c2_i32_139 = arith.constant 2 : i32
    %340 = vector.broadcast %c2_i32_139 : i32 to vector<4x8xi32>
    %341 = arith.muli %340, %338 : vector<4x8xi32>
    %c2_i32_140 = arith.constant 2 : i32
    %342 = vector.broadcast %c2_i32_140 : i32 to vector<4x8xi32>
    %343 = arith.addi %341, %342 : vector<4x8xi32>
    %344 = arith.cmpi eq, %339, %343 : vector<4x8xi32>
    %345 = arith.extui %344 : vector<4x8xi1> to vector<4x8xi32>
    %346 = arith.sitofp %345 : vector<4x8xi32> to vector<4x8xf32>
    %347 = arith.truncf %346 : vector<4x8xf32> to vector<4x8xbf16>
    %cst_141 = arith.constant dense<0.000000e+00> : vector<4x256xf32>
    %348 = tpu.matmul %347, %288, %cst_141 {dimension_numbers = #tpu.dot_dimension_numbers<[1], [0], [0], [1], [0, 0, 1, 1], [], []>} : vector<4x8xbf16>, vector<8x256xbf16>, vector<4x256xf32> -> vector<4x256xf32>
    %349 = arith.truncf %348 : vector<4x256xf32> to vector<4x256xbf16>
    %c3_142 = arith.constant 3 : index
    %c0_143 = arith.constant 0 : index
    %c0_144 = arith.constant 0 : index
    %350 = vector.load %arg5[%c3_142, %c0_143, %c0_144] : memref<4x256x256xbf16, #tpu.memory_space<vmem>>, vector<1x256x256xbf16>
    %351 = vector.shape_cast %350 : vector<1x256x256xbf16> to vector<256x256xbf16>
    %cst_145 = arith.constant dense<0.000000e+00> : vector<4x256xf32>
    %352 = tpu.matmul %349, %351, %cst_145 {dimension_numbers = #tpu.dot_dimension_numbers<[1], [0], [0], [1], [0, 0, 1, 1], [], []>} : vector<4x256xbf16>, vector<256x256xbf16>, vector<4x256xf32> -> vector<4x256xf32>
    %353 = arith.addf %337, %352 : vector<4x256xf32>
    %354 = tpu.iota {dimensions = array<i32: 1>} : vector<4x64x64xi32>
    %355 = tpu.iota {dimensions = array<i32: 2>} : vector<4x64x64xi32>
    %356 = arith.cmpi eq, %354, %355 : vector<4x64x64xi32>
    %357 = arith.extui %356 : vector<4x64x64xi1> to vector<4x64x64xi32>
    %358 = arith.sitofp %357 : vector<4x64x64xi32> to vector<4x64x64xf32>
    %359 = vector.shape_cast %358 : vector<4x64x64xf32> to vector<256x64xf32>
    %cst_146 = arith.constant dense<0.000000e+00> : vector<256xf32>
    %360 = vector.multi_reduction <add>, %353, %cst_146 [0] : vector<4x256xf32> to vector<256xf32>
    %361 = vector.shape_cast %360 : vector<256xf32> to vector<1x256xf32>
    %362 = arith.mulf %353, %353 : vector<4x256xf32>
    %cst_147 = arith.constant dense<0.000000e+00> : vector<256xf32>
    %363 = vector.multi_reduction <add>, %362, %cst_147 [0] : vector<4x256xf32> to vector<256xf32>
    %364 = vector.shape_cast %363 : vector<256xf32> to vector<1x256xf32>
    %cst_148 = arith.constant dense<0.000000e+00> : vector<1x64xf32>
    %365 = tpu.matmul %361, %359, %cst_148 {dimension_numbers = #tpu.dot_dimension_numbers<[1], [0], [0], [1], [0, 0, 1, 1], [], []>} : vector<1x256xf32>, vector<256x64xf32>, vector<1x64xf32> -> vector<1x64xf32>
    %cst_149 = arith.constant 1.600000e+01 : f32
    %366 = vector.broadcast %cst_149 : f32 to vector<1x64xf32>
    %367 = arith.divf %365, %366 : vector<1x64xf32>
    %cst_150 = arith.constant dense<0.000000e+00> : vector<1x64xf32>
    %368 = tpu.matmul %364, %359, %cst_150 {dimension_numbers = #tpu.dot_dimension_numbers<[1], [0], [0], [1], [0, 0, 1, 1], [], []>} : vector<1x256xf32>, vector<256x64xf32>, vector<1x64xf32> -> vector<1x64xf32>
    %cst_151 = arith.constant 1.600000e+01 : f32
    %369 = vector.broadcast %cst_151 : f32 to vector<1x64xf32>
    %370 = arith.divf %368, %369 : vector<1x64xf32>
    %371 = arith.mulf %367, %367 : vector<1x64xf32>
    %372 = arith.subf %370, %371 : vector<1x64xf32>
    %cst_152 = arith.constant 0.000000e+00 : f32
    %373 = vector.broadcast %cst_152 : f32 to vector<1x64xf32>
    %374 = arith.maximumf %372, %373 : vector<1x64xf32>
    %c0_153 = arith.constant 0 : index
    %c0_154 = arith.constant 0 : index
    %375 = vector.load %arg11[%c0_153, %c0_154] : memref<1x64xf32, #tpu.memory_space<vmem>>, vector<1x64xf32>
    %cst_155 = arith.constant 9.99999974E-6 : f32
    %376 = vector.broadcast %cst_155 : f32 to vector<1x64xf32>
    %377 = arith.addf %374, %376 : vector<1x64xf32>
    %378 = math.rsqrt %377 : vector<1x64xf32>
    %379 = arith.mulf %375, %378 : vector<1x64xf32>
    %c0_156 = arith.constant 0 : index
    %c0_157 = arith.constant 0 : index
    %380 = vector.load %arg12[%c0_156, %c0_157] : memref<1x64xf32, #tpu.memory_space<vmem>>, vector<1x64xf32>
    %381 = arith.mulf %367, %379 : vector<1x64xf32>
    %382 = arith.subf %380, %381 : vector<1x64xf32>
    %cst_158 = arith.constant dense<0.000000e+00> : vector<1x256xf32>
    %383 = tpu.matmul %379, %359, %cst_158 {dimension_numbers = #tpu.dot_dimension_numbers<[1], [1], [0], [0], [0, 0, 1, 0], [], []>} : vector<1x64xf32>, vector<256x64xf32>, vector<1x256xf32> -> vector<1x256xf32>
    %cst_159 = arith.constant dense<0.000000e+00> : vector<1x256xf32>
    %384 = tpu.matmul %382, %359, %cst_159 {dimension_numbers = #tpu.dot_dimension_numbers<[1], [1], [0], [0], [0, 0, 1, 0], [], []>} : vector<1x64xf32>, vector<256x64xf32>, vector<1x256xf32> -> vector<1x256xf32>
    %385 = vector.broadcast %383 : vector<1x256xf32> to vector<4x256xf32>
    %386 = arith.mulf %353, %385 : vector<4x256xf32>
    %387 = vector.broadcast %384 : vector<1x256xf32> to vector<4x256xf32>
    %388 = arith.addf %386, %387 : vector<4x256xf32>
    %cst_160 = arith.constant 0.000000e+00 : f32
    %389 = vector.broadcast %cst_160 : f32 to vector<4x256xf32>
    %390 = arith.cmpf ogt, %388, %389 : vector<4x256xf32>
    %cst_161 = arith.constant 2.000000e-01 : f32
    %391 = vector.broadcast %cst_161 : f32 to vector<4x256xf32>
    %392 = arith.mulf %391, %388 : vector<4x256xf32>
    %393 = arith.select %390, %388, %392 : vector<4x256xi1>, vector<4x256xf32>
    %c0_162 = arith.constant 0 : index
    %c0_163 = arith.constant 0 : index
    %394 = vector.load %arg13[%c0_162, %c0_163] : memref<4x256xf32, #tpu.memory_space<vmem>>, vector<4x256xf32>
    %395 = arith.mulf %393, %394 : vector<4x256xf32>
    %396 = vector.shape_cast %395 : vector<4x256xf32> to vector<1x4x256xf32>
    %cst_164 = arith.constant dense<0.000000e+00> : vector<1xf32>
    %397 = vector.multi_reduction <add>, %396, %cst_164 [1, 2] : vector<1x4x256xf32> to vector<1xf32>
    %398 = vector.shape_cast %397 : vector<1xf32> to vector<1x1x1xf32>
    %399 = vector.extract %398[0, 0, 0] : f32 from vector<1x1x1xf32>
    %400 = vector.broadcast %399 : f32 to vector<1x1xf32>
    %c0_165 = arith.constant 0 : index
    %c0_166 = arith.constant 0 : index
    %401 = vector.load %arg14[%c0_165, %c0_166] : memref<1x1xf32, #tpu.memory_space<vmem>>, vector<1x1xf32>
    %402 = arith.addf %400, %401 : vector<1x1xf32>
    %c0_167 = arith.constant 0 : index
    %c0_168 = arith.constant 0 : index
    %c0_169 = arith.constant 0 : index
    %403 = vector.load %arg15[%c0_167, %c0_168, %c0_169] : memref<1x1x1xf32, #tpu.memory_space<vmem>>, vector<1x1x1xf32>
    %404 = vector.shape_cast %403 : vector<1x1x1xf32> to vector<1x1xf32>
    %405 = vector.shape_cast %402 : vector<1x1xf32> to vector<1x1x1xf32>
    tpu.vector_store %arg15[%c0_167, %c0_168, %c0_169], %405 {strides = array<i32>} : memref<1x1x1xf32, #tpu.memory_space<vmem>>, vector<1x1x1xf32>,
    return
  }
  func.func @transform_0(%arg0: i32) -> (i32, i32, i32) {
    %c0_i32 = arith.constant 0 : i32
    %c0_i32_0 = arith.constant 0 : i32
    %c0_i32_1 = arith.constant 0 : i32
    return %arg0, %c0_i32, %c0_i32_0 : i32, i32, i32
  }
  func.func @transform_1(%arg0: i32) -> (i32, i32, i32) {
    %c0_i32 = arith.constant 0 : i32
    %c0_i32_0 = arith.constant 0 : i32
    %c0_i32_1 = arith.constant 0 : i32
    %c0_i32_2 = arith.constant 0 : i32
    return %c0_i32, %c0_i32_0, %c0_i32_1 : i32, i32, i32
  }
  func.func @transform_2(%arg0: i32) -> (i32, i32, i32) {
    %c0_i32 = arith.constant 0 : i32
    %c0_i32_0 = arith.constant 0 : i32
    %c0_i32_1 = arith.constant 0 : i32
    %c0_i32_2 = arith.constant 0 : i32
    return %c0_i32, %c0_i32_0, %c0_i32_1 : i32, i32, i32
  }
  func.func @transform_3(%arg0: i32) -> (i32, i32, i32) {
    %c0_i32 = arith.constant 0 : i32
    %c0_i32_0 = arith.constant 0 : i32
    %c0_i32_1 = arith.constant 0 : i32
    %c0_i32_2 = arith.constant 0 : i32
    return %c0_i32, %c0_i32_0, %c0_i32_1 : i32, i32, i32
  }
  func.func @transform_4(%arg0: i32) -> (i32, i32, i32) {
    %c0_i32 = arith.constant 0 : i32
    %c0_i32_0 = arith.constant 0 : i32
    %c0_i32_1 = arith.constant 0 : i32
    %c0_i32_2 = arith.constant 0 : i32
    return %c0_i32, %c0_i32_0, %c0_i32_1 : i32, i32, i32
  }
  func.func @transform_5(%arg0: i32) -> (i32, i32) {
    %c0_i32 = arith.constant 0 : i32
    %c0_i32_0 = arith.constant 0 : i32
    %c0_i32_1 = arith.constant 0 : i32
    return %c0_i32, %c0_i32_0 : i32, i32
  }
  func.func @transform_6(%arg0: i32) -> (i32, i32) {
    %c0_i32 = arith.constant 0 : i32
    %c0_i32_0 = arith.constant 0 : i32
    %c0_i32_1 = arith.constant 0 : i32
    return %c0_i32, %c0_i32_0 : i32, i32
  }
  func.func @transform_7(%arg0: i32) -> (i32, i32) {
    %c0_i32 = arith.constant 0 : i32
    %c0_i32_0 = arith.constant 0 : i32
    %c0_i32_1 = arith.constant 0 : i32
    return %c0_i32, %c0_i32_0 : i32, i32
  }
  func.func @transform_8(%arg0: i32) -> (i32, i32) {
    %c0_i32 = arith.constant 0 : i32
    %c0_i32_0 = arith.constant 0 : i32
    %c0_i32_1 = arith.constant 0 : i32
    return %c0_i32, %c0_i32_0 : i32, i32
  }
  func.func @transform_9(%arg0: i32) -> (i32, i32) {
    %c0_i32 = arith.constant 0 : i32
    %c0_i32_0 = arith.constant 0 : i32
    %c0_i32_1 = arith.constant 0 : i32
    return %c0_i32, %c0_i32_0 : i32, i32
  }
  func.func @transform_10(%arg0: i32) -> (i32, i32) {
    %c0_i32 = arith.constant 0 : i32
    %c0_i32_0 = arith.constant 0 : i32
    %c0_i32_1 = arith.constant 0 : i32
    return %c0_i32, %c0_i32_0 : i32, i32
  }
  func.func @transform_11(%arg0: i32) -> (i32, i32) {
    %c0_i32 = arith.constant 0 : i32
    %c0_i32_0 = arith.constant 0 : i32
    %c0_i32_1 = arith.constant 0 : i32
    return %c0_i32, %c0_i32_0 : i32, i32
  }
  func.func @transform_12(%arg0: i32) -> (i32, i32) {
    %c0_i32 = arith.constant 0 : i32
    %c0_i32_0 = arith.constant 0 : i32
    %c0_i32_1 = arith.constant 0 : i32
    return %c0_i32, %c0_i32_0 : i32, i32
  }
  func.func @transform_13(%arg0: i32) -> (i32, i32) {
    %c0_i32 = arith.constant 0 : i32
    %c0_i32_0 = arith.constant 0 : i32
    %c0_i32_1 = arith.constant 0 : i32
    return %c0_i32, %c0_i32_0 : i32, i32
  }
  func.func @transform_14(%arg0: i32) -> (i32, i32, i32) {
    %c0_i32 = arith.constant 0 : i32
    %c0_i32_0 = arith.constant 0 : i32
    %c0_i32_1 = arith.constant 0 : i32
    return %arg0, %c0_i32, %c0_i32_0 : i32, i32, i32
  }
}

</mosaic_0001>

<bundles_post_ra>
// kernel: critic_apply.1
= control target key start
LH: loop header
LB: loop body
LE: loop exit
PB: predicated region body
PF: predicated region fallthrough
CT: control target
= control target key end

     0   :  { %s11026_s0 = inlined_call_operand.vmem [shape: f32[2,64,192], index: 0, kind: input, shape index: {}]   ;;  %s11027_s1 = inlined_call_operand.hbm [shape: bf16[4,192,256], index: 1, kind: input, shape index: {}]   ;;  %s11028_s2 = inlined_call_operand.vmem [shape: bf16[4,256,256], index: 2, kind: input, shape index: {}]   ;;  %s11029_s3 = inlined_call_operand.hbm [shape: bf16[4,256,256], index: 3, kind: input, shape index: {}]   ;;  %s11030_s4 = inlined_call_operand.hbm [shape: bf16[4,256,256], index: 4, kind: input, shape index: {}]   ;;  %s11031_s5 = inlined_call_operand.vmem [shape: f32[1,256], index: 5, kind: input, shape index: {}]   ;;  %s11032_s6 = inlined_call_operand.vmem [shape: f32[1,16], index: 6, kind: input, shape index: {}]   ;;  %s11033_s7 = inlined_call_operand.vmem [shape: f32[1,16], index: 7, kind: input, shape index: {}]   ;;  %s11034_s8 = inlined_call_operand.vmem [shape: f32[1,32], index: 8, kind: input, shape index: {}]   ;;  %s11035_s9 = inlined_call_operand.vmem [shape: f32[1,32], index: 9, kind: input, shape index: {}]   ;;  %s11036_s10 = inlined_call_operand.vmem [shape: f32[1,64], index: 10, kind: input, shape index: {}]   ;;  %s11037_s11 = inlined_call_operand.vmem [shape: f32[1,64], index: 11, kind: input, shape index: {}]   ;;  %s11038_s12 = inlined_call_operand.vmem [shape: f32[4,256], index: 12, kind: input, shape index: {}]   ;;  %s11039_s13 = inlined_call_operand.<no memory space> [shape: f32[1,1], index: 13, kind: input, shape index: {}]   ;;  %s11040_s14 = inlined_call_operand.vmem [shape: f32[2,1,1], index: 14, kind: output, shape index: {}]  }
   0x1   :  { %11044 = sst [smem:[#allocation11_spill]] %s11040_s14  ;;  %v19_v0 = vstv %s11039_s13 }
   0x2   :  { %20 = vst [vmem:[#allocation2] sm:$0x1] %v19_v0 }
   0x3   :  { %21 = vsyncpa [#allocation4], 0 }
   0x4   :  { %22 = vsyncpa [#allocation6], 0  ;;  %s9340_s15 = smov 0  }
   0x5 LB: > { %11045 = sst [smem:[#allocation10_spill]] %s9252_s15  ;;  %s9346_s16 = sadd.s32 4294967295, %s9252_s15   ;;  %s9252_s15 = sphi %s9340_s15, %s28_s15  }
   0x6   : > { %p6391_p0 = scmp.ge.s32.totalorder %s9252_s15, 1  ;;  %p358_p1 = scmp.lt.s32.totalorder %s9252_s15, 3 }
   0x7   : > { %p11041_p2 = scmp.eq.s32.totalorder %s9346_s16, 0  ;;  %s9254_s17 = smov [#allocation5]  }
   0x8   : > { %p9351_p3 = pnand %p6391_p0, %p358_p1  ;;  %s386_s18 = sshll.u32 %s9254_s17, 4  ;;  %s387_s18 = int_to_ptr.vmem [resolvable:$true] %s386_s18 }
   0x9   : > { %s9255_s19 = smov [#allocation3]   ;;  %s9256_s22 = smov [#allocation7]  }
   0xa   : > { %s11046_s13 = scalar_select %p9351_p3, 1, 0 }
   0xb   : > { %p8395_p4 = pneg %p9351_p3  ;;  %s370_s20 = sshll.u32 %s9255_s19, 4  ;;  %s9363_s20 = int_to_ptr.vmem [resolvable:$true] %s370_s20 }
   0xc   : > { %s399_s23 = sshll.u32 %s9256_s22, 4  ;;  %s9154_s26 = scalar_lea.hbm %s11029_s3, 16384  ;;  %s9365_s23 = int_to_ptr.vmem [resolvable:$true] %s399_s23 }
   0xd   : > { %p9359_p5 = pnand %p11041_p2, %p8395_p4  ;;  %p9155_p6 = scmp.ne.s32.totalorder %s11029_s3, %s9154_s26 }
   0xe   : > { %p9161_p10 = scmp.lt.u32.totalorder %s9154_s26, %s11029_s3 }
   0xf   : > { %p9375_p7 = pneg %p9359_p5 }
  0x11   : > { %p9157_p8 = pnand %p9375_p7, %p9155_p6 }
  0x13   : > { %p9158_p9 = pneg %p9157_p8 }
  0x15   : > { %p9163_p11 = pnand %p9161_p10, %p9158_p9 }
  0x17   : > { %9166 = shalt.err (!%p9163_p11)
}
  0x18   : > { %s9167_s19 = scalar_lea.vmem %s387_s18, 16384  ;;  %p9175_p1 = scmp.lt.s32.totalorder %s387_s18, %s387_s18 }
  0x19   : > { %p9168_p12 = scmp.ne.s32.totalorder %s387_s18, %s9167_s19  ;;  %p9176_p4 = scmp.lt.s32.totalorder %s9167_s19, %s9167_s19 }
  0x1b   : > { %p9170_p13 = pnand %p9168_p12, %p9375_p7  ;;  %p9177_p2 = por %p9176_p4, %p9175_p1 }
  0x1d   : > { %p9171_p0 = pneg %p9170_p13 }
  0x1f   : > { %p9178_p3 = pnand %p9177_p2, %p9171_p0 }
  0x21   : > { %9181 = shalt.err (!%p9178_p3)
}
  0x22   : > { %s9257_s22 = smov 128   ;;  %s9258_s24 = smov 8  }
  0x23   : > { %8401 = dma.hbm_to_vmem [thread:$0]  (!%p9359_p5), %s11029_s3, 16384, %s387_s18, [#allocation6], %s9257_s22, %s9257_s22, %s9258_s24  }
  0x24   : > { %s9182_s30 = scalar_lea.hbm %s11027_s1, 12288 }
  0x25   : > { %p9183_p2 = scmp.ne.s32.totalorder %s11027_s1, %s9182_s30  ;;  %p9189_p8 = scmp.lt.u32.totalorder %s9182_s30, %s11027_s1 }
  0x27   : > { %p9185_p3 = pnand %p9183_p2, %p9375_p7 }
  0x29   : > { %p9186_p6 = pneg %p9185_p3 }
  0x2b   : > { %p9191_p9 = pnand %p9189_p8, %p9186_p6 }
  0x2d   : > { %9194 = shalt.err (!%p9191_p9)
}
  0x2e   : > { %s9195_s18 = scalar_lea.vmem %s9363_s20, 12288  ;;  %p9203_p13 = scmp.lt.s32.totalorder %s9363_s20, %s9363_s20 }
  0x2f   : > { %p9196_p10 = scmp.ne.s32.totalorder %s9363_s20, %s9195_s18  ;;  %p9204_p0 = scmp.lt.s32.totalorder %s9195_s18, %s9195_s18 }
  0x31   : > { %p9198_p11 = pnand %p9196_p10, %p9375_p7  ;;  %p9205_p1 = por %p9204_p0, %p9203_p13 }
  0x33   : > { %p9199_p12 = pneg %p9198_p11 }
  0x35   : > { %p9206_p4 = pnand %p9205_p1, %p9199_p12 }
  0x37   : > { %9209 = shalt.err (!%p9206_p4)
}
  0x38   : > { %8398 = dma.hbm_to_vmem [thread:$0]  (!%p9359_p5), %s11027_s1, 12288, %s9363_s20, [#allocation4], %s9257_s22, %s9257_s22, %s9258_s24  }
  0x39   : > { %s9210_s27 = scalar_lea.hbm %s11030_s4, 16384 }
  0x3a   : > { %p9211_p2 = scmp.ne.s32.totalorder %s11030_s4, %s9210_s27  ;;  %p9217_p8 = scmp.lt.u32.totalorder %s9210_s27, %s11030_s4 }
  0x3c   : > { %p9213_p3 = pnand %p9211_p2, %p9375_p7 }
  0x3e   : > { %p9214_p6 = pneg %p9213_p3 }
  0x40   : > { %p9219_p9 = pnand %p9217_p8, %p9214_p6 }
  0x42   : > { %9222 = shalt.err (!%p9219_p9)
}
  0x43   : > { %s9223_s20 = scalar_lea.vmem %s9365_s23, 16384  ;;  %p9231_p13 = scmp.lt.s32.totalorder %s9365_s23, %s9365_s23 }
  0x44   : > { %p9224_p10 = scmp.ne.s32.totalorder %s9365_s23, %s9223_s20  ;;  %p9232_p0 = scmp.lt.s32.totalorder %s9223_s20, %s9223_s20 }
  0x46   : > { %p9226_p11 = pnand %p9224_p10, %p9375_p7  ;;  %p9233_p1 = por %p9232_p0, %p9231_p13 }
  0x48   : > { %p9227_p12 = pneg %p9226_p11 }
  0x4a   : > { %p9234_p4 = pnand %p9233_p1, %p9227_p12 }
  0x4c   : > { %9237 = shalt.err (!%p9234_p4)
}
  0x4d   : > { %8404 = dma.hbm_to_vmem [thread:$0]  (!%p9359_p5), %s11030_s4, 16384, %s9365_s23, [#allocation6], %s9257_s22, %s9257_s22, %s9258_s24  }
  0x4e   : > { %p11049_p2 = scmp.ne.s32.totalorder %s11046_s13, 0 }
  0x4f   : > { %p11050_p7 = scmp.eq.s32.totalorder (!%p11049_p2), %s9346_s16, 0 }
  0x50   : > { %450 = sbr.rel (%p11049_p2) target bundleno = 4923 (0x133b), region = 76 }
  0x57   : > { %9243 = dma.done.wait (%p11050_p7), [#allocation4], 12288   ;;  %p11051_p3 = pmov %p11050_p7 }
  0x59   : > { %9245 = vsyncadd (%p11051_p3), [#allocation4], 4294955008  ;;  %p11052_p6 = pmov %p11051_p3 }
  0x5a   : > { %p11053_p8 = pmov %p11051_p3 }
  0x5b   : > { %9247 = dma.done.wait (%p11052_p6), [#allocation6], 32768  }
  0x5c   : > { %9249 = vsyncadd (%p11053_p8), [#allocation6], 4294934528  ;;  %p502_p9 = scmp.lt.s32.totalorder %s9346_s16, 1  ;;  %v535_v1 = vlaneseq  ;;  %v9259_v2 = vmov 0   ;;  %v9260_v6 = vmov 0.0   ;;  %vm564_vm9 = vcmask 523264  }
  0x5d   : > { %704 = vmatprep.mubr.bf16.mxu1 %v9259_v2  ;;  %603 = vmatprep.mubr.bf16.mxu0 %v9259_v2  ;;  %v8429_v52 = vld [vmem:[#allocation3 + $0xc4] ss:$8 sps:$4 sm:$0xff]   ;;  %v8427_v55 = vld [vmem:[#allocation3 + $0xc0] ss:$8 sps:$4 sm:$0xff]   ;;  %v8432_v56 = vld [vmem:[#allocation3 + $0xd4] ss:$8 sps:$4 sm:$0xff]  }
  0x5e   : > { %s11071_s16 = smov (!%p502_p9, %s9346_s16), 1  ;;  %v9462_v3 = vshrl.u32 %v535_v1, 7  ;;  %v9464_v4 = vand.u32 127, %v535_v1  ;;  %v8430_v63 = vld [vmem:[#allocation3 + $0xd0] ss:$8 sps:$4 sm:$0xff]   ;;  %s11068_s25 = sld [smem:[#allocation11_spill]] }
  0x5f   : > { %s7426_s13 = sshll.u32 %s11071_s16, 7 }
  0x60   : > { %v9468_v5 = vadd.s32 8, %v9462_v3  ;;  %vm2886_vm0 = vcmp.eq.s32.totalorder %v9462_v3, %v9464_v4  ;;  %s9475_s29 = scalar_lea.vmem %s11026_s0, %s7426_s13  ;;  %v538_v17 = vadd.s32 16, %v9462_v3  ;;  %v539_v23 = vadd.s32 24, %v9462_v3 }
  0x61   : > { %v6758_v7 = vsel %vm2886_vm0, 1.0, %v9260_v6  ;;  %v512_v8 = vld [vmem:[%s9475_s29 + $0x8] sm:$0xff]  ;;  %v514_v9 = vld [vmem:[%s9475_s29 + $0x18] sm:$0xff]  ;;  %v511_v10 = vld [vmem:[%s9475_s29] sm:$0xff]  ;;  %v9515_v27 = vmul.u32 2, %v9462_v3 }
  0x62   : > { %vm2887_vm1 = vcmp.eq.s32.totalorder %v9468_v5, %v9464_v4  ;;  %v9490_v12 = vpack.c.bf16 %v514_v9, %v512_v8  ;;  %v513_v13 = vld [vmem:[%s9475_s29 + $0x10] sm:$0xff]  ;;  %v516_v14 = vld [vmem:[%s9475_s29 + $0x28] sm:$0xff]  ;;  %v518_v15 = vld [vmem:[%s9475_s29 + $0x38] sm:$0xff]  ;;  %vm4397_vm2 = vcmp.eq.s32.totalorder %v538_v17, %v9464_v4  ;;  %v9518_v28 = vmul.u32 2, %v9468_v5 }
  0x63   : > { %v6759_v11 = vsel %vm2887_vm1, 1.0, %v9260_v6  ;;  %v9498_v18 = vpack.c.bf16 %v513_v13, %v511_v10  ;;  %v9500_v19 = vpack.c.bf16 %v518_v15, %v516_v14  ;;  %v515_v20 = vld [vmem:[%s9475_s29 + $0x20] sm:$0xff]  ;;  %v517_v21 = vld [vmem:[%s9475_s29 + $0x30] sm:$0xff]  ;;  %v520_v22 = vld [vmem:[%s9475_s29 + $0x48] sm:$0xff]  ;;  %vm4398_vm3 = vcmp.eq.s32.totalorder %v539_v23, %v9464_v4 }
  0x64   : > { %v9495_v16 = vpack.c.bf16 %v6759_v11, %v6758_v7  ;;  %672 = vmatprep.subr.bf16.mxu1 %v9490_v12  ;;  %v522_v24 = vld [vmem:[%s9475_s29 + $0x58] sm:$0xff]  ;;  %571 = vmatprep.subr.bf16.mxu0 %v9490_v12  ;;  %v9511_v25 = vpack.c.bf16 %v517_v21, %v515_v20  ;;  %v519_v26 = vld [vmem:[%s9475_s29 + $0x40] sm:$0xff]  ;;  %v521_v30 = vld [vmem:[%s9475_s29 + $0x50] sm:$0xff]  ;;  %v7022_v32 = vsel %vm4397_vm2, 1.0, %v9260_v6  ;;  %v7023_v33 = vsel %vm4398_vm3, 1.0, %v9260_v6  ;;  %s509_s26 = scalar_lea.vmem %s11068_s25, %s11071_s16 }
  0x65   : > { %673 = vmatpush1.bf16.msra.mxu1 %v9498_v18  ;;  %572 = vmatpush1.bf16.msra.mxu0 %v9498_v18  ;;  %v9523_v29 = vpack.c.bf16 %v522_v24, %v520_v22  ;;  %v524_v31 = vld [vmem:[%s9475_s29 + $0x68] sm:$0xff]  ;;  %v526_v34 = vld [vmem:[%s9475_s29 + $0x78] sm:$0xff]  ;;  %vm9535_vm4 = vmpackc.low %vm4398_vm3, %vm4397_vm2  ;;  %v9539_v36 = vpack.c.bf16 %v7023_v33, %v7022_v32  ;;  %v546_v37 = vadd.s32 4294967295, %v9515_v27  ;;  %v547_v38 = vadd.s32 4294967295, %v9518_v28 }
  0x66   : > { %674 = vmatprep.subr.bf16.mxu1 %v9500_v19  ;;  %573 = vmatprep.subr.bf16.mxu0 %v9500_v19  ;;  %v9544_v39 = vpack.c.bf16 %v521_v30, %v519_v26  ;;  %v523_v40 = vld [vmem:[%s9475_s29 + $0x60] sm:$0xff]  ;;  %vm652_vm5 = vcmp.eq.s32.totalorder %v9464_v4, %v9515_v27  ;;  %vm653_vm6 = vcmp.eq.s32.totalorder %v9464_v4, %v9518_v28  ;;  %v525_v42 = vld [vmem:[%s9475_s29 + $0x70] sm:$0xff]  ;;  %v9562_v44 = vmul.u32 2, %v538_v17 }
  0x67   : > { %v9553_v41 = vpack.c.bf16 %v526_v34, %v524_v31  ;;  %vm550_vm7 = vcmp.eq.s32.totalorder %v9464_v4, %v546_v37  ;;  %vm551_vm8 = vcmp.eq.s32.totalorder %v9464_v4, %v547_v38  ;;  %v9560_v43 = vsel %vm652_vm5, 1.0, %v9260_v6  ;;  %v8435_v7 = vld [vmem:[#allocation3 + $0xe4] ss:$8 sps:$4 sm:$0xff]   ;;  %v8433_v8 = vld [vmem:[#allocation3 + $0xe0] ss:$8 sps:$4 sm:$0xff]  }
  0x68   : > { %v9564_v45 = vmul.u32 2, %v539_v23  ;;  %v9567_v46 = vpack.c.bf16 %v525_v42, %v523_v40  ;;  %v6409_v47 = vsel %vm653_vm6, 1.0, %v9260_v6  ;;  %v9572_v48 = vsel %vm550_vm7, 1.0, %v9260_v6  ;;  %v8438_v9 = vld [vmem:[#allocation3 + $0xf4] ss:$8 sps:$4 sm:$0xff]  }
  0x69   : > { %675 = vmatpush1.bf16.msra.mxu1 %v9511_v25  ;;  %574 = vmatpush1.bf16.msra.mxu0 %v9511_v25  ;;  %v6403_v49 = vsel %vm551_vm8, 1.0, %v9260_v6  ;;  %v548_v50 = vadd.s32 4294967295, %v9562_v44  ;;  %v9580_v53 = vpack.c.bf16 %v6409_v47, %v9560_v43  ;;  %vm654_vm10 = vcmp.eq.s32.totalorder %v9464_v4, %v9562_v44  ;;  %v8436_v13 = vld [vmem:[#allocation3 + $0xf0] ss:$8 sps:$4 sm:$0xff]   ;;  %v8441_v17 = vld [vmem:[#allocation3 + $0x104] ss:$8 sps:$4 sm:$0xff]  }
  0x6a   : > { %676 = vmatprep.subr.bf16.mxu1 %v9523_v29  ;;  %575 = vmatprep.subr.bf16.mxu0 %v9523_v29  ;;  %v549_v51 = vadd.s32 4294967295, %v9564_v45  ;;  %v9583_v54 = vpack.c.bf16 %v6403_v49, %v9572_v48  ;;  %vm655_vm11 = vcmp.eq.s32.totalorder %v9464_v4, %v9564_v45  ;;  %v6410_v57 = vsel %vm654_vm10, 1.0, %v9260_v6  ;;  %v8439_v21 = vld [vmem:[#allocation3 + $0x100] ss:$8 sps:$4 sm:$0xff]   ;;  %v8444_v22 = vld [vmem:[#allocation3 + $0x114] ss:$8 sps:$4 sm:$0xff]  }
  0x6b   : > { %vm552_vm12 = vcmp.eq.s32.totalorder %v9464_v4, %v548_v50  ;;  %v6411_v58 = vsel %vm655_vm11, 1.0, %v9260_v6  ;;  %v1112_v61 = vadd.s32 1, %v9515_v27  ;;  %v1113_v62 = vadd.s32 1, %v9518_v28  ;;  %v8442_v26 = vld [vmem:[#allocation3 + $0x110] ss:$8 sps:$4 sm:$0xff]  }
  0x6c   : > { %vm553_vm13 = vcmp.eq.s32.totalorder %v9464_v4, %v549_v51  ;;  %v6404_v59 = vsel %vm552_vm12, 1.0, %v9260_v6  ;;  %v665_v0 = vpack.c.bf16 %v6411_v58, %v6410_v57  ;;  %v1114_v14 = vadd.s32 1, %v9562_v44  ;;  %v8447_v31 = vld [vmem:[#allocation3 + $0x124] ss:$8 sps:$4 sm:$0xff]   ;;  %v8450_v33 = vld [vmem:[#allocation3 + $0x134] ss:$8 sps:$4 sm:$0xff]  }
  0x6d   : > { %677 = vmatpush1.bf16.msra.mxu1 %v9544_v39  ;;  %576 = vmatpush1.bf16.msra.mxu0 %v9544_v39  ;;  %v6405_v60 = vsel %vm553_vm13, 1.0, %v9260_v6  ;;  %vm1116_vm14 = vcmp.eq.s32.totalorder %v9464_v4, %v1112_v61  ;;  %vm1117_vm15 = vcmp.eq.s32.totalorder %v9464_v4, %v1113_v62  ;;  %v1115_v15 = vadd.s32 1, %v9564_v45  ;;  %v8453_v34 = vld [vmem:[#allocation3 + $0x144] ss:$8 sps:$4 sm:$0xff]   ;;  %v8451_v38 = vld [vmem:[#allocation3 + $0x140] ss:$8 sps:$4 sm:$0xff]  }
  0x6e   : > { %678 = vmatprep.subr.bf16.mxu1 %v9553_v41  ;;  %577 = vmatprep.subr.bf16.mxu0 %v9553_v41  ;;  %v563_v1 = vpack.c.bf16 %v6405_v60, %v6404_v59  ;;  %v9617_v10 = vsel %vm1116_vm14, 1.0, %v9260_v6  ;;  %v6467_v11 = vsel %vm1117_vm15, 1.0, %v9260_v6  ;;  %vm1118_vm2 = vcmp.eq.s32.totalorder %v9464_v4, %v1114_v14  ;;  %v8454_v42 = vld [vmem:[#allocation3 + $0x150] ss:$8 sps:$4 sm:$0xff]   ;;  %v8462_v47 = vld [vmem:[#allocation3 + $0x174] ss:$8 sps:$4 sm:$0xff]  }
  0x6f   : > { %v9624_v20 = vpack.c.bf16 %v6467_v11, %v9617_v10  ;;  %vm1119_vm3 = vcmp.eq.s32.totalorder %v9464_v4, %v1115_v15  ;;  %v6468_v23 = vsel %vm1118_vm2, 1.0, %v9260_v6  ;;  %v1406_v30 = vadd.s32 2, %v9518_v28  ;;  %v8460_v49 = vld [vmem:[#allocation3 + $0x170] ss:$8 sps:$4 sm:$0xff]   ;;  %v8465_v50 = vld [vmem:[#allocation3 + $0x4] ss:$8 sps:$4 sm:$0xff]  }
  0x70   : > { %v6469_v24 = vsel %vm1119_vm3, 1.0, %v9260_v6  ;;  %v1407_v28 = vadd.s32 2, %v9562_v44  ;;  %v8459_v44 = vld [vmem:[#allocation3 + $0x164] ss:$8 sps:$4 sm:$0xff]  }
  0x71   : > { %679 = vmatpush1.bf16.msra.mxu1 %v9567_v46  ;;  %578 = vmatpush1.bf16.msra.mxu0 %v9567_v46  ;;  %v1129_v32 = vpack.c.bf16 %v6469_v24, %v6468_v23  ;;  %vm1410_vm6 = vcmp.eq.s32.totalorder %v9464_v4, %v1406_v30 }
  0x72   : > { %1136 = vmatprep.subr.bf16.mxu1 %v9490_v12  ;;  %880 = vmatprep.subr.bf16.mxu0 %v8429_v52  ;;  %vm1411_vm7 = vcmp.eq.s32.totalorder %v9464_v4, %v1407_v28 }
  0x73   : > { %v6500_v40 = vsel %vm1411_vm7, 1.0, %v9260_v6 }
  0x74   : > { %6412 = vmatmul.mubr.msk.bf16.vlgmr.msra.gmra.mrb[0].mxu1 %vm564_vm9, %v9580_v53  ;;  %6406 = vmatmul.mubr.msk.bf16.vlgmr.msra.gmra.mrb[0].mxu0 %vm564_vm9, %v9583_v54 }
  0x75   : > { %714 = vmatprep.mubr.bf16.mxu1 %v9259_v2  ;;  %1137 = vmatpush1.bf16.msra.mxu1 %v9498_v18 }
  0x76   : > { %1138 = vmatprep.subr.bf16.mxu1 %v9500_v19  ;;  %613 = vmatprep.mubr.bf16.mxu0 %v9259_v2 }
  0x77   : > { %881 = vmatpush1.bf16.msra.mxu0 %v8427_v55 }
  0x78   : > { %882 = vmatprep.subr.bf16.mxu0 %v8432_v56 }
  0x79   : > { %1139 = vmatpush1.bf16.msra.mxu1 %v9511_v25 }
  0x7a   : > { %1140 = vmatprep.subr.bf16.mxu1 %v9523_v29 }
  0x7b   : > { %883 = vmatpush1.bf16.msra.mxu0 %v8430_v63 }
  0x7c   : > { %6413 = vmatmul.mubr.msk.bf16.gmra.mrb[4].mxu1 %vm564_vm9, %v665_v0  ;;  %6407 = vmatmul.mubr.msk.bf16.gmra.mrb[4].mxu0 %vm564_vm9, %v563_v1  ;;  %v8463_v0 = vld [vmem:[#allocation3] ss:$8 sps:$4 sm:$0xff]  }
  0x7d   : > { %1141 = vmatpush1.bf16.msra.mxu1 %v9544_v39  ;;  %1168 = vmatprep.mubr.bf16.mxu1 %v9259_v2 }
  0x7e   : > { %1142 = vmatprep.subr.bf16.mxu1 %v9553_v41  ;;  %884 = vmatprep.subr.bf16.mxu0 %v8435_v7  ;;  %v8468_v7 = vld [vmem:[#allocation3 + $0x14] ss:$8 sps:$4 sm:$0xff]  }
  0x7f   : > { %885 = vmatpush1.bf16.msra.mxu0 %v8433_v8  ;;  %v8466_v8 = vld [vmem:[#allocation3 + $0x10] ss:$8 sps:$4 sm:$0xff]  }
  0x80   : > { %886 = vmatprep.subr.bf16.mxu0 %v8438_v9 }
  0x81   : > { %1143 = vmatpush1.bf16.msra.mxu1 %v9567_v46 }
  0x82   : > { %1429 = vmatprep.subr.bf16.mxu1 %v9490_v12  ;;  %v1405_v12 = vadd.s32 2, %v9515_v27  ;;  %v8448_v27 = vld [vmem:[#allocation3 + $0x130] ss:$8 sps:$4 sm:$0xff]  }
  0x83   : > { %887 = vmatpush1.bf16.msra.mxu0 %v8436_v13  ;;  %v8471_v13 = vld [vmem:[#allocation3 + $0x24] ss:$8 sps:$4 sm:$0xff]  }
  0x84   : > { %6470 = vmatmul.mubr.msk.bf16.vlgmr.msra.gmra.mrb[8].mxu1 %vm564_vm9, %v9624_v20  ;;  %888 = vmatprep.subr.bf16.mxu0 %v8441_v17  ;;  %vm1409_vm5 = vcmp.eq.s32.totalorder %v9464_v4, %v1405_v12  ;;  %v8469_v12 = vld [vmem:[#allocation3 + $0x20] ss:$8 sps:$4 sm:$0xff]  }
  0x85   : > { %1430 = vmatpush1.bf16.msra.mxu1 %v9498_v18  ;;  %1178 = vmatprep.mubr.bf16.mxu1 %v9259_v2  ;;  %v8445_v18 = vld [vmem:[#allocation3 + $0x120] ss:$8 sps:$4 sm:$0xff]  }
  0x86   : > { %1431 = vmatprep.subr.bf16.mxu1 %v9500_v19  ;;  %v9647_v19 = vsel %vm1409_vm5, 1.0, %v9260_v6  ;;  %vm1746_vm5 = vcmask 261120  }
  0x87   : > { %889 = vmatpush1.bf16.msra.mxu0 %v8439_v21 }
  0x88   : > { %890 = vmatprep.subr.bf16.mxu0 %v8444_v22 }
  0x89   : > { %1432 = vmatpush1.bf16.msra.mxu1 %v9511_v25  ;;  %v6499_v25 = vsel %vm1410_vm6, 1.0, %v9260_v6  ;;  %vm10215_vm6 = vmpackc.low %vm2887_vm1, %vm2886_vm0  ;;  %vm3077_vm0 = vcmask 130048  }
  0x8a   : > { %1433 = vmatprep.subr.bf16.mxu1 %v9523_v29  ;;  %v1408_v29 = vadd.s32 2, %v9564_v45  ;;  %v9654_v37 = vpack.c.bf16 %v6499_v25, %v9647_v19  ;;  %v8477_v25 = vld [vmem:[#allocation3 + $0x44] ss:$8 sps:$4 sm:$0xff]   ;;  %vm10272_vm1 = vmpackc.low %vm3077_vm0, %vm3077_vm0 }
  0x8b   : > { %891 = vmatpush1.bf16.msra.mxu0 %v8442_v26 }
  0x8c   : > { %6471 = vmatmul.mubr.msk.bf16.gmra.mrb[12].mxu1 %vm564_vm9, %v1129_v32  ;;  %892 = vmatprep.subr.bf16.mxu0 %v8447_v31  ;;  %vm1412_vm8 = vcmp.eq.s32.totalorder %v9464_v4, %v1408_v29  ;;  %v8474_v32 = vld [vmem:[#allocation3 + $0x34] ss:$8 sps:$4 sm:$0xff]  }
  0x8d   : > { %1434 = vmatpush1.bf16.msra.mxu1 %v9544_v39  ;;  %1461 = vmatprep.mubr.bf16.mxu1 %v9259_v2  ;;  %v8456_v39 = vld [vmem:[#allocation3 + $0x154] ss:$8 sps:$4 sm:$0xff]  }
  0x8e   : > { %1435 = vmatprep.subr.bf16.mxu1 %v9553_v41  ;;  %v6501_v41 = vsel %vm1412_vm8, 1.0, %v9260_v6 }
  0x8f   : > { %893 = vmatpush1.bf16.msra.mxu0 %v8445_v18  ;;  %v1422_v45 = vpack.c.bf16 %v6501_v41, %v6500_v40  ;;  %v8472_v18 = vld [vmem:[#allocation3 + $0x30] ss:$8 sps:$4 sm:$0xff]   ;;  %v8480_v40 = vld [vmem:[#allocation3 + $0x54] ss:$8 sps:$4 sm:$0xff]  }
  0x90   : > { %894 = vmatprep.subr.bf16.mxu0 %v8450_v33  ;;  %v8478_v41 = vld [vmem:[#allocation3 + $0x50] ss:$8 sps:$4 sm:$0xff]  }
  0x91   : > { %1436 = vmatpush1.bf16.msra.mxu1 %v9567_v46  ;;  %v8457_v46 = vld [vmem:[#allocation3 + $0x160] ss:$8 sps:$4 sm:$0xff]  }
  0x93   : > { %895 = vmatpush1.bf16.msra.mxu0 %v8448_v27 }
  0x94   : > { %6502 = vmatmul.mubr.msk.bf16.vlgmr.msra.gmra.mrb[16].mxu1 %vm564_vm9, %v9654_v37  ;;  %896 = vmatprep.subr.bf16.mxu0 %v8453_v34 }
  0x95   : > { %1471 = vmatprep.mubr.bf16.mxu1 %v9259_v2 }
  0x97   : > { %897 = vmatpush1.bf16.msra.mxu0 %v8451_v38  ;;  %v8475_v38 = vld [vmem:[#allocation3 + $0x40] ss:$8 sps:$4 sm:$0xff]  }
  0x98   : > { %898 = vmatprep.subr.bf16.mxu0 %v8456_v39 }
  0x9b   : > { %899 = vmatpush1.bf16.msra.mxu0 %v8454_v42 }
  0x9c   : > { %6503 = vmatmul.mubr.msk.bf16.gmra.mrb[20].mxu1 %vm564_vm9, %v1422_v45  ;;  %900 = vmatprep.subr.bf16.mxu0 %v8459_v44  ;;  %v8483_v44 = vld [vmem:[#allocation3 + $0x64] ss:$8 sps:$4 sm:$0xff]  }
  0x9d   : > { %1781 = vmatprep.mubr.bf16.mxu1 %v9259_v2 }
  0x9f   : > { %901 = vmatpush1.bf16.msra.mxu0 %v8457_v46 }
  0xa0   : > { %902 = vmatprep.subr.bf16.mxu0 %v8462_v47 }
  0xa3   : > { %903 = vmatpush1.bf16.msra.mxu0 %v8460_v49 }
  0xa4   : > { %1059 = vmatprep.subr.bf16.mxu0 %v8465_v50  ;;  %v8481_v50 = vld [vmem:[#allocation3 + $0x60] ss:$8 sps:$4 sm:$0xff]  }
 0x147   : > { %v706_v51 = vpop.f32.mrb[0].mxu1  ;;  %v9666_v52 = vpop.f32.mrb[0].mxu0 }
 0x148   : > { %v708_v55 = vpop.f32.mrb[1].mxu1  ;;  %v607_v56 = vpop.f32.mrb[1].mxu0 }
 0x149   : > { %v710_v57 = vpop.f32.mrb[2].mxu1  ;;  %v9668_v58 = vpop.f32.mrb[2].mxu0 }
 0x14a   : > { %v725_v59 = vpack.c.bf16 %v710_v57, %v706_v51  ;;  %v712_v60 = vpop.f32.mrb[3].mxu1  ;;  %v624_v61 = vpack.c.bf16 %v9668_v58, %v9666_v52  ;;  %v611_v62 = vpop.f32.mrb[3].mxu0  ;;  %v8508_v52 = vld [vmem:[#allocation3 + $0x1b0] ss:$8 sps:$4 sm:$0xff]   ;;  %v8513_v58 = vld [vmem:[#allocation3 + $0x1c4] ss:$8 sps:$4 sm:$0xff]  }
 0x14b   : > { %v726_v63 = vpack.c.bf16 %v712_v60, %v708_v55  ;;  %v625_v1 = vpack.c.bf16 %v611_v62, %v607_v56  ;;  %v8486_v55 = vld [vmem:[#allocation3 + $0x74] ss:$8 sps:$4 sm:$0xff]   ;;  %v8484_v56 = vld [vmem:[#allocation3 + $0x70] ss:$8 sps:$4 sm:$0xff]  }
 0x14d   : > { %6438 = vmatprep.mubr.msk.bf16.mxu0 %vm564_vm9, %v726_v63 }
 0x14e   : > { %913 = vmatmul.mubr.bf16.vlgmr.msra.gmra.mrb[8].mxu0 %v725_v59  ;;  %v8489_v59 = vld [vmem:[#allocation3 + $0x84] ss:$8 sps:$4 sm:$0xff]  }
 0x14f   : > { %1060 = vmatpush1.bf16.msra.mxu0 %v8463_v0  ;;  %v716_v9 = vpop.f32.mrb[4].mxu1  ;;  %v9673_v11 = vpop.f32.mrb[4].mxu0 }
 0x150   : > { %1061 = vmatprep.subr.bf16.mxu0 %v8468_v7  ;;  %v718_v14 = vpop.f32.mrb[5].mxu1  ;;  %v9675_v15 = vpop.f32.mrb[5].mxu0 }
 0x151   : > { %v720_v17 = vpop.f32.mrb[6].mxu1  ;;  %v9677_v21 = vpop.f32.mrb[6].mxu0 }
 0x152   : > { %v727_v22 = vpack.c.bf16 %v720_v17, %v716_v9  ;;  %v722_v23 = vpop.f32.mrb[7].mxu1  ;;  %v626_v24 = vpack.c.bf16 %v9677_v21, %v9673_v11  ;;  %v9681_v26 = vpop.f32.mrb[7].mxu0  ;;  %v8490_v9 = vld [vmem:[#allocation3 + $0x90] ss:$8 sps:$4 sm:$0xff]   ;;  %v8517_v11 = vld [vmem:[#allocation3 + $0x1e0] ss:$8 sps:$4 sm:$0xff]  }
 0x153   : > { %1062 = vmatpush1.bf16.msra.mxu0 %v8466_v8  ;;  %v728_v30 = vpack.c.bf16 %v722_v23, %v718_v14  ;;  %v627_v31 = vpack.c.bf16 %v9681_v26, %v9675_v15  ;;  %v8492_v8 = vld [vmem:[#allocation3 + $0x94] ss:$8 sps:$4 sm:$0xff]   ;;  %v8495_v14 = vld [vmem:[#allocation3 + $0xa4] ss:$8 sps:$4 sm:$0xff]   ;;  %v8514_v26 = vld [vmem:[#allocation3 + $0x1d0] ss:$8 sps:$4 sm:$0xff]  }
 0x154   : > { %1063 = vmatprep.subr.bf16.mxu0 %v8471_v13  ;;  %v8516_v15 = vld [vmem:[#allocation3 + $0x1d4] ss:$8 sps:$4 sm:$0xff]  }
 0x155   : > { %6439 = vmatprep.mubr.msk.bf16.mxu0 %vm564_vm9, %v728_v30  ;;  %v8493_v30 = vld [vmem:[#allocation3 + $0xa0] ss:$8 sps:$4 sm:$0xff]   ;;  %v8522_v21 = vld [vmem:[#allocation3 + $0x1f4] ss:$8 sps:$4 sm:$0xff]  }
 0x156   : > { %923 = vmatmul.mubr.bf16.gmra.mrb[12].mxu0 %v727_v22 }
 0x157   : > { %1064 = vmatpush1.bf16.msra.mxu0 %v8469_v12  ;;  %6464 = vmatprep.mubr.msk.bf16.mxu0 %vm564_vm9, %v625_v1  ;;  %v9687_v33 = vpop.f32.mrb[8].mxu1  ;;  %v8487_v1 = vld [vmem:[#allocation3 + $0x80] ss:$8 sps:$4 sm:$0xff]  }
 0x158   : > { %1065 = vmatprep.subr.bf16.mxu0 %v8474_v32  ;;  %v9689_v27 = vpop.f32.mrb[9].mxu1 }
 0x159   : > { %v9691_v28 = vpop.f32.mrb[10].mxu1 }
 0x15a   : > { %v1189_v29 = vpack.c.bf16 %v9691_v28, %v9687_v33  ;;  %v9695_v34 = vpop.f32.mrb[11].mxu1  ;;  %v8544_v33 = vld [vmem:[#allocation3 + $0x270] ss:$8 sps:$4 sm:$0xff]   ;;  %v8549_v28 = vld [vmem:[#allocation3 + $0x284] ss:$8 sps:$4 sm:$0xff]  }
 0x15b   : > { %1066 = vmatpush1.bf16.msra.mxu0 %v8472_v18  ;;  %v1190_v39 = vpack.c.bf16 %v9695_v34, %v9689_v27  ;;  %v8498_v18 = vld [vmem:[#allocation3 + $0xb4] ss:$8 sps:$4 sm:$0xff]   ;;  %v8525_v27 = vld [vmem:[#allocation3 + $0x204] ss:$8 sps:$4 sm:$0xff]   ;;  %v8523_v34 = vld [vmem:[#allocation3 + $0x200] ss:$8 sps:$4 sm:$0xff]  }
 0x15c   : > { %1067 = vmatprep.subr.bf16.mxu0 %v8477_v25  ;;  %v8496_v25 = vld [vmem:[#allocation3 + $0xb0] ss:$8 sps:$4 sm:$0xff]  }
 0x15f   : > { %1068 = vmatpush1.bf16.msra.mxu0 %v8475_v38  ;;  %v9699_v42 = vpop.f32.mrb[12].mxu1  ;;  %v8501_v38 = vld [vmem:[#allocation3 + $0x184] ss:$8 sps:$4 sm:$0xff]  }
 0x160   : > { %1069 = vmatprep.subr.bf16.mxu0 %v8480_v40  ;;  %v9701_v45 = vpop.f32.mrb[13].mxu1  ;;  %v8499_v40 = vld [vmem:[#allocation3 + $0x180] ss:$8 sps:$4 sm:$0xff]  }
 0x161   : > { %v9703_v46 = vpop.f32.mrb[14].mxu1 }
 0x162   : > { %v1191_v47 = vpack.c.bf16 %v9703_v46, %v9699_v42  ;;  %v9707_v49 = vpop.f32.mrb[15].mxu1  ;;  %v8553_v42 = vld [vmem:[#allocation3 + $0x2a0] ss:$8 sps:$4 sm:$0xff]   ;;  %v8558_v46 = vld [vmem:[#allocation3 + $0x2b4] ss:$8 sps:$4 sm:$0xff]  }
 0x163   : > { %1070 = vmatpush1.bf16.msra.mxu0 %v8478_v41  ;;  %v1192_v51 = vpack.c.bf16 %v9707_v49, %v9701_v45  ;;  %v8504_v41 = vld [vmem:[#allocation3 + $0x194] ss:$8 sps:$4 sm:$0xff]   ;;  %v8550_v49 = vld [vmem:[#allocation3 + $0x290] ss:$8 sps:$4 sm:$0xff]  }
 0x164   : > { %1071 = vmatprep.subr.bf16.mxu0 %v8483_v44  ;;  %v8502_v44 = vld [vmem:[#allocation3 + $0x190] ss:$8 sps:$4 sm:$0xff]   ;;  %v8552_v45 = vld [vmem:[#allocation3 + $0x294] ss:$8 sps:$4 sm:$0xff]  }
 0x167   : > { %1072 = vmatpush1.bf16.msra.mxu0 %v8481_v50  ;;  %v9711_v57 = vpop.f32.mrb[16].mxu1  ;;  %v8507_v50 = vld [vmem:[#allocation3 + $0x1a4] ss:$8 sps:$4 sm:$0xff]  }
 0x168   : > { %1073 = vmatprep.subr.bf16.mxu0 %v8486_v55  ;;  %v9713_v60 = vpop.f32.mrb[17].mxu1  ;;  %v8505_v55 = vld [vmem:[#allocation3 + $0x1a0] ss:$8 sps:$4 sm:$0xff]  }
 0x169   : > { %v9715_v62 = vpop.f32.mrb[18].mxu1 }
 0x16a   : > { %v1482_v63 = vpack.c.bf16 %v9715_v62, %v9711_v57  ;;  %v9719_v0 = vpop.f32.mrb[19].mxu1 }
 0x16b   : > { %1074 = vmatpush1.bf16.msra.mxu0 %v8484_v56  ;;  %v1483_v7 = vpack.c.bf16 %v9719_v0, %v9713_v60  ;;  %v8510_v56 = vld [vmem:[#allocation3 + $0x1b4] ss:$8 sps:$4 sm:$0xff]   ;;  %v8561_v60 = vld [vmem:[#allocation3 + $0x2c4] ss:$8 sps:$4 sm:$0xff]   ;;  %v8559_v0 = vld [vmem:[#allocation3 + $0x2c0] ss:$8 sps:$4 sm:$0xff]  }
 0x16c   : > { %1075 = vmatprep.subr.bf16.mxu0 %v8489_v59  ;;  %v8526_v59 = vld [vmem:[#allocation3 + $0x210] ss:$8 sps:$4 sm:$0xff]  }
 0x16f   : > { %1076 = vmatpush1.bf16.msra.mxu0 %v8487_v1  ;;  %v9723_v13 = vpop.f32.mrb[20].mxu1  ;;  %v8531_v1 = vld [vmem:[#allocation3 + $0x224] ss:$8 sps:$4 sm:$0xff]  }
 0x170   : > { %1077 = vmatprep.subr.bf16.mxu0 %v8492_v8  ;;  %v9725_v17 = vpop.f32.mrb[21].mxu1  ;;  %v8529_v8 = vld [vmem:[#allocation3 + $0x220] ss:$8 sps:$4 sm:$0xff]  }
 0x171   : > { %v9727_v22 = vpop.f32.mrb[22].mxu1 }
 0x172   : > { %v1484_v23 = vpack.c.bf16 %v9727_v22, %v9723_v13  ;;  %v9731_v12 = vpop.f32.mrb[23].mxu1 }
 0x173   : > { %1078 = vmatpush1.bf16.msra.mxu0 %v8490_v9  ;;  %v1485_v32 = vpack.c.bf16 %v9731_v12, %v9725_v17  ;;  %v8534_v9 = vld [vmem:[#allocation3 + $0x234] ss:$8 sps:$4 sm:$0xff]  }
 0x174   : > { %1079 = vmatprep.subr.bf16.mxu0 %v8495_v14  ;;  %v8532_v14 = vld [vmem:[#allocation3 + $0x230] ss:$8 sps:$4 sm:$0xff]  }
 0x177   : > { %1080 = vmatpush1.bf16.msra.mxu0 %v8493_v30  ;;  %v8537_v30 = vld [vmem:[#allocation3 + $0x244] ss:$8 sps:$4 sm:$0xff]  }
 0x178   : > { %1081 = vmatprep.subr.bf16.mxu0 %v8498_v18  ;;  %v8535_v18 = vld [vmem:[#allocation3 + $0x240] ss:$8 sps:$4 sm:$0xff]  }
 0x17b   : > { %1082 = vmatpush1.bf16.msra.mxu0 %v8496_v25  ;;  %v8540_v25 = vld [vmem:[#allocation3 + $0x254] ss:$8 sps:$4 sm:$0xff]  }
 0x17c   : > { %1344 = vmatprep.subr.bf16.mxu0 %v8501_v38  ;;  %v8538_v38 = vld [vmem:[#allocation3 + $0x250] ss:$8 sps:$4 sm:$0xff]  }
 0x17e   : > { %1092 = vmatmul.mubr.bf16.vlgmr.msra.gmra.mrb[8].mxu0 %v624_v61  ;;  %v8511_v61 = vld [vmem:[#allocation3 + $0x1c0] ss:$8 sps:$4 sm:$0xff]  }
 0x17f   : > { %1345 = vmatpush1.bf16.msra.mxu0 %v8499_v40  ;;  %6465 = vmatprep.mubr.msk.bf16.mxu0 %vm564_vm9, %v627_v31  ;;  %v8519_v31 = vld [vmem:[#allocation3 + $0x1e4] ss:$8 sps:$4 sm:$0xff]  }
 0x180   : > { %1346 = vmatprep.subr.bf16.mxu0 %v8504_v41  ;;  %v8543_v40 = vld [vmem:[#allocation3 + $0x264] ss:$8 sps:$4 sm:$0xff]   ;;  %v8541_v41 = vld [vmem:[#allocation3 + $0x260] ss:$8 sps:$4 sm:$0xff]  }
 0x183   : > { %1347 = vmatpush1.bf16.msra.mxu0 %v8502_v44  ;;  %v8546_v44 = vld [vmem:[#allocation3 + $0x274] ss:$8 sps:$4 sm:$0xff]  }
 0x184   : > { %1348 = vmatprep.subr.bf16.mxu0 %v8507_v50  ;;  %v8562_v50 = vld [vmem:[#allocation3 + $0x2d0] ss:$8 sps:$4 sm:$0xff]  }
 0x186   : > { %1102 = vmatmul.mubr.bf16.gmra.mrb[12].mxu0 %v626_v24  ;;  %v8520_v24 = vld [vmem:[#allocation3 + $0x1f0] ss:$8 sps:$4 sm:$0xff]  }
 0x187   : > { %1349 = vmatpush1.bf16.msra.mxu0 %v8505_v55  ;;  %6496 = vmatprep.mubr.msk.bf16.mxu0 %vm564_vm9, %v1190_v39  ;;  %v8528_v39 = vld [vmem:[#allocation3 + $0x214] ss:$8 sps:$4 sm:$0xff]   ;;  %v8567_v55 = vld [vmem:[#allocation3 + $0x2e4] ss:$8 sps:$4 sm:$0xff]  }
 0x188   : > { %1350 = vmatprep.subr.bf16.mxu0 %v8510_v56  ;;  %v8565_v56 = vld [vmem:[#allocation3 + $0x2e0] ss:$8 sps:$4 sm:$0xff]  }
 0x18b   : > { %1351 = vmatpush1.bf16.msra.mxu0 %v8508_v52  ;;  %v8570_v52 = vld [vmem:[#allocation3 + $0x2f4] ss:$8 sps:$4 sm:$0xff]  }
 0x18c   : > { %1352 = vmatprep.subr.bf16.mxu0 %v8513_v58  ;;  %v8568_v58 = vld [vmem:[#allocation3 + $0x2f0] ss:$8 sps:$4 sm:$0xff]  }
 0x18f   : > { %1353 = vmatpush1.bf16.msra.mxu0 %v8511_v61  ;;  %v9774_v61 = vsub.s32 0, %v9462_v3 }
 0x190   : > { %1354 = vmatprep.subr.bf16.mxu0 %v8516_v15  ;;  %v1698_v15 = vld [vmem:[%s11031_s5] sm:$0x3] }
 0x191   : > { %v1703_v57 = vrot.slane %v1698_v15, %v9774_v61 }
 0x193   : > { %1355 = vmatpush1.bf16.msra.mxu0 %v8514_v26  ;;  %v1706_v26 = vsub.s32 1, %v9462_v3 }
 0x194   : > { %1356 = vmatprep.subr.bf16.mxu0 %v8519_v31 }
 0x195   : > { %v1707_v62 = vrot.slane %v1698_v15, %v1706_v26  ;;  %v8583_v15 = vld [vmem:[%s11028_s2 + $0x140] ss:$8 sps:$4 sm:$0xff]   ;;  %v8588_v26 = vld [vmem:[%s11028_s2 + $0x154] ss:$8 sps:$4 sm:$0xff]  }
 0x197   : > { %1357 = vmatpush1.bf16.msra.mxu0 %v8517_v11 }
 0x198   : > { %1358 = vmatprep.subr.bf16.mxu0 %v8522_v21 }
 0x19b   : > { %1359 = vmatpush1.bf16.msra.mxu0 %v8520_v24 }
 0x19c   : > { %1360 = vmatprep.subr.bf16.mxu0 %v8525_v27 }
 0x19f   : > { %1361 = vmatpush1.bf16.msra.mxu0 %v8523_v34 }
 0x1a0   : > { %1362 = vmatprep.subr.bf16.mxu0 %v8528_v39 }
 0x1a3   : > { %1363 = vmatpush1.bf16.msra.mxu0 %v8526_v59 }
 0x1a4   : > { %1364 = vmatprep.subr.bf16.mxu0 %v8531_v1 }
 0x1a7   : > { %1365 = vmatpush1.bf16.msra.mxu0 %v8529_v8 }
 0x1a8   : > { %1366 = vmatprep.subr.bf16.mxu0 %v8534_v9 }
 0x1ab   : > { %1367 = vmatpush1.bf16.msra.mxu0 %v8532_v14 }
 0x1ac   : > { %1637 = vmatprep.subr.bf16.mxu0 %v8537_v30 }
 0x1ae   : > { %1377 = vmatmul.mubr.bf16.vlgmr.msra.gmra.mrb[8].mxu0 %v1189_v29  ;;  %v8547_v29 = vld [vmem:[#allocation3 + $0x280] ss:$8 sps:$4 sm:$0xff]  }
 0x1af   : > { %1638 = vmatpush1.bf16.msra.mxu0 %v8535_v18  ;;  %6497 = vmatprep.mubr.msk.bf16.mxu0 %vm564_vm9, %v1192_v51  ;;  %v8555_v51 = vld [vmem:[#allocation3 + $0x2a4] ss:$8 sps:$4 sm:$0xff]  }
 0x1b0   : > { %1639 = vmatprep.subr.bf16.mxu0 %v8540_v25 }
 0x1b3   : > { %1640 = vmatpush1.bf16.msra.mxu0 %v8538_v38 }
 0x1b4   : > { %1641 = vmatprep.subr.bf16.mxu0 %v8543_v40 }
 0x1b6   : > { %1387 = vmatmul.mubr.bf16.gmra.mrb[12].mxu0 %v1191_v47  ;;  %v8556_v47 = vld [vmem:[#allocation3 + $0x2b0] ss:$8 sps:$4 sm:$0xff]  }
 0x1b7   : > { %1642 = vmatpush1.bf16.msra.mxu0 %v8541_v41  ;;  %6528 = vmatprep.mubr.msk.bf16.mxu0 %vm564_vm9, %v1483_v7  ;;  %v8564_v7 = vld [vmem:[#allocation3 + $0x2d4] ss:$8 sps:$4 sm:$0xff]  }
 0x1b8   : > { %1643 = vmatprep.subr.bf16.mxu0 %v8546_v44 }
 0x1bb   : > { %1644 = vmatpush1.bf16.msra.mxu0 %v8544_v33 }
 0x1bc   : > { %1645 = vmatprep.subr.bf16.mxu0 %v8549_v28 }
 0x1bf   : > { %1646 = vmatpush1.bf16.msra.mxu0 %v8547_v29 }
 0x1c0   : > { %1647 = vmatprep.subr.bf16.mxu0 %v8552_v45 }
 0x1c3   : > { %1648 = vmatpush1.bf16.msra.mxu0 %v8550_v49 }
 0x1c4   : > { %1649 = vmatprep.subr.bf16.mxu0 %v8555_v51 }
 0x1c7   : > { %1650 = vmatpush1.bf16.msra.mxu0 %v8553_v42 }
 0x1c8   : > { %1651 = vmatprep.subr.bf16.mxu0 %v8558_v46 }
 0x1cb   : > { %1652 = vmatpush1.bf16.msra.mxu0 %v8556_v47 }
 0x1cc   : > { %1653 = vmatprep.subr.bf16.mxu0 %v8561_v60 }
 0x1cf   : > { %1654 = vmatpush1.bf16.msra.mxu0 %v8559_v0  ;;  %v8573_v0 = vld [vmem:[%s11028_s2 + $0x104] ss:$8 sps:$4 sm:$0xff]  }
 0x1d0   : > { %1655 = vmatprep.subr.bf16.mxu0 %v8564_v7  ;;  %v8571_v7 = vld [vmem:[%s11028_s2 + $0x100] ss:$8 sps:$4 sm:$0xff]  }
 0x1d3   : > { %1656 = vmatpush1.bf16.msra.mxu0 %v8562_v50  ;;  %v8574_v50 = vld [vmem:[%s11028_s2 + $0x110] ss:$8 sps:$4 sm:$0xff]  }
 0x1d4   : > { %1657 = vmatprep.subr.bf16.mxu0 %v8567_v55  ;;  %v8579_v55 = vld [vmem:[%s11028_s2 + $0x124] ss:$8 sps:$4 sm:$0xff]  }
 0x1d7   : > { %1658 = vmatpush1.bf16.msra.mxu0 %v8565_v56  ;;  %v8577_v56 = vld [vmem:[%s11028_s2 + $0x120] ss:$8 sps:$4 sm:$0xff]  }
 0x1d8   : > { %1659 = vmatprep.subr.bf16.mxu0 %v8570_v52  ;;  %v8580_v52 = vld [vmem:[%s11028_s2 + $0x130] ss:$8 sps:$4 sm:$0xff]  }
 0x1db   : > { %1660 = vmatpush1.bf16.msra.mxu0 %v8568_v58  ;;  %v8585_v58 = vld [vmem:[%s11028_s2 + $0x144] ss:$8 sps:$4 sm:$0xff]  }
 0x1de   : > { %1670 = vmatmul.mubr.bf16.vlgmr.msra.gmra.mrb[8].mxu0 %v1482_v63 }
 0x1df   : > { %6529 = vmatprep.mubr.msk.bf16.mxu0 %vm564_vm9, %v1485_v32 }
 0x1e6   : > { %1680 = vmatmul.mubr.bf16.gmra.mrb[12].mxu0 %v1484_v23 }
 0x2b1   : > { %v1671_v63 = vpop.f32.mrb[8].mxu0 }
 0x2b2   : > { %v1710_v17 = vadd.f32 %v1703_v57, %v1671_v63  ;;  %v1673_v12 = vpop.f32.mrb[9].mxu0  ;;  %v8589_v63 = vld [vmem:[%s11028_s2 + $0x160] ss:$8 sps:$4 sm:$0xff]  }
 0x2b3   : > { %v1711_v32 = vadd.f32 %v1707_v62, %v1673_v12  ;;  %v1675_v31 = vpop.f32.mrb[10].mxu0  ;;  %v8592_v12 = vld [vmem:[%s11028_s2 + $0x170] ss:$8 sps:$4 sm:$0xff]  }
 0x2b4   : > { %v1726_v11 = vmul.f32 0.2, %v1710_v17  ;;  %v1712_v13 = vadd.f32 %v1703_v57, %v1675_v31  ;;  %v1677_v22 = vpop.f32.mrb[11].mxu0  ;;  %vm1718_vm10 = vcmp.gt.f32.partialorder %v1710_v17, 0.0  ;;  %v8595_v31 = vld [vmem:[%s11028_s2 + $0x180] ss:$8 sps:$4 sm:$0xff]  }
 0x2b5   : > { %v1727_v23 = vmul.f32 0.2, %v1711_v32  ;;  %v1713_v21 = vadd.f32 %v1707_v62, %v1677_v22  ;;  %vm1719_vm11 = vcmp.gt.f32.partialorder %v1711_v32, 0.0  ;;  %v8603_v22 = vld [vmem:[%s11028_s2 + $0x1a4] ss:$8 sps:$4 sm:$0xff]  }
 0x2b6   : > { %vm1720_vm12 = vcmp.gt.f32.partialorder %v1712_v13, 0.0  ;;  %v1728_v24 = vmul.f32 0.2, %v1712_v13  ;;  %v1734_v34 = vsel %vm1718_vm10, %v1710_v17, %v1726_v11  ;;  %v8594_v17 = vld [vmem:[%s11028_s2 + $0x174] ss:$8 sps:$4 sm:$0xff]  }
 0x2b7   : > { %vm1721_vm13 = vcmp.gt.f32.partialorder %v1713_v21, 0.0  ;;  %v1729_v27 = vmul.f32 0.2, %v1713_v21  ;;  %v1735_v59 = vsel %vm1719_vm11, %v1711_v32, %v1727_v23  ;;  %v8597_v32 = vld [vmem:[%s11028_s2 + $0x184] ss:$8 sps:$4 sm:$0xff]  }
 0x2b8   : > { %v1736_v39 = vsel %vm1720_vm12, %v1712_v13, %v1728_v24  ;;  %v8600_v11 = vld [vmem:[%s11028_s2 + $0x194] ss:$8 sps:$4 sm:$0xff]   ;;  %v8598_v13 = vld [vmem:[%s11028_s2 + $0x190] ss:$8 sps:$4 sm:$0xff]   ;;  %v8601_v23 = vld [vmem:[%s11028_s2 + $0x1a0] ss:$8 sps:$4 sm:$0xff]  }
 0x2b9   : > { %v9781_v1 = vpack.c.bf16 %v1736_v39, %v1734_v34  ;;  %v1737_v8 = vsel %vm1721_vm13, %v1713_v21, %v1729_v27  ;;  %v1681_v9 = vpop.f32.mrb[12].mxu0  ;;  %v8606_v21 = vld [vmem:[%s11028_s2 + $0x1b4] ss:$8 sps:$4 sm:$0xff]   ;;  %v8604_v24 = vld [vmem:[%s11028_s2 + $0x1b0] ss:$8 sps:$4 sm:$0xff]   ;;  %vm10533_vm12 = vmpackc.low %vm1746_vm5, %vm1746_vm5 }
 0x2ba   : > { %v9783_v14 = vpack.c.bf16 %v1737_v8, %v1735_v59  ;;  %v1714_v30 = vadd.f32 %v1703_v57, %v1681_v9  ;;  %v1683_v18 = vpop.f32.mrb[13].mxu0  ;;  %v8609_v27 = vld [vmem:[%s11028_s2 + $0x1c4] ss:$8 sps:$4 sm:$0xff]   ;;  %v8607_v34 = vld [vmem:[%s11028_s2 + $0x1c0] ss:$8 sps:$4 sm:$0xff]  }
 0x2bb   : > { %v1715_v25 = vadd.f32 %v1707_v62, %v1683_v18  ;;  %v1685_v38 = vpop.f32.mrb[14].mxu0  ;;  %v8612_v39 = vld [vmem:[%s11028_s2 + $0x1d4] ss:$8 sps:$4 sm:$0xff]   ;;  %v8610_v59 = vld [vmem:[%s11028_s2 + $0x1d0] ss:$8 sps:$4 sm:$0xff]  }
 0x2bc   : > { %v1730_v40 = vmul.f32 0.2, %v1714_v30  ;;  %v1716_v41 = vadd.f32 %v1703_v57, %v1685_v38  ;;  %v1687_v44 = vpop.f32.mrb[15].mxu0  ;;  %1749 = vmatprep.subr.bf16.mxu1 %v9783_v14  ;;  %vm1722_vm14 = vcmp.gt.f32.partialorder %v1714_v30, 0.0  ;;  %v8586_v57 = vld [vmem:[%s11028_s2 + $0x150] ss:$8 sps:$4 sm:$0xff]  }
 0x2bd   : > { %v1731_v33 = vmul.f32 0.2, %v1715_v25  ;;  %v1717_v28 = vadd.f32 %v1707_v62, %v1687_v44  ;;  %1750 = vmatpush1.bf16.msra.mxu1 %v9781_v1  ;;  %vm1723_vm15 = vcmp.gt.f32.partialorder %v1715_v25, 0.0  ;;  %v8591_v62 = vld [vmem:[%s11028_s2 + $0x164] ss:$8 sps:$4 sm:$0xff]  }
 0x2be   : > { %vm1724_vm2 = vcmp.gt.f32.partialorder %v1716_v41, 0.0  ;;  %v1732_v29 = vmul.f32 0.2, %v1716_v41  ;;  %v1738_v49 = vsel %vm1722_vm14, %v1714_v30, %v1730_v40  ;;  %v8613_v8 = vld [vmem:[%s11028_s2 + $0x1e0] ss:$8 sps:$4 sm:$0xff]  }
 0x2bf   : > { %vm1725_vm3 = vcmp.gt.f32.partialorder %v1717_v28, 0.0  ;;  %v1733_v45 = vmul.f32 0.2, %v1717_v28  ;;  %v1739_v42 = vsel %vm1723_vm15, %v1715_v25, %v1731_v33  ;;  %v8615_v9 = vld [vmem:[%s11028_s2 + $0x1e4] ss:$8 sps:$4 sm:$0xff]   ;;  %vm4771_vm15 = vcmask 1043456  }
 0x2c0   : > { %v1740_v51 = vsel %vm1724_vm2, %v1716_v41, %v1732_v29  ;;  %v8618_v30 = vld [vmem:[%s11028_s2 + $0x1f4] ss:$8 sps:$4 sm:$0xff]   ;;  %v8616_v18 = vld [vmem:[%s11028_s2 + $0x1f0] ss:$8 sps:$4 sm:$0xff]   ;;  %v8621_v25 = vld [vmem:[%s11028_s2 + $0x4] ss:$8 sps:$4 sm:$0xff]  }
 0x2c1   : > { %v9787_v46 = vpack.c.bf16 %v1740_v51, %v1738_v49  ;;  %v1741_v47 = vsel %vm1725_vm3, %v1717_v28, %v1733_v45  ;;  %vm4768_vm2 = vcmask 64512  }
 0x2c2   : > { %v9789_v60 = vpack.c.bf16 %v1741_v47, %v1739_v42 }
 0x2c4   : > { %1751 = vmatprep.subr.bf16.mxu1 %v9789_v60 }
 0x2c5   : > { %1752 = vmatpush1.bf16.msra.mxu1 %v9787_v46 }
 0x2c6   : > { %1828 = vmatprep.subr.bf16.mxu1 %v9783_v14 }
 0x2c8   : > { %6530 = vmatmul.mubr.msk.bf16.vlgmr.msra.gmra.mrb[24].mxu1 %vm1746_vm5, %v9583_v54  ;;  %v8576_v54 = vld [vmem:[%s11028_s2 + $0x114] ss:$8 sps:$4 sm:$0xff]  }
 0x2c9   : > { %1829 = vmatpush1.bf16.msra.mxu1 %v9781_v1  ;;  %1860 = vmatprep.mubr.bf16.mxu1 %v9259_v2 }
 0x2ca   : > { %1830 = vmatprep.subr.bf16.mxu1 %v9789_v60 }
 0x2cd   : > { %1831 = vmatpush1.bf16.msra.mxu1 %v9787_v46 }
 0x2ce   : > { %2066 = vmatprep.subr.bf16.mxu1 %v8573_v0  ;;  %v8619_v0 = vld [vmem:[%s11028_s2] ss:$8 sps:$4 sm:$0xff]  }
 0x2d0   : > { %6531 = vmatmul.mubr.msk.bf16.vlgmr.msra.gmra.mrb[28].mxu1 %vm1746_vm5, %v9580_v53  ;;  %v8582_v53 = vld [vmem:[%s11028_s2 + $0x134] ss:$8 sps:$4 sm:$0xff]  }
 0x2d1   : > { %2067 = vmatpush1.bf16.msra.mxu1 %v8571_v7  ;;  %v8624_v7 = vld [vmem:[%s11028_s2 + $0x14] ss:$8 sps:$4 sm:$0xff]  }
 0x2d2   : > { %2068 = vmatprep.subr.bf16.mxu1 %v8576_v54  ;;  %v8622_v54 = vld [vmem:[%s11028_s2 + $0x10] ss:$8 sps:$4 sm:$0xff]  }
 0x2d5   : > { %2069 = vmatpush1.bf16.msra.mxu1 %v8574_v50  ;;  %v8627_v50 = vld [vmem:[%s11028_s2 + $0x24] ss:$8 sps:$4 sm:$0xff]  }
 0x2d6   : > { %2070 = vmatprep.subr.bf16.mxu1 %v8579_v55  ;;  %v8625_v55 = vld [vmem:[%s11028_s2 + $0x20] ss:$8 sps:$4 sm:$0xff]  }
 0x2d9   : > { %2071 = vmatpush1.bf16.msra.mxu1 %v8577_v56  ;;  %v8630_v56 = vld [vmem:[%s11028_s2 + $0x34] ss:$8 sps:$4 sm:$0xff]  }
 0x2da   : > { %2072 = vmatprep.subr.bf16.mxu1 %v8582_v53  ;;  %v8628_v53 = vld [vmem:[%s11028_s2 + $0x30] ss:$8 sps:$4 sm:$0xff]  }
 0x2dd   : > { %2073 = vmatpush1.bf16.msra.mxu1 %v8580_v52  ;;  %v8633_v52 = vld [vmem:[%s11028_s2 + $0x44] ss:$8 sps:$4 sm:$0xff]  }
 0x2de   : > { %2074 = vmatprep.subr.bf16.mxu1 %v8585_v58  ;;  %v8631_v58 = vld [vmem:[%s11028_s2 + $0x40] ss:$8 sps:$4 sm:$0xff]  }
 0x2e1   : > { %2075 = vmatpush1.bf16.msra.mxu1 %v8583_v15  ;;  %v8636_v15 = vld [vmem:[%s11028_s2 + $0x54] ss:$8 sps:$4 sm:$0xff]  }
 0x2e2   : > { %2076 = vmatprep.subr.bf16.mxu1 %v8588_v26  ;;  %v8634_v26 = vld [vmem:[%s11028_s2 + $0x50] ss:$8 sps:$4 sm:$0xff]  }
 0x2e5   : > { %2077 = vmatpush1.bf16.msra.mxu1 %v8586_v57  ;;  %v8639_v57 = vld [vmem:[%s11028_s2 + $0x64] ss:$8 sps:$4 sm:$0xff]  }
 0x2e6   : > { %2078 = vmatprep.subr.bf16.mxu1 %v8591_v62  ;;  %v8637_v62 = vld [vmem:[%s11028_s2 + $0x60] ss:$8 sps:$4 sm:$0xff]  }
 0x2e9   : > { %2079 = vmatpush1.bf16.msra.mxu1 %v8589_v63  ;;  %v8642_v63 = vld [vmem:[%s11028_s2 + $0x74] ss:$8 sps:$4 sm:$0xff]  }
 0x2ea   : > { %2080 = vmatprep.subr.bf16.mxu1 %v8594_v17  ;;  %v8640_v17 = vld [vmem:[%s11028_s2 + $0x70] ss:$8 sps:$4 sm:$0xff]  }
 0x2ed   : > { %2081 = vmatpush1.bf16.msra.mxu1 %v8592_v12  ;;  %v8645_v12 = vld [vmem:[%s11028_s2 + $0x84] ss:$8 sps:$4 sm:$0xff]  }
 0x2ee   : > { %2082 = vmatprep.subr.bf16.mxu1 %v8597_v32  ;;  %v8643_v32 = vld [vmem:[%s11028_s2 + $0x80] ss:$8 sps:$4 sm:$0xff]  }
 0x2f1   : > { %2083 = vmatpush1.bf16.msra.mxu1 %v8595_v31  ;;  %v8648_v31 = vld [vmem:[%s11028_s2 + $0x94] ss:$8 sps:$4 sm:$0xff]  }
 0x2f2   : > { %2084 = vmatprep.subr.bf16.mxu1 %v8600_v11  ;;  %v8646_v11 = vld [vmem:[%s11028_s2 + $0x90] ss:$8 sps:$4 sm:$0xff]  }
 0x2f5   : > { %2085 = vmatpush1.bf16.msra.mxu1 %v8598_v13  ;;  %v8651_v13 = vld [vmem:[%s11028_s2 + $0xa4] ss:$8 sps:$4 sm:$0xff]  }
 0x2f6   : > { %2086 = vmatprep.subr.bf16.mxu1 %v8603_v22  ;;  %v8649_v22 = vld [vmem:[%s11028_s2 + $0xa0] ss:$8 sps:$4 sm:$0xff]  }
 0x2f9   : > { %2087 = vmatpush1.bf16.msra.mxu1 %v8601_v23  ;;  %v8654_v23 = vld [vmem:[%s11028_s2 + $0xb4] ss:$8 sps:$4 sm:$0xff]  }
 0x2fa   : > { %2088 = vmatprep.subr.bf16.mxu1 %v8606_v21  ;;  %v8652_v21 = vld [vmem:[%s11028_s2 + $0xb0] ss:$8 sps:$4 sm:$0xff]  }
 0x2fd   : > { %2089 = vmatpush1.bf16.msra.mxu1 %v8604_v24  ;;  %v8657_v24 = vld [vmem:[%s11028_s2 + $0xc4] ss:$8 sps:$4 sm:$0xff]  }
 0x2fe   : > { %2090 = vmatprep.subr.bf16.mxu1 %v8609_v27  ;;  %v8655_v27 = vld [vmem:[%s11028_s2 + $0xc0] ss:$8 sps:$4 sm:$0xff]  }
 0x301   : > { %2091 = vmatpush1.bf16.msra.mxu1 %v8607_v34  ;;  %v8660_v34 = vld [vmem:[%s11028_s2 + $0xd4] ss:$8 sps:$4 sm:$0xff]  }
 0x302   : > { %2092 = vmatprep.subr.bf16.mxu1 %v8612_v39  ;;  %v8658_v39 = vld [vmem:[%s11028_s2 + $0xd0] ss:$8 sps:$4 sm:$0xff]  }
 0x305   : > { %2093 = vmatpush1.bf16.msra.mxu1 %v8610_v59  ;;  %v8663_v59 = vld [vmem:[%s11028_s2 + $0xe4] ss:$8 sps:$4 sm:$0xff]  }
 0x306   : > { %2094 = vmatprep.subr.bf16.mxu1 %v8615_v9  ;;  %v8666_v9 = vld [vmem:[%s11028_s2 + $0xf4] ss:$8 sps:$4 sm:$0xff]  }
 0x309   : > { %2095 = vmatpush1.bf16.msra.mxu1 %v8613_v8  ;;  %v8661_v8 = vld [vmem:[%s11028_s2 + $0xe0] ss:$8 sps:$4 sm:$0xff]  }
 0x30a   : > { %2096 = vmatprep.subr.bf16.mxu1 %v8618_v30  ;;  %v8664_v30 = vld [vmem:[%s11028_s2 + $0xf0] ss:$8 sps:$4 sm:$0xff]  }
 0x30d   : > { %2097 = vmatpush1.bf16.msra.mxu1 %v8616_v18  ;;  %v8669_v18 = vld [vmem:[%s11028_s2 + $0x204] ss:$8 sps:$4 sm:$0xff]  }
 0x30e   : > { %2269 = vmatprep.subr.bf16.mxu1 %v8621_v25  ;;  %v8667_v25 = vld [vmem:[%s11028_s2 + $0x200] ss:$8 sps:$4 sm:$0xff]  }
 0x39b   : > { %v9901_v38 = vpop.f32.mrb[24].mxu1 }
 0x39c   : > { %v1785_v40 = vpop.f32.mrb[25].mxu1 }
 0x39d   : > { %v9903_v41 = vpop.f32.mrb[26].mxu1 }
 0x39e   : > { %v1792_v44 = vpack.c.bf16 %v9903_v41, %v9901_v38  ;;  %v1789_v33 = vpop.f32.mrb[27].mxu1  ;;  %v8672_v38 = vld [vmem:[%s11028_s2 + $0x214] ss:$8 sps:$4 sm:$0xff]   ;;  %v8675_v41 = vld [vmem:[%s11028_s2 + $0x224] ss:$8 sps:$4 sm:$0xff]  }
 0x39f   : > { %v1793_v28 = vpack.c.bf16 %v1789_v33, %v1785_v40  ;;  %v8670_v40 = vld [vmem:[%s11028_s2 + $0x210] ss:$8 sps:$4 sm:$0xff]  }
 0x3a0   : > { %v8676_v33 = vld [vmem:[%s11028_s2 + $0x230] ss:$8 sps:$4 sm:$0xff]  }
 0x3a3   : > { %v1862_v29 = vpop.f32.mrb[28].mxu1 }
 0x3a4   : > { %v1864_v45 = vpop.f32.mrb[29].mxu1 }
 0x3a5   : > { %v1866_v49 = vpop.f32.mrb[30].mxu1 }
 0x3a6   : > { %v1871_v51 = vpack.c.bf16 %v1866_v49, %v1862_v29  ;;  %v1868_v42 = vpop.f32.mrb[31].mxu1  ;;  %v8679_v29 = vld [vmem:[%s11028_s2 + $0x240] ss:$8 sps:$4 sm:$0xff]   ;;  %v8682_v49 = vld [vmem:[%s11028_s2 + $0x250] ss:$8 sps:$4 sm:$0xff]  }
 0x3a7   : > { %v1872_v47 = vpack.c.bf16 %v1868_v42, %v1864_v45  ;;  %v8684_v45 = vld [vmem:[%s11028_s2 + $0x254] ss:$8 sps:$4 sm:$0xff]   ;;  %v8685_v42 = vld [vmem:[%s11028_s2 + $0x260] ss:$8 sps:$4 sm:$0xff]  }
 0x3a9   : > { %2098 = vmatprep.mubr.bf16.mxu1 %v1872_v47  ;;  %v8690_v47 = vld [vmem:[%s11028_s2 + $0x274] ss:$8 sps:$4 sm:$0xff]  }
 0x3aa   : > { %2099 = vmatmul.mubr.bf16.vlgmr.msra.gmra.mrb[32].mxu1 %v1871_v51  ;;  %v8687_v51 = vld [vmem:[%s11028_s2 + $0x264] ss:$8 sps:$4 sm:$0xff]  }
 0x3ab   : > { %2270 = vmatpush1.bf16.msra.mxu1 %v8619_v0  ;;  %2301 = vmatprep.mubr.bf16.mxu1 %v1793_v28  ;;  %v8681_v28 = vld [vmem:[%s11028_s2 + $0x244] ss:$8 sps:$4 sm:$0xff]   ;;  %v8688_v0 = vld [vmem:[%s11028_s2 + $0x270] ss:$8 sps:$4 sm:$0xff]  }
 0x3ac   : > { %2271 = vmatprep.subr.bf16.mxu1 %v8624_v7  ;;  %v8693_v7 = vld [vmem:[%s11028_s2 + $0x284] ss:$8 sps:$4 sm:$0xff]  }
 0x3af   : > { %2272 = vmatpush1.bf16.msra.mxu1 %v8622_v54  ;;  %v8691_v54 = vld [vmem:[%s11028_s2 + $0x280] ss:$8 sps:$4 sm:$0xff]  }
 0x3b0   : > { %2273 = vmatprep.subr.bf16.mxu1 %v8627_v50  ;;  %v8696_v50 = vld [vmem:[%s11028_s2 + $0x294] ss:$8 sps:$4 sm:$0xff]  }
 0x3b3   : > { %2274 = vmatpush1.bf16.msra.mxu1 %v8625_v55  ;;  %v8694_v55 = vld [vmem:[%s11028_s2 + $0x290] ss:$8 sps:$4 sm:$0xff]  }
 0x3b4   : > { %2275 = vmatprep.subr.bf16.mxu1 %v8630_v56  ;;  %v8699_v56 = vld [vmem:[%s11028_s2 + $0x2a4] ss:$8 sps:$4 sm:$0xff]  }
 0x3b7   : > { %2276 = vmatpush1.bf16.msra.mxu1 %v8628_v53  ;;  %v8697_v53 = vld [vmem:[%s11028_s2 + $0x2a0] ss:$8 sps:$4 sm:$0xff]  }
 0x3b8   : > { %2277 = vmatprep.subr.bf16.mxu1 %v8633_v52  ;;  %v8702_v52 = vld [vmem:[%s11028_s2 + $0x2b4] ss:$8 sps:$4 sm:$0xff]  }
 0x3bb   : > { %2278 = vmatpush1.bf16.msra.mxu1 %v8631_v58  ;;  %v8700_v58 = vld [vmem:[%s11028_s2 + $0x2b0] ss:$8 sps:$4 sm:$0xff]  }
 0x3bc   : > { %2279 = vmatprep.subr.bf16.mxu1 %v8636_v15  ;;  %v8705_v15 = vld [vmem:[%s11028_s2 + $0x2c4] ss:$8 sps:$4 sm:$0xff]  }
 0x3bf   : > { %2280 = vmatpush1.bf16.msra.mxu1 %v8634_v26  ;;  %v8703_v26 = vld [vmem:[%s11028_s2 + $0x2c0] ss:$8 sps:$4 sm:$0xff]  }
 0x3c0   : > { %2281 = vmatprep.subr.bf16.mxu1 %v8639_v57  ;;  %v8708_v57 = vld [vmem:[%s11028_s2 + $0x2d4] ss:$8 sps:$4 sm:$0xff]  }
 0x3c3   : > { %2282 = vmatpush1.bf16.msra.mxu1 %v8637_v62  ;;  %v8706_v62 = vld [vmem:[%s11028_s2 + $0x2d0] ss:$8 sps:$4 sm:$0xff]  }
 0x3c4   : > { %2283 = vmatprep.subr.bf16.mxu1 %v8642_v63  ;;  %v8711_v63 = vld [vmem:[%s11028_s2 + $0x2e4] ss:$8 sps:$4 sm:$0xff]  }
 0x3c7   : > { %2284 = vmatpush1.bf16.msra.mxu1 %v8640_v17  ;;  %v8709_v17 = vld [vmem:[%s11028_s2 + $0x2e0] ss:$8 sps:$4 sm:$0xff]  }
 0x3c8   : > { %2285 = vmatprep.subr.bf16.mxu1 %v8645_v12  ;;  %v8714_v12 = vld [vmem:[%s11028_s2 + $0x2f4] ss:$8 sps:$4 sm:$0xff]  }
 0x3cb   : > { %2286 = vmatpush1.bf16.msra.mxu1 %v8643_v32  ;;  %v8712_v32 = vld [vmem:[%s11028_s2 + $0x2f0] ss:$8 sps:$4 sm:$0xff]  }
 0x3cc   : > { %2287 = vmatprep.subr.bf16.mxu1 %v8648_v31 }
 0x3cf   : > { %2288 = vmatpush1.bf16.msra.mxu1 %v8646_v11 }
 0x3d0   : > { %2289 = vmatprep.subr.bf16.mxu1 %v8651_v13 }
 0x3d3   : > { %2290 = vmatpush1.bf16.msra.mxu1 %v8649_v22 }
 0x3d4   : > { %2291 = vmatprep.subr.bf16.mxu1 %v8654_v23 }
 0x3d7   : > { %2292 = vmatpush1.bf16.msra.mxu1 %v8652_v21 }
 0x3d8   : > { %2293 = vmatprep.subr.bf16.mxu1 %v8657_v24  ;;  %v8717_v24 = vld [vmem:[%s11028_s2 + $0x304] ss:$8 sps:$4 sm:$0xff]  }
 0x3db   : > { %2294 = vmatpush1.bf16.msra.mxu1 %v8655_v27  ;;  %v8720_v27 = vld [vmem:[%s11028_s2 + $0x314] ss:$8 sps:$4 sm:$0xff]  }
 0x3dc   : > { %2295 = vmatprep.subr.bf16.mxu1 %v8660_v34  ;;  %v8724_v34 = vld [vmem:[%s11028_s2 + $0x330] ss:$8 sps:$4 sm:$0xff]  }
 0x3df   : > { %2296 = vmatpush1.bf16.msra.mxu1 %v8658_v39  ;;  %v8729_v39 = vld [vmem:[%s11028_s2 + $0x344] ss:$8 sps:$4 sm:$0xff]  }
 0x3e0   : > { %2297 = vmatprep.subr.bf16.mxu1 %v8663_v59  ;;  %v8727_v59 = vld [vmem:[%s11028_s2 + $0x340] ss:$8 sps:$4 sm:$0xff]  }
 0x3e3   : > { %2298 = vmatpush1.bf16.msra.mxu1 %v8661_v8  ;;  %v8732_v8 = vld [vmem:[%s11028_s2 + $0x354] ss:$8 sps:$4 sm:$0xff]  }
 0x3e4   : > { %2299 = vmatprep.subr.bf16.mxu1 %v8666_v9  ;;  %v8730_v9 = vld [vmem:[%s11028_s2 + $0x350] ss:$8 sps:$4 sm:$0xff]  }
 0x3e7   : > { %2300 = vmatpush1.bf16.msra.mxu1 %v8664_v30  ;;  %v8735_v30 = vld [vmem:[%s11028_s2 + $0x364] ss:$8 sps:$4 sm:$0xff]  }
 0x3e8   : > { %2314 = vmatprep.subr.bf16.mxu1 %v9783_v14 }
 0x3ea   : > { %2302 = vmatmul.mubr.bf16.vlgmr.msra.gmra.mrb[32].mxu1 %v1792_v44  ;;  %v8673_v44 = vld [vmem:[%s11028_s2 + $0x220] ss:$8 sps:$4 sm:$0xff]  }
 0x3eb   : > { %2315 = vmatpush1.bf16.msra.mxu1 %v9781_v1  ;;  %2346 = vmatprep.mubr.bf16.mxu1 %v9259_v2 }
 0x3ec   : > { %2316 = vmatprep.subr.bf16.mxu1 %v9789_v60 }
 0x3ef   : > { %2317 = vmatpush1.bf16.msra.mxu1 %v9787_v46 }
 0x3f0   : > { %2552 = vmatprep.subr.bf16.mxu1 %v8669_v18  ;;  %v8733_v18 = vld [vmem:[%s11028_s2 + $0x360] ss:$8 sps:$4 sm:$0xff]  }
 0x3f2   : > { %6628 = vmatmul.mubr.msk.bf16.vlgmr.msra.gmra.mrb[36].mxu1 %vm1746_vm5, %v9624_v20  ;;  %v8678_v20 = vld [vmem:[%s11028_s2 + $0x234] ss:$8 sps:$4 sm:$0xff]  }
 0x3f3   : > { %2553 = vmatpush1.bf16.msra.mxu1 %v8667_v25  ;;  %v8738_v25 = vld [vmem:[%s11028_s2 + $0x374] ss:$8 sps:$4 sm:$0xff]  }
 0x3f4   : > { %2554 = vmatprep.subr.bf16.mxu1 %v8672_v38  ;;  %v8736_v38 = vld [vmem:[%s11028_s2 + $0x370] ss:$8 sps:$4 sm:$0xff]  }
 0x3f7   : > { %2555 = vmatpush1.bf16.msra.mxu1 %v8670_v40  ;;  %v8741_v40 = vld [vmem:[%s11028_s2 + $0x384] ss:$8 sps:$4 sm:$0xff]  }
 0x3f8   : > { %2556 = vmatprep.subr.bf16.mxu1 %v8675_v41  ;;  %v8739_v41 = vld [vmem:[%s11028_s2 + $0x380] ss:$8 sps:$4 sm:$0xff]  }
 0x3fb   : > { %2557 = vmatpush1.bf16.msra.mxu1 %v8673_v44  ;;  %v8744_v44 = vld [vmem:[%s11028_s2 + $0x394] ss:$8 sps:$4 sm:$0xff]  }
 0x3fc   : > { %2558 = vmatprep.subr.bf16.mxu1 %v8678_v20  ;;  %v8742_v20 = vld [vmem:[%s11028_s2 + $0x390] ss:$8 sps:$4 sm:$0xff]  }
 0x3ff   : > { %2559 = vmatpush1.bf16.msra.mxu1 %v8676_v33  ;;  %v8747_v33 = vld [vmem:[%s11028_s2 + $0x3a4] ss:$8 sps:$4 sm:$0xff]  }
 0x400   : > { %2560 = vmatprep.subr.bf16.mxu1 %v8681_v28  ;;  %v8745_v28 = vld [vmem:[%s11028_s2 + $0x3a0] ss:$8 sps:$4 sm:$0xff]  }
 0x403   : > { %2561 = vmatpush1.bf16.msra.mxu1 %v8679_v29  ;;  %v8750_v29 = vld [vmem:[%s11028_s2 + $0x3b4] ss:$8 sps:$4 sm:$0xff]  }
 0x404   : > { %2562 = vmatprep.subr.bf16.mxu1 %v8684_v45  ;;  %v8748_v45 = vld [vmem:[%s11028_s2 + $0x3b0] ss:$8 sps:$4 sm:$0xff]  }
 0x407   : > { %2563 = vmatpush1.bf16.msra.mxu1 %v8682_v49  ;;  %v8753_v49 = vld [vmem:[%s11028_s2 + $0x3c4] ss:$8 sps:$4 sm:$0xff]  }
 0x408   : > { %2564 = vmatprep.subr.bf16.mxu1 %v8687_v51  ;;  %v8751_v51 = vld [vmem:[%s11028_s2 + $0x3c0] ss:$8 sps:$4 sm:$0xff]  }
 0x40b   : > { %2565 = vmatpush1.bf16.msra.mxu1 %v8685_v42  ;;  %v8756_v42 = vld [vmem:[%s11028_s2 + $0x3d4] ss:$8 sps:$4 sm:$0xff]  }
 0x40c   : > { %2566 = vmatprep.subr.bf16.mxu1 %v8690_v47  ;;  %v8754_v47 = vld [vmem:[%s11028_s2 + $0x3d0] ss:$8 sps:$4 sm:$0xff]  }
 0x40f   : > { %2567 = vmatpush1.bf16.msra.mxu1 %v8688_v0  ;;  %v8759_v0 = vld [vmem:[%s11028_s2 + $0x3e4] ss:$8 sps:$4 sm:$0xff]  }
 0x410   : > { %2568 = vmatprep.subr.bf16.mxu1 %v8693_v7  ;;  %v8757_v7 = vld [vmem:[%s11028_s2 + $0x3e0] ss:$8 sps:$4 sm:$0xff]  }
 0x413   : > { %2569 = vmatpush1.bf16.msra.mxu1 %v8691_v54  ;;  %v8762_v54 = vld [vmem:[%s11028_s2 + $0x3f4] ss:$8 sps:$4 sm:$0xff]  }
 0x414   : > { %2570 = vmatprep.subr.bf16.mxu1 %v8696_v50  ;;  %v8760_v50 = vld [vmem:[%s11028_s2 + $0x3f0] ss:$8 sps:$4 sm:$0xff]  }
 0x417   : > { %2571 = vmatpush1.bf16.msra.mxu1 %v8694_v55 }
 0x418   : > { %2572 = vmatprep.subr.bf16.mxu1 %v8699_v56  ;;  %v9261_v56 = vmov 1.0|1.0  }
 0x419   : > { %7842 = vmatprep.subr.msk.bf16.mxu0 %vm10215_vm6, %v9261_v56 }
 0x41a   : > { %7844 = vmatpush3.bf16.msk.msra.mxu0 %vm10215_vm6, %v9261_v56 }
 0x41b   : > { %2573 = vmatpush1.bf16.msra.mxu1 %v8697_v53  ;;  %7846 = vmatprep.subr.msk.bf16.mxu0 %vm10215_vm6, %v9261_v56 }
 0x41c   : > { %2574 = vmatprep.subr.bf16.mxu1 %v8702_v52 }
 0x41e   : > { %7848 = vmatpush3.bf16.msk.msra.mxu0 %vm10215_vm6, %v9261_v56 }
 0x41f   : > { %2575 = vmatpush1.bf16.msra.mxu1 %v8700_v58  ;;  %7850 = vmatprep.subr.msk.bf16.mxu0 %vm10215_vm6, %v9261_v56 }
 0x420   : > { %2576 = vmatprep.subr.bf16.mxu1 %v8705_v15 }
 0x422   : > { %7852 = vmatpush3.bf16.msk.msra.mxu0 %vm10215_vm6, %v9261_v56 }
 0x423   : > { %2577 = vmatpush1.bf16.msra.mxu1 %v8703_v26  ;;  %7854 = vmatprep.subr.msk.bf16.mxu0 %vm10215_vm6, %v9261_v56 }
 0x424   : > { %2578 = vmatprep.subr.bf16.mxu1 %v8708_v57 }
 0x426   : > { %7856 = vmatpush3.bf16.msk.msra.mxu0 %vm10215_vm6, %v9261_v56 }
 0x427   : > { %2579 = vmatpush1.bf16.msra.mxu1 %v8706_v62  ;;  %7858 = vmatprep.subr.msk.bf16.mxu0 %vm10215_vm6, %v9261_v56 }
 0x428   : > { %2580 = vmatprep.subr.bf16.mxu1 %v8711_v63 }
 0x42a   : > { %7860 = vmatpush3.bf16.msk.msra.mxu0 %vm10215_vm6, %v9261_v56 }
 0x42b   : > { %2581 = vmatpush1.bf16.msra.mxu1 %v8709_v17  ;;  %7862 = vmatprep.subr.msk.bf16.mxu0 %vm10215_vm6, %v9261_v56 }
 0x42c   : > { %2582 = vmatprep.subr.bf16.mxu1 %v8714_v12 }
 0x42e   : > { %7864 = vmatpush3.bf16.msk.msra.mxu0 %vm10215_vm6, %v9261_v56 }
 0x42f   : > { %2583 = vmatpush1.bf16.msra.mxu1 %v8712_v32  ;;  %7866 = vmatprep.subr.msk.bf16.mxu0 %vm10215_vm6, %v9261_v56 }
 0x430   : > { %2601 = vmatprep.subr.bf16.mxu1 %v9783_v14  ;;  %v8715_v14 = vld [vmem:[%s11028_s2 + $0x300] ss:$8 sps:$4 sm:$0xff]  }
 0x432   : > { %7868 = vmatpush3.bf16.msk.msra.mxu0 %vm10215_vm6, %v9261_v56 }
 0x433   : > { %7870 = vmatprep.subr.msk.bf16.mxu0 %vm10215_vm6, %v9261_v56 }
 0x436   : > { %7872 = vmatpush3.bf16.msk.msra.mxu0 %vm10215_vm6, %v9261_v56 }
 0x437   : > { %7874 = vmatprep.subr.msk.bf16.mxu0 %vm10215_vm6, %v9261_v56 }
 0x4c5   : > { %v2348_v31 = vpop.f32.mrb[36].mxu1 }
 0x4c6   : > { %v2350_v11 = vpop.f32.mrb[37].mxu1 }
 0x4c7   : > { %v2352_v13 = vpop.f32.mrb[38].mxu1 }
 0x4c8   : > { %v2357_v22 = vpack.c.bf16 %v2352_v13, %v2348_v31  ;;  %v2354_v23 = vpop.f32.mrb[39].mxu1 }
 0x4c9   : > { %v2358_v21 = vpack.c.bf16 %v2354_v23, %v2350_v11 }
 0x4cb   : > { %2584 = vmatprep.mubr.bf16.mxu1 %v2358_v21 }
 0x4cc   : > { %2585 = vmatmul.mubr.bf16.vlgmr.msra.gmra.mrb[32].mxu1 %v2357_v22 }
 0x4cd   : > { %2602 = vmatpush1.bf16.msra.mxu1 %v9781_v1  ;;  %2633 = vmatprep.mubr.bf16.mxu1 %v9259_v2  ;;  %v8718_v1 = vld [vmem:[%s11028_s2 + $0x310] ss:$8 sps:$4 sm:$0xff]  }
 0x4ce   : > { %2603 = vmatprep.subr.bf16.mxu1 %v9789_v60  ;;  %v8721_v60 = vld [vmem:[%s11028_s2 + $0x320] ss:$8 sps:$4 sm:$0xff]  }
 0x4d1   : > { %2604 = vmatpush1.bf16.msra.mxu1 %v9787_v46  ;;  %v8723_v46 = vld [vmem:[%s11028_s2 + $0x324] ss:$8 sps:$4 sm:$0xff]  }
 0x4d2   : > { %2839 = vmatprep.subr.bf16.mxu1 %v8717_v24 }
 0x4d4   : > { %6693 = vmatmul.mubr.msk.bf16.vlgmr.msra.gmra.mrb[40].mxu1 %vm1746_vm5, %v9654_v37  ;;  %v8726_v37 = vld [vmem:[%s11028_s2 + $0x334] ss:$8 sps:$4 sm:$0xff]  }
 0x4d5   : > { %2840 = vmatpush1.bf16.msra.mxu1 %v8715_v14 }
 0x4d6   : > { %2841 = vmatprep.subr.bf16.mxu1 %v8720_v27 }
 0x4d9   : > { %2842 = vmatpush1.bf16.msra.mxu1 %v8718_v1 }
 0x4da   : > { %2843 = vmatprep.subr.bf16.mxu1 %v8723_v46 }
 0x4dd   : > { %2844 = vmatpush1.bf16.msra.mxu1 %v8721_v60 }
 0x4de   : > { %2845 = vmatprep.subr.bf16.mxu1 %v8726_v37 }
 0x4e1   : > { %2846 = vmatpush1.bf16.msra.mxu1 %v8724_v34 }
 0x4e2   : > { %2847 = vmatprep.subr.bf16.mxu1 %v8729_v39 }
 0x4e5   : > { %2848 = vmatpush1.bf16.msra.mxu1 %v8727_v59 }
 0x4e6   : > { %2849 = vmatprep.subr.bf16.mxu1 %v8732_v8 }
 0x4e9   : > { %2850 = vmatpush1.bf16.msra.mxu1 %v8730_v9 }
 0x4ea   : > { %2851 = vmatprep.subr.bf16.mxu1 %v8735_v30 }
 0x4ed   : > { %2852 = vmatpush1.bf16.msra.mxu1 %v8733_v18 }
 0x4ee   : > { %2853 = vmatprep.subr.bf16.mxu1 %v8738_v25 }
 0x4f1   : > { %2854 = vmatpush1.bf16.msra.mxu1 %v8736_v38 }
 0x4f2   : > { %2855 = vmatprep.subr.bf16.mxu1 %v8741_v40 }
 0x4f5   : > { %2856 = vmatpush1.bf16.msra.mxu1 %v8739_v41 }
 0x4f6   : > { %2857 = vmatprep.subr.bf16.mxu1 %v8744_v44 }
 0x4f9   : > { %2858 = vmatpush1.bf16.msra.mxu1 %v8742_v20 }
 0x4fa   : > { %2859 = vmatprep.subr.bf16.mxu1 %v8747_v33 }
 0x4fd   : > { %2860 = vmatpush1.bf16.msra.mxu1 %v8745_v28 }
 0x4fe   : > { %2861 = vmatprep.subr.bf16.mxu1 %v8750_v29 }
 0x501   : > { %2862 = vmatpush1.bf16.msra.mxu1 %v8748_v45 }
 0x502   : > { %2863 = vmatprep.subr.bf16.mxu1 %v8753_v49 }
 0x505   : > { %2864 = vmatpush1.bf16.msra.mxu1 %v8751_v51 }
 0x506   : > { %2865 = vmatprep.subr.bf16.mxu1 %v8756_v42 }
 0x509   : > { %2866 = vmatpush1.bf16.msra.mxu1 %v8754_v47 }
 0x50a   : > { %2867 = vmatprep.subr.bf16.mxu1 %v8759_v0 }
 0x50d   : > { %2868 = vmatpush1.bf16.msra.mxu1 %v8757_v7 }
 0x50e   : > { %2869 = vmatprep.subr.bf16.mxu1 %v8762_v54 }
 0x511   : > { %2870 = vmatpush1.bf16.msra.mxu1 %v8760_v50 }
 0x512   : > { %7955 = vmatprep.subr.msk.bf16.mxu1 %vm10272_vm1, %v9495_v16 }
 0x5a7   : > { %v2635_v5 = vpop.f32.mrb[40].mxu1 }
 0x5a8   : > { %v2637_v53 = vpop.f32.mrb[41].mxu1 }
 0x5a9   : > { %v2639_v52 = vpop.f32.mrb[42].mxu1 }
 0x5aa   : > { %v2644_v58 = vpack.c.bf16 %v2639_v52, %v2635_v5  ;;  %v2641_v15 = vpop.f32.mrb[43].mxu1 }
 0x5ab   : > { %v2645_v26 = vpack.c.bf16 %v2641_v15, %v2637_v53 }
 0x5ad   : > { %2871 = vmatprep.mubr.bf16.mxu1 %v2645_v26  ;;  %v3070_v26 = vld [vmem:[%s11032_s6] sm:$0x1] }
 0x5ae   : > { %2872 = vmatmul.mubr.bf16.vlgmr.msra.gmra.mrb[32].mxu1 %v2644_v58 }
 0x5af   : > { %7958 = vmatpush3.bf16.xpose.msk.msra.mxu1 %vm10272_vm1, %v9495_v16 }
 0x5b0   : > { %7961 = vmatprep.subr.msk.bf16.mxu1 %vm10272_vm1, %v9495_v16 }
 0x5b7   : > { %7964 = vmatpush3.bf16.xpose.msk.msra.mxu1 %vm10272_vm1, %v9495_v16 }
 0x5b8   : > { %7967 = vmatprep.subr.msk.bf16.mxu1 %vm10272_vm1, %v9495_v16 }
 0x5bf   : > { %7970 = vmatpush3.bf16.xpose.msk.msra.mxu1 %vm10272_vm1, %v9495_v16 }
 0x5c0   : > { %7973 = vmatprep.subr.msk.bf16.mxu1 %vm10272_vm1, %v9495_v16 }
 0x5c7   : > { %7976 = vmatpush3.bf16.xpose.msk.msra.mxu1 %vm10272_vm1, %v9495_v16 }
 0x5c8   : > { %7979 = vmatprep.subr.msk.bf16.mxu1 %vm10272_vm1, %v9495_v16 }
 0x5cf   : > { %7982 = vmatpush3.bf16.xpose.msk.msra.mxu1 %vm10272_vm1, %v9495_v16 }
 0x5d0   : > { %7985 = vmatprep.subr.msk.bf16.mxu1 %vm10272_vm1, %v9495_v16 }
 0x5d7   : > { %7988 = vmatpush3.bf16.xpose.msk.msra.mxu1 %vm10272_vm1, %v9495_v16 }
 0x5d8   : > { %7991 = vmatprep.subr.msk.bf16.mxu1 %vm10272_vm1, %v9495_v16 }
 0x5df   : > { %7994 = vmatpush3.bf16.xpose.msk.msra.mxu1 %vm10272_vm1, %v9495_v16 }
 0x5e0   : > { %7997 = vmatprep.subr.msk.bf16.mxu1 %vm10272_vm1, %v9495_v16 }
 0x5e7   : > { %8000 = vmatpush3.bf16.xpose.msk.msra.mxu1 %vm10272_vm1, %v9495_v16 }
 0x681   : > { %v10324_v62 = vpop.f32.mrb[32].mxu1 }
 0x682   : > { %v10326_v63 = vpop.f32.mrb[33].mxu1  ;;  %v2906_v12 = vmul.f32 %v10324_v62, %v10324_v62 }
 0x683   : > { %v10328_v17 = vpop.f32.mrb[34].mxu1  ;;  %v2907_v13 = vmul.f32 %v10326_v63, %v10326_v63 }
 0x684   : > { %v2892_v32 = vadd.f32 %v10328_v17, %v10324_v62  ;;  %v2908_v31 = vmul.f32 %v10328_v17, %v10328_v17  ;;  %v10336_v11 = vpop.f32.mrb[35].mxu1 }
 0x685   : > { %v2899_v22 = vadd.f32 %v10336_v11, %v10326_v63  ;;  %v2909_v23 = vmul.f32 %v10336_v11, %v10336_v11 }
 0x686   : > { %v2893_v21 = vrot.slane %v2892_v32, 4  ;;  %v2910_v24 = vadd.f32 %v2908_v31, %v2906_v12 }
 0x687   : > { %v2900_v14 = vrot.slane %v2899_v22, 4  ;;  %v2917_v27 = vadd.f32 %v2909_v23, %v2907_v13 }
 0x688   : > { %v2894_v1 = vadd.f32 %v2893_v21, %v2892_v32  ;;  %v2911_v20 = vrot.slane %v2910_v24, 4  ;;  %v3074_v32 = vld [vmem:[%s11033_s7] sm:$0x1] }
 0x689   : > { %v2901_v46 = vadd.f32 %v2900_v14, %v2899_v22  ;;  %v2918_v60 = vrot.slane %v2917_v27, 4 }
 0x68a   : > { %v2895_v37 = vrot.slane %v2894_v1, 2  ;;  %v2912_v33 = vadd.f32 %v2911_v20, %v2910_v24  ;;  %v10463_v20 = vpack.c.bf16 %v9572_v48, %v9572_v48  ;;  %v10479_v48 = vpack.c.bf16 %v9560_v43, %v9560_v43  ;;  %v8775_v43 = vld [vmem:[#allocation5 + $0x140] ss:$8 sps:$4 sm:$0xff]  }
 0x68b   : > { %v2902_v34 = vrot.slane %v2901_v46, 2  ;;  %v2919_v39 = vadd.f32 %v2918_v60, %v2917_v27 }
 0x68c   : > { %v2896_v59 = vadd.f32 %v2895_v37, %v2894_v1  ;;  %v2913_v28 = vrot.slane %v2912_v33, 2 }
 0x68d   : > { %v2903_v8 = vadd.f32 %v2902_v34, %v2901_v46  ;;  %v2920_v9 = vrot.slane %v2919_v39, 2 }
 0x68e   : > { %v2897_v30 = vrot.slane %v2896_v59, 1  ;;  %v2914_v29 = vadd.f32 %v2913_v28, %v2912_v33  ;;  %v8765_v33 = vld [vmem:[#allocation5 + $0x104] ss:$8 sps:$4 sm:$0xff]   ;;  %v8763_v28 = vld [vmem:[#allocation5 + $0x100] ss:$8 sps:$4 sm:$0xff]  }
 0x68f   : > { %v2904_v18 = vrot.slane %v2903_v8, 1  ;;  %v2921_v25 = vadd.f32 %v2920_v9, %v2919_v39 }
 0x690   : > { %v2898_v41 = vadd.f32 %v2897_v30, %v2896_v59  ;;  %v2915_v45 = vrot.slane %v2914_v29, 1 }
 0x691   : > { %v2905_v38 = vadd.f32 %v2904_v18, %v2903_v8  ;;  %v2922_v40 = vrot.slane %v2921_v25, 1 }
 0x692   : > { %v2916_v49 = vadd.f32 %v2915_v45, %v2914_v29  ;;  %v8768_v29 = vld [vmem:[#allocation5 + $0x114] ss:$8 sps:$4 sm:$0xff]   ;;  %v8766_v45 = vld [vmem:[#allocation5 + $0x110] ss:$8 sps:$4 sm:$0xff]  }
 0x693   : > { %2988 = vmatprep.mubr.f32.mxu0 %v2905_v38  ;;  %v2923_v44 = vadd.f32 %v2922_v40, %v2921_v25 }
 0x694   : > { %2989 = vmatmul.mubr.f32.vlgmr.msra.gmra.mrb[16].mxu0 %v2898_v41 }
 0x695   : > { %7876 = vmatpush3.bf16.msk.msra.mxu0 %vm10215_vm6, %v9261_v56  ;;  %3060 = vmatprep.mubr.f32.mxu0 %v2923_v44 }
 0x696   : > { %7878 = vmatprep.subr.msk.bf16.mxu0 %vm10215_vm6, %v9261_v56 }
 0x699   : > { %7880 = vmatpush3.bf16.msk.msra.mxu0 %vm10215_vm6, %v9261_v56 }
 0x69a   : > { %7882 = vmatprep.subr.msk.bf16.mxu0 %vm10215_vm6, %v9261_v56 }
 0x69d   : > { %7884 = vmatpush3.bf16.msk.msra.mxu0 %vm10215_vm6, %v9261_v56 }
 0x69e   : > { %7886 = vmatprep.subr.msk.bf16.mxu0 %vm10215_vm6, %v9261_v56 }
 0x6a1   : > { %7888 = vmatpush3.bf16.msk.msra.mxu0 %vm10215_vm6, %v9261_v56 }
 0x6a2   : > { %7890 = vmatprep.subr.msk.bf16.mxu0 %vm10215_vm6, %v9261_v56 }
 0x6a5   : > { %7892 = vmatpush3.bf16.msk.msra.mxu0 %vm10215_vm6, %v9261_v56 }
 0x6a6   : > { %7894 = vmatprep.subr.msk.bf16.mxu0 %vm10215_vm6, %v9261_v56 }
 0x6a9   : > { %7896 = vmatpush3.bf16.msk.msra.mxu0 %vm10215_vm6, %v9261_v56 }
 0x6aa   : > { %7898 = vmatprep.subr.msk.bf16.mxu0 %vm10215_vm6, %v9261_v56 }
 0x6ad   : > { %7900 = vmatpush3.bf16.msk.msra.mxu0 %vm10215_vm6, %v9261_v56 }
 0x6ae   : > { %7902 = vmatprep.subr.msk.bf16.mxu0 %vm10215_vm6, %v9261_v56 }
 0x6b1   : > { %7904 = vmatpush3.bf16.msk.msra.mxu0 %vm10215_vm6, %v9261_v56 }
 0x6b2   : > { %7907 = vmatprep.subr.msk.bf16.mxu0 %vm10272_vm1, %v9495_v16 }
 0x6b4   : > { %3061 = vmatmul.mubr.f32.vlgmr.msra.gmra.mrb[18].mxu0 %v2916_v49  ;;  %v8771_v49 = vld [vmem:[#allocation5 + $0x124] ss:$8 sps:$4 sm:$0xff]  }
 0x6ba   : > { %7910 = vmatpush3.bf16.xpose.msk.msra.mxu0 %vm10272_vm1, %v9495_v16 }
 0x6bb   : > { %7913 = vmatprep.subr.msk.bf16.mxu0 %vm10272_vm1, %v9495_v16 }
 0x6c2   : > { %7916 = vmatpush3.bf16.xpose.msk.msra.mxu0 %vm10272_vm1, %v9495_v16 }
 0x6c3   : > { %7919 = vmatprep.subr.msk.bf16.mxu0 %vm10272_vm1, %v9495_v16 }
 0x6ca   : > { %7922 = vmatpush3.bf16.xpose.msk.msra.mxu0 %vm10272_vm1, %v9495_v16 }
 0x6cb   : > { %7925 = vmatprep.subr.msk.bf16.mxu0 %vm10272_vm1, %v9495_v16 }
 0x6d2   : > { %7928 = vmatpush3.bf16.xpose.msk.msra.mxu0 %vm10272_vm1, %v9495_v16 }
 0x6d3   : > { %7931 = vmatprep.subr.msk.bf16.mxu0 %vm10272_vm1, %v9495_v16 }
 0x6da   : > { %7934 = vmatpush3.bf16.xpose.msk.msra.mxu0 %vm10272_vm1, %v9495_v16 }
 0x6db   : > { %7937 = vmatprep.subr.msk.bf16.mxu0 %vm10272_vm1, %v9495_v16 }
 0x6e2   : > { %7940 = vmatpush3.bf16.xpose.msk.msra.mxu0 %vm10272_vm1, %v9495_v16 }
 0x6e3   : > { %7943 = vmatprep.subr.msk.bf16.mxu0 %vm10272_vm1, %v9495_v16 }
 0x6ea   : > { %7946 = vmatpush3.bf16.xpose.msk.msra.mxu0 %vm10272_vm1, %v9495_v16 }
 0x6eb   : > { %7949 = vmatprep.subr.msk.bf16.mxu0 %vm10272_vm1, %v9495_v16 }
 0x6f2   : > { %7952 = vmatpush3.bf16.xpose.msk.msra.mxu0 %vm10272_vm1, %v9495_v16 }
 0x767   : > { %v7459_v51 = vpop.f32.mrb[16].mxu0 }
 0x768   : > { %v7460_v42 = vpop.f32.mrb[17].mxu0 }
 0x769   : > { %v7461_v47 = vadd.f32 %v7460_v42, %v7459_v51  ;;  %v8769_v51 = vld [vmem:[#allocation5 + $0x120] ss:$8 sps:$4 sm:$0xff]   ;;  %v8774_v42 = vld [vmem:[#allocation5 + $0x134] ss:$8 sps:$4 sm:$0xff]  }
 0x76b   : > { %v2995_v0 = vmul.f32 0.00390625, %v7461_v47  ;;  %v8772_v47 = vld [vmem:[#allocation5 + $0x130] ss:$8 sps:$4 sm:$0xff]  }
 0x76d   : > { %v3067_v5 = vmul.f32 %v2995_v0, %v2995_v0 }
 0x787   : > { %v7494_v7 = vpop.f32.mrb[18].mxu0 }
 0x788   : > { %v7495_v54 = vpop.f32.mrb[19].mxu0 }
 0x789   : > { %v7496_v50 = vadd.f32 %v7495_v54, %v7494_v7  ;;  %v8780_v7 = vld [vmem:[#allocation5 + $0x154] ss:$8 sps:$4 sm:$0xff]   ;;  %v8778_v54 = vld [vmem:[#allocation5 + $0x150] ss:$8 sps:$4 sm:$0xff]  }
 0x78b   : > { %v3066_v53 = vmul.f32 0.00390625, %v7496_v50  ;;  %v8783_v50 = vld [vmem:[#allocation5 + $0x164] ss:$8 sps:$4 sm:$0xff]  }
 0x78d   : > { %v3068_v52 = vsub.f32 %v3066_v53, %v3067_v5  ;;  %v8781_v5 = vld [vmem:[#allocation5 + $0x160] ss:$8 sps:$4 sm:$0xff]   ;;  %v8786_v53 = vld [vmem:[#allocation5 + $0x174] ss:$8 sps:$4 sm:$0xff]  }
 0x78f   : > { %v3069_v58 = vmax.f32 %v3068_v52, 0.0  ;;  %v8784_v52 = vld [vmem:[#allocation5 + $0x170] ss:$8 sps:$4 sm:$0xff]  }
 0x791   : > { %v3071_v15 = vadd.f32 1e-05, %v3069_v58  ;;  %v8789_v58 = vld [vmem:[#allocation5 + $0x184] ss:$8 sps:$4 sm:$0xff]  }
 0x793   : > { %9148 = vrsqrt.f32 %v3071_v15  ;;  %v8787_v15 = vld [vmem:[#allocation5 + $0x180] ss:$8 sps:$4 sm:$0xff]  }
 0x79d   : > { %v9149_v12 = vpop.eup %9148 }
 0x79e   : > { %v3073_v57 = vmul.f32 %v9149_v12, %v3070_v26  ;;  %v8792_v26 = vld [vmem:[#allocation5 + $0x194] ss:$8 sps:$4 sm:$0xff]   ;;  %v8790_v12 = vld [vmem:[#allocation5 + $0x190] ss:$8 sps:$4 sm:$0xff]  }
 0x7a0   : > { %7529 = vmatprep.mubr.msk.f32.mxu0 %vm3077_vm0, %v3073_v57  ;;  %v3075_v31 = vmul.f32 %v3073_v57, %v2995_v0  ;;  %v8777_v0 = vld [vmem:[#allocation5 + $0x144] ss:$8 sps:$4 sm:$0xff]  }
 0x7a1   : > { %7530 = vmatmul.mubr.msk.f32.vlgmr.msra.gmra.mrb[20].mxu0 %vm3077_vm0, %v3073_v57  ;;  %v8795_v57 = vld [vmem:[#allocation5 + $0x1a4] ss:$8 sps:$4 sm:$0xff]  }
 0x7a2   : > { %v3076_v13 = vsub.f32 %v3074_v32, %v3075_v31  ;;  %3306 = vmatprep.mubr.bf16.mxu0 %v9259_v2  ;;  %v8793_v32 = vld [vmem:[#allocation5 + $0x1a0] ss:$8 sps:$4 sm:$0xff]   ;;  %v8798_v31 = vld [vmem:[#allocation5 + $0x1b4] ss:$8 sps:$4 sm:$0xff]  }
 0x7a4   : > { %7563 = vmatprep.mubr.msk.f32.mxu1 %vm3077_vm0, %v3076_v13 }
 0x7a5   : > { %7564 = vmatmul.mubr.msk.f32.vlgmr.msra.gmra.mrb[44].mxu1 %vm3077_vm0, %v3076_v13  ;;  %v8796_v13 = vld [vmem:[#allocation5 + $0x1b0] ss:$8 sps:$4 sm:$0xff]  }
 0x7a6   : > { %4150 = vmatprep.mubr.bf16.mxu1 %v9259_v2 }
 0x874   : > { %v3153_v22 = vpop.f32.mrb[20].mxu0 }
 0x875   : > { %v3235_v23 = vrot.slane %v3153_v22, %v9774_v61  ;;  %v3155_v21 = vpop.f32.mrb[21].mxu0  ;;  %v8801_v22 = vld [vmem:[#allocation5 + $0x1c4] ss:$8 sps:$4 sm:$0xff]  }
 0x876   : > { %v3239_v24 = vrot.slane %v3155_v21, %v9774_v61  ;;  %v8804_v21 = vld [vmem:[#allocation5 + $0x1d4] ss:$8 sps:$4 sm:$0xff]  }
 0x877   : > { %v3240_v14 = vmul.f32 %v3235_v23, %v10324_v62  ;;  %v3242_v27 = vmul.f32 %v3235_v23, %v10328_v17  ;;  %v8799_v23 = vld [vmem:[#allocation5 + $0x1c0] ss:$8 sps:$4 sm:$0xff]  }
 0x878   : > { %v3241_v1 = vmul.f32 %v3239_v24, %v10326_v63  ;;  %v3243_v46 = vmul.f32 %v3239_v24, %v10336_v11  ;;  %v3227_v60 = vpop.f32.mrb[44].mxu1  ;;  %v8802_v24 = vld [vmem:[#allocation5 + $0x1d0] ss:$8 sps:$4 sm:$0xff]  }
 0x879   : > { %v3247_v37 = vrot.slane %v3227_v60, %v9774_v61  ;;  %v3229_v34 = vpop.f32.mrb[45].mxu1  ;;  %v8813_v60 = vld [vmem:[#allocation5 + $0x4] ss:$8 sps:$4 sm:$0xff]  }
 0x87a   : > { %v3251_v39 = vrot.slane %v3229_v34, %v9774_v61 }
 0x87b   : > { %v3252_v59 = vadd.f32 %v3247_v37, %v3240_v14  ;;  %v3254_v8 = vadd.f32 %v3247_v37, %v3242_v27  ;;  %v8807_v14 = vld [vmem:[#allocation5 + $0x1e4] ss:$8 sps:$4 sm:$0xff]   ;;  %v8805_v27 = vld [vmem:[#allocation5 + $0x1e0] ss:$8 sps:$4 sm:$0xff]   ;;  %v10485_v37 = vpack.c.bf16 %v9647_v19, %v9647_v19 }
 0x87c   : > { %v3253_v9 = vadd.f32 %v3251_v39, %v3241_v1  ;;  %v3255_v30 = vadd.f32 %v3251_v39, %v3243_v46  ;;  %v8810_v1 = vld [vmem:[#allocation5 + $0x1f4] ss:$8 sps:$4 sm:$0xff]   ;;  %v8808_v46 = vld [vmem:[#allocation5 + $0x1f0] ss:$8 sps:$4 sm:$0xff]  }
 0x87d   : > { %vm3256_vm7 = vcmp.gt.f32.partialorder %v3252_v59, 0.0  ;;  %vm3258_vm8 = vcmp.gt.f32.partialorder %v3254_v8, 0.0  ;;  %v3260_v18 = vmul.f32 0.2, %v3252_v59  ;;  %v3262_v62 = vmul.f32 0.2, %v3254_v8 }
 0x87e   : > { %vm3257_vm10 = vcmp.gt.f32.partialorder %v3253_v9, 0.0  ;;  %vm3259_vm11 = vcmp.gt.f32.partialorder %v3255_v30, 0.0  ;;  %v3261_v17 = vmul.f32 0.2, %v3253_v9  ;;  %v3263_v63 = vmul.f32 0.2, %v3255_v30 }
 0x87f   : > { %v3264_v25 = vsel %vm3256_vm7, %v3252_v59, %v3260_v18  ;;  %v3266_v11 = vsel %vm3258_vm8, %v3254_v8, %v3262_v62 }
 0x880   : > { %v3265_v38 = vsel %vm3257_vm10, %v3253_v9, %v3261_v17  ;;  %v3267_v40 = vsel %vm3259_vm11, %v3255_v30, %v3263_v63  ;;  %v10457_v41 = vpack.c.bf16 %v3266_v11, %v3264_v25  ;;  %v8811_v17 = vld [vmem:[#allocation5] ss:$8 sps:$4 sm:$0xff]   ;;  %v8816_v11 = vld [vmem:[#allocation5 + $0x14] ss:$8 sps:$4 sm:$0xff]   ;;  %vm6309_vm10 = vcmask 0  }
 0x881   : > { %v10459_v44 = vpack.c.bf16 %v3267_v40, %v3265_v38  ;;  %v8814_v40 = vld [vmem:[#allocation5 + $0x10] ss:$8 sps:$4 sm:$0xff]  }
 0x883   : > { %3274 = vmatprep.subr.bf16.mxu0 %v10459_v44  ;;  %4118 = vmatprep.subr.bf16.mxu1 %v10459_v44 }
 0x884   : > { %3275 = vmatpush1.bf16.msra.mxu0 %v10457_v41  ;;  %4119 = vmatpush1.bf16.msra.mxu1 %v10457_v41 }
 0x885   : > { %3353 = vmatprep.subr.bf16.mxu0 %v10459_v44  ;;  %8034 = vmatprep.subr.msk.bf16.mxu1 %vm10215_vm6, %v9261_v56 }
 0x887   : > { %6890 = vmatmul.mubr.msk.bf16.vlgmr.msra.gmra.mrb[24].mxu0 %vm3077_vm0, %v10463_v20  ;;  %6989 = vmatmul.mubr.msk.bf16.vlgmr.msra.gmra.mrb[48].mxu1 %vm3077_vm0, %v10485_v37 }
 0x888   : > { %3354 = vmatpush1.bf16.msra.mxu0 %v10457_v41  ;;  %3385 = vmatprep.mubr.bf16.mxu0 %v9259_v2 }
 0x889   : > { %3589 = vmatprep.subr.bf16.mxu0 %v8765_v33  ;;  %8036 = vmatpush3.bf16.msk.msra.mxu1 %vm10215_vm6, %v9261_v56  ;;  %v8819_v33 = vld [vmem:[#allocation5 + $0x24] ss:$8 sps:$4 sm:$0xff]  }
 0x88a   : > { %8038 = vmatprep.subr.msk.bf16.mxu1 %vm9535_vm4, %v9261_v56 }
 0x88d   : > { %8040 = vmatpush3.bf16.msk.msra.mxu1 %vm9535_vm4, %v9261_v56 }
 0x88e   : > { %8042 = vmatprep.subr.msk.bf16.mxu1 %vm10215_vm6, %v9261_v56 }
 0x88f   : > { %6891 = vmatmul.mubr.msk.bf16.vlgmr.msra.gmra.mrb[28].mxu0 %vm3077_vm0, %v10479_v48 }
 0x890   : > { %3590 = vmatpush1.bf16.msra.mxu0 %v8763_v28  ;;  %v8817_v28 = vld [vmem:[#allocation5 + $0x20] ss:$8 sps:$4 sm:$0xff]  }
 0x891   : > { %3591 = vmatprep.subr.bf16.mxu0 %v8768_v29  ;;  %8044 = vmatpush3.bf16.msk.msra.mxu1 %vm10215_vm6, %v9261_v56  ;;  %v8822_v29 = vld [vmem:[#allocation5 + $0x34] ss:$8 sps:$4 sm:$0xff]  }
 0x892   : > { %8046 = vmatprep.subr.msk.bf16.mxu1 %vm9535_vm4, %v9261_v56 }
 0x894   : > { %3592 = vmatpush1.bf16.msra.mxu0 %v8766_v45  ;;  %v8820_v45 = vld [vmem:[#allocation5 + $0x30] ss:$8 sps:$4 sm:$0xff]  }
 0x895   : > { %3593 = vmatprep.subr.bf16.mxu0 %v8771_v49  ;;  %8048 = vmatpush3.bf16.msk.msra.mxu1 %vm9535_vm4, %v9261_v56  ;;  %v8825_v49 = vld [vmem:[#allocation5 + $0x44] ss:$8 sps:$4 sm:$0xff]  }
 0x896   : > { %8050 = vmatprep.subr.msk.bf16.mxu1 %vm10215_vm6, %v9261_v56 }
 0x898   : > { %3594 = vmatpush1.bf16.msra.mxu0 %v8769_v51  ;;  %v8823_v51 = vld [vmem:[#allocation5 + $0x40] ss:$8 sps:$4 sm:$0xff]  }
 0x899   : > { %3595 = vmatprep.subr.bf16.mxu0 %v8774_v42  ;;  %8052 = vmatpush3.bf16.msk.msra.mxu1 %vm10215_vm6, %v9261_v56  ;;  %v8828_v42 = vld [vmem:[#allocation5 + $0x54] ss:$8 sps:$4 sm:$0xff]  }
 0x89a   : > { %8054 = vmatprep.subr.msk.bf16.mxu1 %vm9535_vm4, %v9261_v56 }
 0x89c   : > { %3596 = vmatpush1.bf16.msra.mxu0 %v8772_v47  ;;  %v8826_v47 = vld [vmem:[#allocation5 + $0x50] ss:$8 sps:$4 sm:$0xff]  }
 0x89d   : > { %3597 = vmatprep.subr.bf16.mxu0 %v8777_v0  ;;  %8056 = vmatpush3.bf16.msk.msra.mxu1 %vm9535_vm4, %v9261_v56  ;;  %v8831_v0 = vld [vmem:[#allocation5 + $0x64] ss:$8 sps:$4 sm:$0xff]  }
 0x89e   : > { %8058 = vmatprep.subr.msk.bf16.mxu1 %vm10215_vm6, %v9261_v56 }
 0x8a0   : > { %3598 = vmatpush1.bf16.msra.mxu0 %v8775_v43  ;;  %v8829_v43 = vld [vmem:[#allocation5 + $0x60] ss:$8 sps:$4 sm:$0xff]  }
 0x8a1   : > { %3599 = vmatprep.subr.bf16.mxu0 %v8780_v7  ;;  %8060 = vmatpush3.bf16.msk.msra.mxu1 %vm10215_vm6, %v9261_v56  ;;  %v8834_v7 = vld [vmem:[#allocation5 + $0x74] ss:$8 sps:$4 sm:$0xff]  }
 0x8a2   : > { %8062 = vmatprep.subr.msk.bf16.mxu1 %vm9535_vm4, %v9261_v56 }
 0x8a4   : > { %3600 = vmatpush1.bf16.msra.mxu0 %v8778_v54  ;;  %v8832_v54 = vld [vmem:[#allocation5 + $0x70] ss:$8 sps:$4 sm:$0xff]  }
 0x8a5   : > { %3601 = vmatprep.subr.bf16.mxu0 %v8783_v50  ;;  %8064 = vmatpush3.bf16.msk.msra.mxu1 %vm9535_vm4, %v9261_v56  ;;  %v8837_v50 = vld [vmem:[#allocation5 + $0x84] ss:$8 sps:$4 sm:$0xff]  }
 0x8a6   : > { %8067 = vmatprep.subr.msk.bf16.mxu1 %vm10533_vm12, %v9495_v16 }
 0x8a8   : > { %3602 = vmatpush1.bf16.msra.mxu0 %v8781_v5  ;;  %v8835_v5 = vld [vmem:[#allocation5 + $0x80] ss:$8 sps:$4 sm:$0xff]  }
 0x8a9   : > { %3603 = vmatprep.subr.bf16.mxu0 %v8786_v53  ;;  %v8840_v53 = vld [vmem:[#allocation5 + $0x94] ss:$8 sps:$4 sm:$0xff]  }
 0x8ac   : > { %3604 = vmatpush1.bf16.msra.mxu0 %v8784_v52  ;;  %v8838_v52 = vld [vmem:[#allocation5 + $0x90] ss:$8 sps:$4 sm:$0xff]  }
 0x8ad   : > { %3605 = vmatprep.subr.bf16.mxu0 %v8789_v58  ;;  %v8843_v58 = vld [vmem:[#allocation5 + $0xa4] ss:$8 sps:$4 sm:$0xff]  }
 0x8b0   : > { %3606 = vmatpush1.bf16.msra.mxu0 %v8787_v15  ;;  %v8841_v15 = vld [vmem:[#allocation5 + $0xa0] ss:$8 sps:$4 sm:$0xff]  }
 0x8b1   : > { %3607 = vmatprep.subr.bf16.mxu0 %v8792_v26  ;;  %v8846_v26 = vld [vmem:[#allocation5 + $0xb4] ss:$8 sps:$4 sm:$0xff]  }
 0x8b4   : > { %3608 = vmatpush1.bf16.msra.mxu0 %v8790_v12  ;;  %v8844_v12 = vld [vmem:[#allocation5 + $0xb0] ss:$8 sps:$4 sm:$0xff]  }
 0x8b5   : > { %3609 = vmatprep.subr.bf16.mxu0 %v8795_v57  ;;  %v8849_v57 = vld [vmem:[#allocation5 + $0xc4] ss:$8 sps:$4 sm:$0xff]  }
 0x8b8   : > { %3610 = vmatpush1.bf16.msra.mxu0 %v8793_v32  ;;  %v8847_v32 = vld [vmem:[#allocation5 + $0xc0] ss:$8 sps:$4 sm:$0xff]  }
 0x8b9   : > { %3611 = vmatprep.subr.bf16.mxu0 %v8798_v31  ;;  %v8852_v31 = vld [vmem:[#allocation5 + $0xd4] ss:$8 sps:$4 sm:$0xff]  }
 0x8bc   : > { %3612 = vmatpush1.bf16.msra.mxu0 %v8796_v13  ;;  %v8850_v13 = vld [vmem:[#allocation5 + $0xd0] ss:$8 sps:$4 sm:$0xff]  }
 0x8bd   : > { %3613 = vmatprep.subr.bf16.mxu0 %v8801_v22  ;;  %v8855_v22 = vld [vmem:[#allocation5 + $0xe4] ss:$8 sps:$4 sm:$0xff]  }
 0x8c0   : > { %3614 = vmatpush1.bf16.msra.mxu0 %v8799_v23  ;;  %v8853_v23 = vld [vmem:[#allocation5 + $0xe0] ss:$8 sps:$4 sm:$0xff]  }
 0x8c1   : > { %3615 = vmatprep.subr.bf16.mxu0 %v8804_v21  ;;  %v8858_v21 = vld [vmem:[#allocation5 + $0xf4] ss:$8 sps:$4 sm:$0xff]  }
 0x8c4   : > { %3616 = vmatpush1.bf16.msra.mxu0 %v8802_v24  ;;  %v8856_v24 = vld [vmem:[#allocation5 + $0xf0] ss:$8 sps:$4 sm:$0xff]  }
 0x8c5   : > { %3617 = vmatprep.subr.bf16.mxu0 %v8807_v14 }
 0x8c8   : > { %3618 = vmatpush1.bf16.msra.mxu0 %v8805_v27  ;;  %v8861_v27 = vld [vmem:[#allocation5 + $0x204] ss:$8 sps:$4 sm:$0xff]  }
 0x8c9   : > { %3619 = vmatprep.subr.bf16.mxu0 %v8810_v1  ;;  %v10552_v1 = vpack.c.bf16 %v9617_v10, %v9617_v10  ;;  %v8871_v10 = vld [vmem:[#allocation5 + $0x240] ss:$8 sps:$4 sm:$0xff]  }
 0x8cc   : > { %3620 = vmatpush1.bf16.msra.mxu0 %v8808_v46  ;;  %v8859_v46 = vld [vmem:[#allocation5 + $0x200] ss:$8 sps:$4 sm:$0xff]  }
 0x8cd   : > { %3790 = vmatprep.subr.bf16.mxu0 %v8813_v60  ;;  %v8864_v60 = vld [vmem:[#allocation5 + $0x214] ss:$8 sps:$4 sm:$0xff]  }
 0x95a   : > { %v10543_v34 = vpop.f32.mrb[24].mxu0 }
 0x95b   : > { %v3310_v39 = vpop.f32.mrb[25].mxu0  ;;  %v3315_v14 = vpack.c.bf16 %v10543_v34, %v10543_v34  ;;  %v8862_v34 = vld [vmem:[#allocation5 + $0x210] ss:$8 sps:$4 sm:$0xff]  }
 0x95c   : > { %v3312_v59 = vpop.f32.mrb[26].mxu0  ;;  %v3316_v38 = vpack.c.bf16 %v3310_v39, %v3310_v39  ;;  %v8865_v39 = vld [vmem:[#allocation5 + $0x220] ss:$8 sps:$4 sm:$0xff]  }
 0x95d   : > { %v3313_v8 = vpop.f32.mrb[27].mxu0  ;;  %v8868_v59 = vld [vmem:[#allocation5 + $0x230] ss:$8 sps:$4 sm:$0xff]  }
 0x95e   : > { %v8873_v8 = vld [vmem:[#allocation5 + $0x244] ss:$8 sps:$4 sm:$0xff]  }
 0x962   : > { %v3387_v9 = vpop.f32.mrb[28].mxu0 }
 0x963   : > { %v3389_v30 = vpop.f32.mrb[29].mxu0  ;;  %v3394_v63 = vpack.c.bf16 %v3387_v9, %v3387_v9  ;;  %v8876_v9 = vld [vmem:[#allocation5 + $0x254] ss:$8 sps:$4 sm:$0xff]  }
 0x964   : > { %v3395_v18 = vpack.c.bf16 %v3389_v30, %v3389_v30  ;;  %v3391_v62 = vpop.f32.mrb[30].mxu0  ;;  %v8874_v30 = vld [vmem:[#allocation5 + $0x250] ss:$8 sps:$4 sm:$0xff]  }
 0x965   : > { %v3392_v25 = vpop.f32.mrb[31].mxu0  ;;  %v8877_v62 = vld [vmem:[#allocation5 + $0x260] ss:$8 sps:$4 sm:$0xff]  }
 0x966   : > { %3621 = vmatprep.mubr.bf16.mxu0 %v3395_v18  ;;  %v8879_v18 = vld [vmem:[#allocation5 + $0x264] ss:$8 sps:$4 sm:$0xff]  }
 0x967   : > { %3622 = vmatmul.mubr.bf16.vlgmr.msra.gmra.mrb[32].mxu0 %v3394_v63  ;;  %v8880_v63 = vld [vmem:[#allocation5 + $0x270] ss:$8 sps:$4 sm:$0xff]   ;;  %v8885_v25 = vld [vmem:[#allocation5 + $0x284] ss:$8 sps:$4 sm:$0xff]  }
 0x968   : > { %3791 = vmatpush1.bf16.msra.mxu0 %v8811_v17  ;;  %3822 = vmatprep.mubr.bf16.mxu0 %v3316_v38  ;;  %v8882_v17 = vld [vmem:[#allocation5 + $0x274] ss:$8 sps:$4 sm:$0xff]  }
 0x969   : > { %3792 = vmatprep.subr.bf16.mxu0 %v8816_v11  ;;  %v8883_v11 = vld [vmem:[#allocation5 + $0x280] ss:$8 sps:$4 sm:$0xff]   ;;  %v8888_v38 = vld [vmem:[#allocation5 + $0x294] ss:$8 sps:$4 sm:$0xff]  }
 0x96c   : > { %3793 = vmatpush1.bf16.msra.mxu0 %v8814_v40  ;;  %v8886_v40 = vld [vmem:[#allocation5 + $0x290] ss:$8 sps:$4 sm:$0xff]  }
 0x96d   : > { %3794 = vmatprep.subr.bf16.mxu0 %v8819_v33  ;;  %v8891_v33 = vld [vmem:[#allocation5 + $0x2a4] ss:$8 sps:$4 sm:$0xff]  }
 0x970   : > { %3795 = vmatpush1.bf16.msra.mxu0 %v8817_v28  ;;  %v8889_v28 = vld [vmem:[#allocation5 + $0x2a0] ss:$8 sps:$4 sm:$0xff]  }
 0x971   : > { %3796 = vmatprep.subr.bf16.mxu0 %v8822_v29  ;;  %v8894_v29 = vld [vmem:[#allocation5 + $0x2b4] ss:$8 sps:$4 sm:$0xff]  }
 0x974   : > { %3797 = vmatpush1.bf16.msra.mxu0 %v8820_v45  ;;  %v8892_v45 = vld [vmem:[#allocation5 + $0x2b0] ss:$8 sps:$4 sm:$0xff]  }
 0x975   : > { %3798 = vmatprep.subr.bf16.mxu0 %v8825_v49  ;;  %v8897_v49 = vld [vmem:[#allocation5 + $0x2c4] ss:$8 sps:$4 sm:$0xff]  }
 0x978   : > { %3799 = vmatpush1.bf16.msra.mxu0 %v8823_v51  ;;  %v8895_v51 = vld [vmem:[#allocation5 + $0x2c0] ss:$8 sps:$4 sm:$0xff]  }
 0x979   : > { %3800 = vmatprep.subr.bf16.mxu0 %v8828_v42  ;;  %v8900_v42 = vld [vmem:[#allocation5 + $0x2d4] ss:$8 sps:$4 sm:$0xff]  }
 0x97c   : > { %3801 = vmatpush1.bf16.msra.mxu0 %v8826_v47  ;;  %v8898_v47 = vld [vmem:[#allocation5 + $0x2d0] ss:$8 sps:$4 sm:$0xff]  }
 0x97d   : > { %3802 = vmatprep.subr.bf16.mxu0 %v8831_v0  ;;  %v8903_v0 = vld [vmem:[#allocation5 + $0x2e4] ss:$8 sps:$4 sm:$0xff]  }
 0x980   : > { %3803 = vmatpush1.bf16.msra.mxu0 %v8829_v43  ;;  %v8901_v43 = vld [vmem:[#allocation5 + $0x2e0] ss:$8 sps:$4 sm:$0xff]  }
 0x981   : > { %3804 = vmatprep.subr.bf16.mxu0 %v8834_v7  ;;  %v8906_v7 = vld [vmem:[#allocation5 + $0x2f4] ss:$8 sps:$4 sm:$0xff]  }
 0x984   : > { %3805 = vmatpush1.bf16.msra.mxu0 %v8832_v54  ;;  %v8904_v54 = vld [vmem:[#allocation5 + $0x2f0] ss:$8 sps:$4 sm:$0xff]  }
 0x985   : > { %3806 = vmatprep.subr.bf16.mxu0 %v8837_v50  ;;  %v8909_v50 = vld [vmem:[#allocation5 + $0x304] ss:$8 sps:$4 sm:$0xff]  }
 0x988   : > { %3807 = vmatpush1.bf16.msra.mxu0 %v8835_v5  ;;  %v10556_v5 = vpop.f32.mrb[48].mxu1 }
 0x989   : > { %3808 = vmatprep.subr.bf16.mxu0 %v8840_v53  ;;  %v4154_v53 = vpop.f32.mrb[49].mxu1 }
 0x98c   : > { %3809 = vmatpush1.bf16.msra.mxu0 %v8838_v52  ;;  %v4156_v52 = vpop.f32.mrb[50].mxu1 }
 0x98d   : > { %3810 = vmatprep.subr.bf16.mxu0 %v8843_v58  ;;  %v4157_v58 = vpop.f32.mrb[51].mxu1 }
 0x990   : > { %3811 = vmatpush1.bf16.msra.mxu0 %v8841_v15 }
 0x991   : > { %3812 = vmatprep.subr.bf16.mxu0 %v8846_v26 }
 0x994   : > { %3813 = vmatpush1.bf16.msra.mxu0 %v8844_v12 }
 0x995   : > { %3814 = vmatprep.subr.bf16.mxu0 %v8849_v57 }
 0x998   : > { %3815 = vmatpush1.bf16.msra.mxu0 %v8847_v32  ;;  %v8907_v32 = vld [vmem:[#allocation5 + $0x300] ss:$8 sps:$4 sm:$0xff]  }
 0x999   : > { %3816 = vmatprep.subr.bf16.mxu0 %v8852_v31  ;;  %v4160_v31 = vpack.c.bf16 %v4154_v53, %v4154_v53 }
 0x99c   : > { %3817 = vmatpush1.bf16.msra.mxu0 %v8850_v13 }
 0x99d   : > { %3818 = vmatprep.subr.bf16.mxu0 %v8855_v22 }
 0x9a0   : > { %3819 = vmatpush1.bf16.msra.mxu0 %v8853_v23  ;;  %v8912_v23 = vld [vmem:[#allocation5 + $0x314] ss:$8 sps:$4 sm:$0xff]  }
 0x9a1   : > { %3820 = vmatprep.subr.bf16.mxu0 %v8858_v21  ;;  %v8910_v21 = vld [vmem:[#allocation5 + $0x310] ss:$8 sps:$4 sm:$0xff]  }
 0x9a4   : > { %3821 = vmatpush1.bf16.msra.mxu0 %v8856_v24  ;;  %v8915_v24 = vld [vmem:[#allocation5 + $0x324] ss:$8 sps:$4 sm:$0xff]  }
 0x9a5   : > { %3835 = vmatprep.subr.bf16.mxu0 %v10459_v44  ;;  %v8867_v44 = vld [vmem:[#allocation5 + $0x224] ss:$8 sps:$4 sm:$0xff]  }
 0x9a7   : > { %3823 = vmatmul.mubr.bf16.vlgmr.msra.gmra.mrb[32].mxu0 %v3315_v14  ;;  %v8913_v14 = vld [vmem:[#allocation5 + $0x320] ss:$8 sps:$4 sm:$0xff]  }
 0x9a8   : > { %3836 = vmatpush1.bf16.msra.mxu0 %v10457_v41  ;;  %3867 = vmatprep.mubr.bf16.mxu0 %v9259_v2  ;;  %v8870_v41 = vld [vmem:[#allocation5 + $0x234] ss:$8 sps:$4 sm:$0xff]  }
 0x9a9   : > { %4071 = vmatprep.subr.bf16.mxu0 %v8861_v27  ;;  %v8918_v27 = vld [vmem:[#allocation5 + $0x334] ss:$8 sps:$4 sm:$0xff]  }
 0x9af   : > { %6956 = vmatmul.mubr.msk.bf16.vlgmr.msra.gmra.mrb[36].mxu0 %vm3077_vm0, %v10552_v1 }
 0x9b0   : > { %4072 = vmatpush1.bf16.msra.mxu0 %v8859_v46  ;;  %v8916_v46 = vld [vmem:[#allocation5 + $0x330] ss:$8 sps:$4 sm:$0xff]  }
 0x9b1   : > { %4073 = vmatprep.subr.bf16.mxu0 %v8864_v60  ;;  %v8921_v60 = vld [vmem:[#allocation5 + $0x344] ss:$8 sps:$4 sm:$0xff]  }
 0x9b4   : > { %4074 = vmatpush1.bf16.msra.mxu0 %v8862_v34  ;;  %v8919_v34 = vld [vmem:[#allocation5 + $0x340] ss:$8 sps:$4 sm:$0xff]  }
 0x9b5   : > { %4075 = vmatprep.subr.bf16.mxu0 %v8867_v44  ;;  %v8924_v44 = vld [vmem:[#allocation5 + $0x354] ss:$8 sps:$4 sm:$0xff]  }
 0x9b8   : > { %4076 = vmatpush1.bf16.msra.mxu0 %v8865_v39  ;;  %v8922_v39 = vld [vmem:[#allocation5 + $0x350] ss:$8 sps:$4 sm:$0xff]  }
 0x9b9   : > { %4077 = vmatprep.subr.bf16.mxu0 %v8870_v41  ;;  %v8927_v41 = vld [vmem:[#allocation5 + $0x364] ss:$8 sps:$4 sm:$0xff]  }
 0x9bc   : > { %4078 = vmatpush1.bf16.msra.mxu0 %v8868_v59  ;;  %v8925_v59 = vld [vmem:[#allocation5 + $0x360] ss:$8 sps:$4 sm:$0xff]  }
 0x9bd   : > { %4079 = vmatprep.subr.bf16.mxu0 %v8873_v8  ;;  %v8930_v8 = vld [vmem:[#allocation5 + $0x374] ss:$8 sps:$4 sm:$0xff]  }
 0x9c0   : > { %4080 = vmatpush1.bf16.msra.mxu0 %v8871_v10  ;;  %v8928_v10 = vld [vmem:[#allocation5 + $0x370] ss:$8 sps:$4 sm:$0xff]  }
 0x9c1   : > { %4081 = vmatprep.subr.bf16.mxu0 %v8876_v9  ;;  %v8933_v9 = vld [vmem:[#allocation5 + $0x384] ss:$8 sps:$4 sm:$0xff]  }
 0x9c4   : > { %4082 = vmatpush1.bf16.msra.mxu0 %v8874_v30  ;;  %v8931_v30 = vld [vmem:[#allocation5 + $0x380] ss:$8 sps:$4 sm:$0xff]  }
 0x9c5   : > { %4083 = vmatprep.subr.bf16.mxu0 %v8879_v18  ;;  %v8936_v18 = vld [vmem:[#allocation5 + $0x394] ss:$8 sps:$4 sm:$0xff]  }
 0x9c8   : > { %4084 = vmatpush1.bf16.msra.mxu0 %v8877_v62  ;;  %v8934_v62 = vld [vmem:[#allocation5 + $0x390] ss:$8 sps:$4 sm:$0xff]  }
 0x9c9   : > { %4085 = vmatprep.subr.bf16.mxu0 %v8882_v17  ;;  %v8939_v17 = vld [vmem:[#allocation5 + $0x3a4] ss:$8 sps:$4 sm:$0xff]  }
 0x9cc   : > { %4086 = vmatpush1.bf16.msra.mxu0 %v8880_v63  ;;  %v8937_v63 = vld [vmem:[#allocation5 + $0x3a0] ss:$8 sps:$4 sm:$0xff]  }
 0x9cd   : > { %4087 = vmatprep.subr.bf16.mxu0 %v8885_v25  ;;  %v8942_v25 = vld [vmem:[#allocation5 + $0x3b4] ss:$8 sps:$4 sm:$0xff]  }
 0x9d0   : > { %4088 = vmatpush1.bf16.msra.mxu0 %v8883_v11  ;;  %v8940_v11 = vld [vmem:[#allocation5 + $0x3b0] ss:$8 sps:$4 sm:$0xff]  }
 0x9d1   : > { %4089 = vmatprep.subr.bf16.mxu0 %v8888_v38  ;;  %v8945_v38 = vld [vmem:[#allocation5 + $0x3c4] ss:$8 sps:$4 sm:$0xff]  }
 0x9d4   : > { %4090 = vmatpush1.bf16.msra.mxu0 %v8886_v40  ;;  %v8943_v40 = vld [vmem:[#allocation5 + $0x3c0] ss:$8 sps:$4 sm:$0xff]  }
 0x9d5   : > { %4091 = vmatprep.subr.bf16.mxu0 %v8891_v33  ;;  %v8948_v33 = vld [vmem:[#allocation5 + $0x3d4] ss:$8 sps:$4 sm:$0xff]  }
 0x9d8   : > { %4092 = vmatpush1.bf16.msra.mxu0 %v8889_v28  ;;  %v8946_v28 = vld [vmem:[#allocation5 + $0x3d0] ss:$8 sps:$4 sm:$0xff]  }
 0x9d9   : > { %4093 = vmatprep.subr.bf16.mxu0 %v8894_v29  ;;  %v8951_v29 = vld [vmem:[#allocation5 + $0x3e4] ss:$8 sps:$4 sm:$0xff]  }
 0x9dc   : > { %4094 = vmatpush1.bf16.msra.mxu0 %v8892_v45  ;;  %v8949_v45 = vld [vmem:[#allocation5 + $0x3e0] ss:$8 sps:$4 sm:$0xff]  }
 0x9dd   : > { %4095 = vmatprep.subr.bf16.mxu0 %v8897_v49  ;;  %v8954_v49 = vld [vmem:[#allocation5 + $0x3f4] ss:$8 sps:$4 sm:$0xff]  }
 0x9e0   : > { %4096 = vmatpush1.bf16.msra.mxu0 %v8895_v51  ;;  %v8952_v51 = vld [vmem:[#allocation5 + $0x3f0] ss:$8 sps:$4 sm:$0xff]  }
 0x9e1   : > { %4097 = vmatprep.subr.bf16.mxu0 %v8900_v42  ;;  %v4159_v42 = vpack.c.bf16 %v10556_v5, %v10556_v5 }
 0x9e4   : > { %4098 = vmatpush1.bf16.msra.mxu0 %v8898_v47 }
 0x9e5   : > { %4099 = vmatprep.subr.bf16.mxu0 %v8903_v0 }
 0x9e8   : > { %4100 = vmatpush1.bf16.msra.mxu0 %v8901_v43 }
 0x9e9   : > { %4101 = vmatprep.subr.bf16.mxu0 %v8906_v7 }
 0x9ec   : > { %4102 = vmatpush1.bf16.msra.mxu0 %v8904_v54 }
 0x9ed   : > { %4354 = vmatprep.subr.bf16.mxu0 %v8909_v50 }
 0xa82   : > { %v3869_v15 = vpop.f32.mrb[36].mxu0 }
 0xa83   : > { %v3871_v26 = vpop.f32.mrb[37].mxu0  ;;  %v3876_v13 = vpack.c.bf16 %v3869_v15, %v3869_v15 }
 0xa84   : > { %v3877_v12 = vpack.c.bf16 %v3871_v26, %v3871_v26  ;;  %v3873_v57 = vpop.f32.mrb[38].mxu0 }
 0xa85   : > { %v3874_v22 = vpop.f32.mrb[39].mxu0 }
 0xa86   : > { %4103 = vmatprep.mubr.bf16.mxu0 %v3877_v12 }
 0xa87   : > { %4104 = vmatmul.mubr.bf16.vlgmr.msra.gmra.mrb[32].mxu0 %v3876_v13 }
 0xa88   : > { %4355 = vmatpush1.bf16.msra.mxu0 %v8907_v32  ;;  %4386 = vmatprep.mubr.bf16.mxu0 %v4160_v31 }
 0xa89   : > { %4356 = vmatprep.subr.bf16.mxu0 %v8912_v23 }
 0xa8c   : > { %4357 = vmatpush1.bf16.msra.mxu0 %v8910_v21 }
 0xa8d   : > { %4358 = vmatprep.subr.bf16.mxu0 %v8915_v24 }
 0xa90   : > { %4359 = vmatpush1.bf16.msra.mxu0 %v8913_v14 }
 0xa91   : > { %4360 = vmatprep.subr.bf16.mxu0 %v8918_v27 }
 0xa94   : > { %4361 = vmatpush1.bf16.msra.mxu0 %v8916_v46 }
 0xa95   : > { %4362 = vmatprep.subr.bf16.mxu0 %v8921_v60 }
 0xa98   : > { %4363 = vmatpush1.bf16.msra.mxu0 %v8919_v34 }
 0xa99   : > { %4364 = vmatprep.subr.bf16.mxu0 %v8924_v44 }
 0xa9c   : > { %4365 = vmatpush1.bf16.msra.mxu0 %v8922_v39 }
 0xa9d   : > { %4366 = vmatprep.subr.bf16.mxu0 %v8927_v41 }
 0xaa0   : > { %4367 = vmatpush1.bf16.msra.mxu0 %v8925_v59 }
 0xaa1   : > { %4368 = vmatprep.subr.bf16.mxu0 %v8930_v8 }
 0xaa4   : > { %4369 = vmatpush1.bf16.msra.mxu0 %v8928_v10 }
 0xaa5   : > { %4370 = vmatprep.subr.bf16.mxu0 %v8933_v9 }
 0xaa8   : > { %4371 = vmatpush1.bf16.msra.mxu0 %v8931_v30 }
 0xaa9   : > { %4372 = vmatprep.subr.bf16.mxu0 %v8936_v18 }
 0xaac   : > { %4373 = vmatpush1.bf16.msra.mxu0 %v8934_v62 }
 0xaad   : > { %4374 = vmatprep.subr.bf16.mxu0 %v8939_v17 }
 0xab0   : > { %4375 = vmatpush1.bf16.msra.mxu0 %v8937_v63 }
 0xab1   : > { %4376 = vmatprep.subr.bf16.mxu0 %v8942_v25 }
 0xab4   : > { %4377 = vmatpush1.bf16.msra.mxu0 %v8940_v11 }
 0xab5   : > { %4378 = vmatprep.subr.bf16.mxu0 %v8945_v38 }
 0xab8   : > { %4379 = vmatpush1.bf16.msra.mxu0 %v8943_v40 }
 0xab9   : > { %4380 = vmatprep.subr.bf16.mxu0 %v8948_v33  ;;  %v4575_v33 = vld [vmem:[%s11034_s8] sm:$0x1] }
 0xabc   : > { %4381 = vmatpush1.bf16.msra.mxu0 %v8946_v28 }
 0xabd   : > { %4382 = vmatprep.subr.bf16.mxu0 %v8951_v29 }
 0xac0   : > { %4383 = vmatpush1.bf16.msra.mxu0 %v8949_v45  ;;  %v4579_v45 = vld [vmem:[%s11035_s9] sm:$0x1] }
 0xac1   : > { %4384 = vmatprep.subr.bf16.mxu0 %v8954_v49 }
 0xac4   : > { %4385 = vmatpush1.bf16.msra.mxu0 %v8952_v51 }
 0xac5   : > { %8002 = vmatprep.subr.msk.bf16.mxu0 %vm10215_vm6, %v9261_v56 }
 0xac7   : > { %4387 = vmatmul.mubr.bf16.vlgmr.msra.gmra.mrb[32].mxu0 %v4159_v42 }
 0xac8   : > { %8004 = vmatpush3.bf16.msk.msra.mxu0 %vm10215_vm6, %v9261_v56 }
 0xac9   : > { %8006 = vmatprep.subr.msk.bf16.mxu0 %vm9535_vm4, %v9261_v56 }
 0xacc   : > { %8008 = vmatpush3.bf16.msk.msra.mxu0 %vm9535_vm4, %v9261_v56 }
 0xacd   : > { %8010 = vmatprep.subr.msk.bf16.mxu0 %vm10215_vm6, %v9261_v56 }
 0xad0   : > { %8012 = vmatpush3.bf16.msk.msra.mxu0 %vm10215_vm6, %v9261_v56 }
 0xad1   : > { %8014 = vmatprep.subr.msk.bf16.mxu0 %vm9535_vm4, %v9261_v56 }
 0xad4   : > { %8016 = vmatpush3.bf16.msk.msra.mxu0 %vm9535_vm4, %v9261_v56 }
 0xad5   : > { %8018 = vmatprep.subr.msk.bf16.mxu0 %vm10215_vm6, %v9261_v56 }
 0xad8   : > { %8020 = vmatpush3.bf16.msk.msra.mxu0 %vm10215_vm6, %v9261_v56 }
 0xad9   : > { %8022 = vmatprep.subr.msk.bf16.mxu0 %vm9535_vm4, %v9261_v56 }
 0xadc   : > { %8024 = vmatpush3.bf16.msk.msra.mxu0 %vm9535_vm4, %v9261_v56 }
 0xadd   : > { %8026 = vmatprep.subr.msk.bf16.mxu0 %vm10215_vm6, %v9261_v56 }
 0xae0   : > { %8028 = vmatpush3.bf16.msk.msra.mxu0 %vm10215_vm6, %v9261_v56 }
 0xae1   : > { %8030 = vmatprep.subr.msk.bf16.mxu0 %vm9535_vm4, %v9261_v56 }
 0xae4   : > { %8032 = vmatpush3.bf16.msk.msra.mxu0 %vm9535_vm4, %v9261_v56 }
 0xb9a   : > { %v10608_v47 = vpop.f32.mrb[32].mxu0 }
 0xb9b   : > { %v4403_v0 = vrot.slane %v10608_v47, 4  ;;  %v4415_v43 = vmul.f32 %v10608_v47, %v10608_v47  ;;  %v10613_v7 = vpop.f32.mrb[33].mxu0 }
 0xb9c   : > { %v4409_v54 = vrot.slane %v10613_v7, 4  ;;  %v4416_v50 = vmul.f32 %v10613_v7, %v10613_v7  ;;  %v4392_v5 = vpop.f32.mrb[34].mxu0 }
 0xb9d   : > { %v4404_v53 = vadd.f32 %v4403_v0, %v10608_v47  ;;  %v4417_v52 = vrot.slane %v4415_v43, 4  ;;  %v4393_v58 = vpop.f32.mrb[35].mxu0 }
 0xb9e   : > { %v4410_v15 = vadd.f32 %v4409_v54, %v10613_v7  ;;  %v4423_v26 = vrot.slane %v4416_v50, 4 }
 0xb9f   : > { %v4405_v12 = vrot.slane %v4404_v53, 2  ;;  %v4418_v57 = vadd.f32 %v4417_v52, %v4415_v43 }
 0xba0   : > { %v4411_v32 = vrot.slane %v4410_v15, 2  ;;  %v4424_v31 = vadd.f32 %v4423_v26, %v4416_v50 }
 0xba1   : > { %v4406_v13 = vadd.f32 %v4405_v12, %v4404_v53  ;;  %v4419_v22 = vrot.slane %v4418_v57, 2 }
 0xba2   : > { %v4412_v23 = vadd.f32 %v4411_v32, %v4410_v15  ;;  %v4425_v21 = vrot.slane %v4424_v31, 2 }
 0xba3   : > { %v4407_v24 = vrot.slane %v4406_v13, 1  ;;  %v4420_v14 = vadd.f32 %v4419_v22, %v4418_v57 }
 0xba4   : > { %v4413_v27 = vrot.slane %v4412_v23, 1  ;;  %v4426_v46 = vadd.f32 %v4425_v21, %v4424_v31  ;;  %v8960_v21 = vld [vmem:[#allocation7 + $0x114] ss:$8 sps:$4 sm:$0xff]  }
 0xba5   : > { %v4421_v60 = vrot.slane %v4420_v14, 1  ;;  %v4408_v39 = vadd.f32 %v4407_v24, %v4406_v13  ;;  %v8969_v24 = vld [vmem:[#allocation7 + $0x144] ss:$8 sps:$4 sm:$0xff]  }
 0xba6   : > { %v4414_v34 = vadd.f32 %v4413_v27, %v4412_v23  ;;  %v4427_v44 = vrot.slane %v4426_v46, 1  ;;  %v8955_v23 = vld [vmem:[#allocation7 + $0x100] ss:$8 sps:$4 sm:$0xff]   ;;  %v8972_v27 = vld [vmem:[#allocation7 + $0x154] ss:$8 sps:$4 sm:$0xff]  }
 0xba7   : > { %v4422_v59 = vadd.f32 %v4421_v60, %v4420_v14  ;;  %v8967_v14 = vld [vmem:[#allocation7 + $0x140] ss:$8 sps:$4 sm:$0xff]   ;;  %v8975_v60 = vld [vmem:[#allocation7 + $0x164] ss:$8 sps:$4 sm:$0xff]  }
 0xba8   : > { %4493 = vmatprep.mubr.f32.mxu0 %v4414_v34  ;;  %v4428_v41 = vadd.f32 %v4427_v44, %v4426_v46  ;;  %v8970_v46 = vld [vmem:[#allocation7 + $0x150] ss:$8 sps:$4 sm:$0xff]   ;;  %v8973_v34 = vld [vmem:[#allocation7 + $0x160] ss:$8 sps:$4 sm:$0xff]   ;;  %v8978_v44 = vld [vmem:[#allocation7 + $0x174] ss:$8 sps:$4 sm:$0xff]  }
 0xba9   : > { %4494 = vmatmul.mubr.f32.vlgmr.msra.gmra.mrb[22].mxu0 %v4408_v39  ;;  %v8976_v39 = vld [vmem:[#allocation7 + $0x170] ss:$8 sps:$4 sm:$0xff]  }
 0xbaa   : > { %4565 = vmatprep.mubr.f32.mxu1 %v4428_v41  ;;  %5367 = vmatprep.mubr.bf16.mxu0 %v9259_v2  ;;  %v8981_v41 = vld [vmem:[#allocation7 + $0x184] ss:$8 sps:$4 sm:$0xff]  }
 0xbab   : > { %4566 = vmatmul.mubr.f32.vlgmr.msra.gmra.mrb[46].mxu1 %v4422_v59  ;;  %v8979_v59 = vld [vmem:[#allocation7 + $0x180] ss:$8 sps:$4 sm:$0xff]  }
 0xbac   : > { %8070 = vmatpush3.bf16.xpose.msk.msra.mxu1 %vm10533_vm12, %v9495_v16 }
 0xbad   : > { %8073 = vmatprep.subr.msk.bf16.mxu1 %vm10533_vm12, %v9539_v36 }
 0xbb4   : > { %8076 = vmatpush3.bf16.xpose.msk.msra.mxu1 %vm10533_vm12, %v9539_v36 }
 0xbb5   : > { %8079 = vmatprep.subr.msk.bf16.mxu1 %vm10533_vm12, %v9495_v16 }
 0xbbc   : > { %8082 = vmatpush3.bf16.xpose.msk.msra.mxu1 %vm10533_vm12, %v9495_v16 }
 0xbbd   : > { %8085 = vmatprep.subr.msk.bf16.mxu1 %vm10533_vm12, %v9539_v36 }
 0xbc4   : > { %8088 = vmatpush3.bf16.xpose.msk.msra.mxu1 %vm10533_vm12, %v9539_v36 }
 0xbc5   : > { %8091 = vmatprep.subr.msk.bf16.mxu1 %vm10533_vm12, %v9495_v16 }
 0xbcc   : > { %8094 = vmatpush3.bf16.xpose.msk.msra.mxu1 %vm10533_vm12, %v9495_v16 }
 0xbcd   : > { %8097 = vmatprep.subr.msk.bf16.mxu1 %vm10533_vm12, %v9539_v36 }
 0xbd4   : > { %8100 = vmatpush3.bf16.xpose.msk.msra.mxu1 %vm10533_vm12, %v9539_v36 }
 0xbd5   : > { %8103 = vmatprep.subr.msk.bf16.mxu1 %vm10533_vm12, %v9495_v16 }
 0xbdc   : > { %8106 = vmatpush3.bf16.xpose.msk.msra.mxu1 %vm10533_vm12, %v9495_v16 }
 0xbdd   : > { %8109 = vmatprep.subr.msk.bf16.mxu1 %vm10533_vm12, %v9539_v36 }
 0xbe4   : > { %8112 = vmatpush3.bf16.xpose.msk.msra.mxu1 %vm10533_vm12, %v9539_v36 }
 0xbe5   : > { %8115 = vmatprep.subr.msk.bf16.mxu1 %vm10533_vm12, %v9495_v16 }
 0xc7c   : > { %v7597_v8 = vpop.f32.mrb[22].mxu0 }
 0xc7d   : > { %v7598_v10 = vpop.f32.mrb[23].mxu0 }
 0xc7e   : > { %v7599_v9 = vadd.f32 %v7598_v10, %v7597_v8  ;;  %v7632_v30 = vpop.f32.mrb[46].mxu1  ;;  %v8984_v8 = vld [vmem:[#allocation7 + $0x194] ss:$8 sps:$4 sm:$0xff]   ;;  %v8982_v10 = vld [vmem:[#allocation7 + $0x190] ss:$8 sps:$4 sm:$0xff]  }
 0xc7f   : > { %v7633_v18 = vpop.f32.mrb[47].mxu1 }
 0xc80   : > { %v4500_v62 = vmul.f32 0.015625, %v7599_v9  ;;  %v7634_v17 = vadd.f32 %v7633_v18, %v7632_v30  ;;  %v8987_v9 = vld [vmem:[#allocation7 + $0x1a4] ss:$8 sps:$4 sm:$0xff]   ;;  %v8985_v30 = vld [vmem:[#allocation7 + $0x1a0] ss:$8 sps:$4 sm:$0xff]  }
 0xc81   : > { %v8990_v18 = vld [vmem:[#allocation7 + $0x1b4] ss:$8 sps:$4 sm:$0xff]  }
 0xc82   : > { %v4572_v63 = vmul.f32 %v4500_v62, %v4500_v62  ;;  %v4571_v25 = vmul.f32 0.015625, %v7634_v17  ;;  %v8993_v17 = vld [vmem:[#allocation7 + $0x1c4] ss:$8 sps:$4 sm:$0xff]  }
 0xc84   : > { %v4573_v11 = vsub.f32 %v4571_v25, %v4572_v63  ;;  %v8991_v63 = vld [vmem:[#allocation7 + $0x1c0] ss:$8 sps:$4 sm:$0xff]   ;;  %v8996_v25 = vld [vmem:[#allocation7 + $0x1d4] ss:$8 sps:$4 sm:$0xff]  }
 0xc86   : > { %v4574_v38 = vmax.f32 %v4573_v11, 0.0  ;;  %v8994_v11 = vld [vmem:[#allocation7 + $0x1d0] ss:$8 sps:$4 sm:$0xff]  }
 0xc88   : > { %v4576_v40 = vadd.f32 1e-05, %v4574_v38  ;;  %v8997_v38 = vld [vmem:[#allocation7 + $0x1e0] ss:$8 sps:$4 sm:$0xff]  }
 0xc8a   : > { %9150 = vrsqrt.f32 %v4576_v40  ;;  %v8999_v40 = vld [vmem:[#allocation7 + $0x1e4] ss:$8 sps:$4 sm:$0xff]  }
 0xc94   : > { %v9151_v28 = vpop.eup %9150 }
 0xc95   : > { %v4578_v29 = vmul.f32 %v9151_v28, %v4575_v33  ;;  %v9002_v33 = vld [vmem:[#allocation7 + $0x1f4] ss:$8 sps:$4 sm:$0xff]   ;;  %v9000_v28 = vld [vmem:[#allocation7 + $0x1f0] ss:$8 sps:$4 sm:$0xff]  }
 0xc97   : > { %7667 = vmatprep.mubr.msk.f32.mxu1 %vm1746_vm5, %v4578_v29  ;;  %v4580_v49 = vmul.f32 %v4578_v29, %v4500_v62  ;;  %v8988_v62 = vld [vmem:[#allocation7 + $0x1b0] ss:$8 sps:$4 sm:$0xff]  }
 0xc98   : > { %7668 = vmatmul.mubr.msk.f32.vlgmr.msra.gmra.mrb[52].mxu1 %vm1746_vm5, %v4578_v29  ;;  %v9005_v29 = vld [vmem:[#allocation7 + $0x4] ss:$8 sps:$4 sm:$0xff]  }
 0xc99   : > { %8118 = vmatpush3.bf16.xpose.msk.msra.mxu1 %vm10533_vm12, %v9495_v16  ;;  %v4581_v51 = vsub.f32 %v4579_v45, %v4580_v49 }
 0xc9a   : > { %8121 = vmatprep.subr.msk.bf16.mxu1 %vm10533_vm12, %v9539_v36 }
 0xc9b   : > { %7701 = vmatprep.mubr.msk.f32.mxu1 %vm1746_vm5, %v4581_v51 }
 0xca1   : > { %8124 = vmatpush3.bf16.xpose.msk.msra.mxu1 %vm10533_vm12, %v9539_v36 }
 0xca2   : > { %8127 = vmatprep.subr.msk.bf16.mxu1 %vm10533_vm12, %v9495_v16 }
 0xca9   : > { %8130 = vmatpush3.bf16.xpose.msk.msra.mxu1 %vm10533_vm12, %v9495_v16 }
 0xcaa   : > { %8133 = vmatprep.subr.msk.bf16.mxu1 %vm10533_vm12, %v9539_v36 }
 0xcb1   : > { %8136 = vmatpush3.bf16.xpose.msk.msra.mxu1 %vm10533_vm12, %v9539_v36 }
 0xcb2   : > { %8139 = vmatprep.subr.msk.bf16.mxu1 %vm10533_vm12, %v9495_v16 }
 0xcb9   : > { %8142 = vmatpush3.bf16.xpose.msk.msra.mxu1 %vm10533_vm12, %v9495_v16 }
 0xcba   : > { %8145 = vmatprep.subr.msk.bf16.mxu1 %vm10533_vm12, %v9539_v36 }
 0xcc1   : > { %8148 = vmatpush3.bf16.xpose.msk.msra.mxu1 %vm10533_vm12, %v9539_v36 }
 0xcc2   : > { %8151 = vmatprep.subr.msk.bf16.mxu1 %vm10533_vm12, %v9495_v16 }
 0xcc9   : > { %8154 = vmatpush3.bf16.xpose.msk.msra.mxu1 %vm10533_vm12, %v9495_v16 }
 0xcca   : > { %8157 = vmatprep.subr.msk.bf16.mxu1 %vm10533_vm12, %v9539_v36 }
 0xcd1   : > { %8160 = vmatpush3.bf16.xpose.msk.msra.mxu1 %vm10533_vm12, %v9539_v36 }
 0xcd8   : > { %7702 = vmatmul.mubr.msk.f32.vlgmr.msra.gmra.mrb[54].mxu1 %vm1746_vm5, %v4581_v51 }
 0xcd9   : > { %4810 = vmatprep.mubr.bf16.mxu1 %v9259_v2 }
 0xd6b   : > { %v4661_v42 = vpop.f32.mrb[52].mxu1 }
 0xd6c   : > { %v4743_v0 = vrot.slane %v4661_v42, %v9774_v61  ;;  %v4663_v43 = vpop.f32.mrb[53].mxu1 }
 0xd6d   : > { %v4747_v54 = vrot.slane %v4663_v43, %v9774_v61 }
 0xd6e   : > { %v4748_v50 = vmul.f32 %v4743_v0, %v10608_v47 }
 0xd6f   : > { %v4749_v5 = vmul.f32 %v4747_v54, %v10613_v7  ;;  %v8957_v7 = vld [vmem:[#allocation7 + $0x104] ss:$8 sps:$4 sm:$0xff]  }
 0xdab   : > { %v4735_v53 = vpop.f32.mrb[54].mxu1 }
 0xdac   : > { %v4753_v52 = vrot.slane %v4735_v53, %v9774_v61  ;;  %v4737_v58 = vpop.f32.mrb[55].mxu1 }
 0xdad   : > { %v4757_v19 = vrot.slane %v4737_v58, %v9774_v61 }
 0xdae   : > { %v4758_v15 = vadd.f32 %v4753_v52, %v4748_v50 }
 0xdaf   : > { %v4759_v26 = vadd.f32 %v4757_v19, %v4749_v5  ;;  %v9003_v19 = vld [vmem:[#allocation7] ss:$8 sps:$4 sm:$0xff]  }
 0xdb0   : > { %vm4760_vm13 = vcmp.gt.f32.partialorder %v4758_v15, 0.0  ;;  %v4762_v12 = vmul.f32 0.2, %v4758_v15 }
 0xdb1   : > { %vm4761_vm14 = vcmp.gt.f32.partialorder %v4759_v26, 0.0  ;;  %v4763_v57 = vmul.f32 0.2, %v4759_v26 }
 0xdb2   : > { %v4764_v32 = vsel %vm4760_vm13, %v4758_v15, %v4762_v12  ;;  %v9008_v12 = vld [vmem:[#allocation7 + $0x14] ss:$8 sps:$4 sm:$0xff]  }
 0xdb3   : > { %v4765_v31 = vsel %vm4761_vm14, %v4759_v26, %v4763_v57  ;;  %v4766_v13 = vpack.c.bf16 %v4764_v32, %v4764_v32  ;;  %v9006_v32 = vld [vmem:[#allocation7 + $0x10] ss:$8 sps:$4 sm:$0xff]  }
 0xdb4   : > { %v4767_v22 = vpack.c.bf16 %v4765_v31, %v4765_v31  ;;  %v9011_v31 = vld [vmem:[#allocation7 + $0x24] ss:$8 sps:$4 sm:$0xff]  }
 0xdb5   : > { %v4773_v47 = vsel %vm4771_vm15, %v4766_v13, 0  ;;  %v9009_v13 = vld [vmem:[#allocation7 + $0x20] ss:$8 sps:$4 sm:$0xff]  }
 0xdb6   : > { %7154 = vmatprep.subr.msk.bf16.mxu1 %vm4771_vm15, %v4767_v22  ;;  %7222 = vmatprep.subr.msk.bf16.mxu0 %vm4771_vm15, %v4767_v22 }
 0xdb7   : > { %4779 = vmatpush1.bf16.msra.mxu1 %v4773_v47  ;;  %5336 = vmatpush1.bf16.msra.mxu0 %v4773_v47 }
 0xdb8   : > { %7156 = vmatprep.subr.msk.bf16.mxu1 %vm4771_vm15, %v4767_v22  ;;  %7256 = vmatprep.subr.msk.bf16.mxu0 %vm4771_vm15, %v4767_v22  ;;  %v9014_v22 = vld [vmem:[#allocation7 + $0x34] ss:$8 sps:$4 sm:$0xff]  }
 0xdba   : > { %7155 = vmatmul.mubr.msk.bf16.vlgmr.msra.gmra.mrb[56].mxu1 %vm4768_vm2, %v10463_v20  ;;  %7223 = vmatmul.mubr.msk.bf16.vlgmr.msra.gmra.mrb[40].mxu0 %vm4768_vm2, %v10552_v1  ;;  %v8958_v20 = vld [vmem:[#allocation7 + $0x110] ss:$8 sps:$4 sm:$0xff]   ;;  %v8963_v1 = vld [vmem:[#allocation7 + $0x124] ss:$8 sps:$4 sm:$0xff]  }
 0xdbb   : > { %4856 = vmatpush1.bf16.msra.mxu1 %v4773_v47  ;;  %5617 = vmatpush1.bf16.msra.mxu0 %v4773_v47  ;;  %v9012_v47 = vld [vmem:[#allocation7 + $0x30] ss:$8 sps:$4 sm:$0xff]  }
 0xdbc   : > { %4887 = vmatprep.mubr.bf16.mxu1 %v9259_v2  ;;  %5091 = vmatprep.subr.bf16.mxu1 %v8957_v7  ;;  %v9017_v7 = vld [vmem:[#allocation7 + $0x44] ss:$8 sps:$4 sm:$0xff]  }
 0xdbd   : > { %5648 = vmatprep.mubr.bf16.mxu0 %v9259_v2  ;;  %8162 = vmatprep.subr.msk.bf16.mxu0 %vm10215_vm6, %v9261_v56  ;;  %v8961_v2 = vld [vmem:[#allocation7 + $0x120] ss:$8 sps:$4 sm:$0xff]  }
 0xdc2   : > { %7157 = vmatmul.mubr.msk.bf16.vlgmr.msra.gmra.mrb[60].mxu1 %vm4768_vm2, %v10479_v48  ;;  %7257 = vmatmul.mubr.msk.bf16.vlgmr.msra.gmra.mrb[44].mxu0 %vm4768_vm2, %v10485_v37  ;;  %v8966_v48 = vld [vmem:[#allocation7 + $0x134] ss:$8 sps:$4 sm:$0xff]   ;;  %v8964_v37 = vld [vmem:[#allocation7 + $0x130] ss:$8 sps:$4 sm:$0xff]  }
 0xdc3   : > { %5092 = vmatpush1.bf16.msra.mxu1 %v8955_v23  ;;  %8164 = vmatpush3.bf16.msk.msra.mxu0 %vm10215_vm6, %v9261_v56  ;;  %v9015_v23 = vld [vmem:[#allocation7 + $0x40] ss:$8 sps:$4 sm:$0xff]  }
 0xdc4   : > { %5093 = vmatprep.subr.bf16.mxu1 %v8960_v21  ;;  %8166 = vmatprep.subr.msk.bf16.mxu0 %vm9535_vm4, %v9261_v56  ;;  %v9020_v21 = vld [vmem:[#allocation7 + $0x54] ss:$8 sps:$4 sm:$0xff]  }
 0xdc7   : > { %5094 = vmatpush1.bf16.msra.mxu1 %v8958_v20  ;;  %8168 = vmatpush3.bf16.msk.msra.mxu0 %vm9535_vm4, %v9261_v56  ;;  %v9018_v20 = vld [vmem:[#allocation7 + $0x50] ss:$8 sps:$4 sm:$0xff]  }
 0xdc8   : > { %5095 = vmatprep.subr.bf16.mxu1 %v8963_v1  ;;  %v9023_v1 = vld [vmem:[#allocation7 + $0x64] ss:$8 sps:$4 sm:$0xff]  }
 0xdcb   : > { %5096 = vmatpush1.bf16.msra.mxu1 %v8961_v2  ;;  %v9021_v2 = vld [vmem:[#allocation7 + $0x60] ss:$8 sps:$4 sm:$0xff]  }
 0xdcc   : > { %5097 = vmatprep.subr.bf16.mxu1 %v8966_v48  ;;  %v9026_v48 = vld [vmem:[#allocation7 + $0x74] ss:$8 sps:$4 sm:$0xff]  }
 0xdcf   : > { %5098 = vmatpush1.bf16.msra.mxu1 %v8964_v37  ;;  %v9024_v37 = vld [vmem:[#allocation7 + $0x70] ss:$8 sps:$4 sm:$0xff]  }
 0xdd0   : > { %5099 = vmatprep.subr.bf16.mxu1 %v8969_v24  ;;  %v9029_v24 = vld [vmem:[#allocation7 + $0x84] ss:$8 sps:$4 sm:$0xff]  }
 0xdd3   : > { %5100 = vmatpush1.bf16.msra.mxu1 %v8967_v14  ;;  %v9027_v14 = vld [vmem:[#allocation7 + $0x80] ss:$8 sps:$4 sm:$0xff]  }
 0xdd4   : > { %5101 = vmatprep.subr.bf16.mxu1 %v8972_v27  ;;  %v9032_v27 = vld [vmem:[#allocation7 + $0x94] ss:$8 sps:$4 sm:$0xff]  }
 0xdd7   : > { %5102 = vmatpush1.bf16.msra.mxu1 %v8970_v46  ;;  %v9030_v46 = vld [vmem:[#allocation7 + $0x90] ss:$8 sps:$4 sm:$0xff]  }
 0xdd8   : > { %5103 = vmatprep.subr.bf16.mxu1 %v8975_v60  ;;  %v9035_v60 = vld [vmem:[#allocation7 + $0xa4] ss:$8 sps:$4 sm:$0xff]  }
 0xddb   : > { %5104 = vmatpush1.bf16.msra.mxu1 %v8973_v34  ;;  %v9033_v34 = vld [vmem:[#allocation7 + $0xa0] ss:$8 sps:$4 sm:$0xff]  }
 0xddc   : > { %5105 = vmatprep.subr.bf16.mxu1 %v8978_v44  ;;  %v9038_v44 = vld [vmem:[#allocation7 + $0xb4] ss:$8 sps:$4 sm:$0xff]  }
 0xddf   : > { %5106 = vmatpush1.bf16.msra.mxu1 %v8976_v39  ;;  %v9036_v39 = vld [vmem:[#allocation7 + $0xb0] ss:$8 sps:$4 sm:$0xff]  }
 0xde0   : > { %5107 = vmatprep.subr.bf16.mxu1 %v8981_v41  ;;  %v9041_v41 = vld [vmem:[#allocation7 + $0xc4] ss:$8 sps:$4 sm:$0xff]  }
 0xde3   : > { %5108 = vmatpush1.bf16.msra.mxu1 %v8979_v59  ;;  %v9039_v59 = vld [vmem:[#allocation7 + $0xc0] ss:$8 sps:$4 sm:$0xff]  }
 0xde4   : > { %5109 = vmatprep.subr.bf16.mxu1 %v8984_v8  ;;  %v9044_v8 = vld [vmem:[#allocation7 + $0xd4] ss:$8 sps:$4 sm:$0xff]  }
 0xde7   : > { %5110 = vmatpush1.bf16.msra.mxu1 %v8982_v10  ;;  %v9042_v10 = vld [vmem:[#allocation7 + $0xd0] ss:$8 sps:$4 sm:$0xff]  }
 0xde8   : > { %5111 = vmatprep.subr.bf16.mxu1 %v8987_v9  ;;  %v9047_v9 = vld [vmem:[#allocation7 + $0xe4] ss:$8 sps:$4 sm:$0xff]  }
 0xdeb   : > { %5112 = vmatpush1.bf16.msra.mxu1 %v8985_v30  ;;  %v9045_v30 = vld [vmem:[#allocation7 + $0xe0] ss:$8 sps:$4 sm:$0xff]  }
 0xdec   : > { %5113 = vmatprep.subr.bf16.mxu1 %v8990_v18  ;;  %v9050_v18 = vld [vmem:[#allocation7 + $0xf4] ss:$8 sps:$4 sm:$0xff]  }
 0xdef   : > { %5114 = vmatpush1.bf16.msra.mxu1 %v8988_v62 }
 0xdf0   : > { %5115 = vmatprep.subr.bf16.mxu1 %v8993_v17  ;;  %v9048_v17 = vld [vmem:[#allocation7 + $0xf0] ss:$8 sps:$4 sm:$0xff]  }
 0xdf3   : > { %5116 = vmatpush1.bf16.msra.mxu1 %v8991_v63 }
 0xdf4   : > { %5117 = vmatprep.subr.bf16.mxu1 %v8996_v25  ;;  %v9053_v25 = vld [vmem:[#allocation7 + $0x204] ss:$8 sps:$4 sm:$0xff]  }
 0xdf7   : > { %5118 = vmatpush1.bf16.msra.mxu1 %v8994_v11 }
 0xdf8   : > { %5119 = vmatprep.subr.bf16.mxu1 %v8999_v40  ;;  %v9051_v40 = vld [vmem:[#allocation7 + $0x200] ss:$8 sps:$4 sm:$0xff]  }
 0xdfb   : > { %5120 = vmatpush1.bf16.msra.mxu1 %v8997_v38 }
 0xdfc   : > { %5121 = vmatprep.subr.bf16.mxu1 %v9002_v33 }
 0xdff   : > { %5122 = vmatpush1.bf16.msra.mxu1 %v9000_v28 }
 0xe00   : > { %5292 = vmatprep.subr.bf16.mxu1 %v9005_v29  ;;  %v9056_v29 = vld [vmem:[#allocation7 + $0x214] ss:$8 sps:$4 sm:$0xff]  }
 0xe8d   : > { %v10754_v45 = vpop.f32.mrb[56].mxu1  ;;  %v10756_v0 = vpop.f32.mrb[40].mxu0 }
 0xe8e   : > { %v4814_v49 = vpop.f32.mrb[57].mxu1  ;;  %v10758_v43 = vpop.f32.mrb[41].mxu0  ;;  %v4819_v28 = vpack.c.bf16 %v10754_v45, %v10754_v45 }
 0xe8f   : > { %v4816_v51 = vpop.f32.mrb[58].mxu1  ;;  %v5373_v50 = vpop.f32.mrb[42].mxu0  ;;  %v4820_v57 = vpack.c.bf16 %v4814_v49, %v4814_v49  ;;  %v5377_v33 = vpack.c.bf16 %v10758_v43, %v10758_v43  ;;  %v5895_v49 = vadd.s32 32, %v9462_v3 }
 0xe90   : > { %v4817_v42 = vpop.f32.mrb[59].mxu1  ;;  %v5374_v53 = vpop.f32.mrb[43].mxu0  ;;  %v5896_v51 = vadd.s32 40, %v9462_v3  ;;  %v9054_v50 = vld [vmem:[#allocation7 + $0x210] ss:$8 sps:$4 sm:$0xff]  }
 0xe91   : > { %v5897_v42 = vadd.s32 48, %v9462_v3  ;;  %vm5899_vm3 = vcmp.eq.s32.totalorder %v5895_v49, %v9464_v4  ;;  %v9122_v49 = vld [vmem:[#allocation7 + $0x374] ss:$8 sps:$4 sm:$0xff]  }
 0xe92   : > { %vm5900_vm5 = vcmp.eq.s32.totalorder %v5896_v51, %v9464_v4  ;;  %v7290_v45 = vsel %vm5899_vm3, 1.0, %v9260_v6  ;;  %v9120_v51 = vld [vmem:[#allocation7 + $0x370] ss:$8 sps:$4 sm:$0xff]  }
 0xe93   : > { %vm5901_vm0 = vcmp.eq.s32.totalorder %v5897_v42, %v9464_v4  ;;  %v7291_v43 = vsel %vm5900_vm5, 1.0, %v9260_v6  ;;  %vm10778_vm7 = vmpackc.low %vm5900_vm5, %vm5899_vm3  ;;  %v9125_v42 = vld [vmem:[#allocation7 + $0x384] ss:$8 sps:$4 sm:$0xff]  }
 0xe94   : > { %8170 = vmatprep.subr.msk.bf16.mxu0 %vm10778_vm7, %v9261_v56 }
 0xe95   : > { %v4889_v54 = vpop.f32.mrb[60].mxu1  ;;  %v10760_v62 = vpop.f32.mrb[44].mxu0  ;;  %8172 = vmatpush3.bf16.msk.msra.mxu0 %vm10778_vm7, %v9261_v56 }
 0xe96   : > { %v4891_v5 = vpop.f32.mrb[61].mxu1  ;;  %v4896_v15 = vpack.c.bf16 %v4889_v54, %v4889_v54  ;;  %v10762_v63 = vpop.f32.mrb[45].mxu0  ;;  %v5898_v54 = vadd.s32 56, %v9462_v3  ;;  %v7292_v3 = vsel %vm5901_vm0, 1.0, %v9260_v6 }
 0xe97   : > { %v4897_v52 = vpack.c.bf16 %v4891_v5, %v4891_v5  ;;  %v4893_v58 = vpop.f32.mrb[62].mxu1  ;;  %v5654_v11 = vpop.f32.mrb[46].mxu0  ;;  %v9059_v5 = vld [vmem:[#allocation7 + $0x224] ss:$8 sps:$4 sm:$0xff]  }
 0xe98   : > { %v4894_v26 = vpop.f32.mrb[63].mxu1  ;;  %v5655_v38 = vpop.f32.mrb[47].mxu0  ;;  %vm5902_vm1 = vcmp.eq.s32.totalorder %v5898_v54, %v9464_v4  ;;  %v10787_v58 = vpack.c.bf16 %v7291_v43, %v7290_v45  ;;  %v9110_v11 = vld [vmem:[#allocation7 + $0x334] ss:$8 sps:$4 sm:$0xff]   ;;  %v9123_v54 = vld [vmem:[#allocation7 + $0x380] ss:$8 sps:$4 sm:$0xff]  }
 0xe99   : > { %5123 = vmatprep.mubr.bf16.mxu1 %v4897_v52  ;;  %v7293_v52 = vsel %vm5902_vm1, 1.0, %v9260_v6  ;;  %vm10789_vm8 = vmpackc.low %vm5902_vm1, %vm5901_vm0  ;;  %v9062_v6 = vld [vmem:[#allocation7 + $0x234] ss:$8 sps:$4 sm:$0xff]   ;;  %v9060_v26 = vld [vmem:[#allocation7 + $0x230] ss:$8 sps:$4 sm:$0xff]  }
 0xe9a   : > { %5124 = vmatmul.mubr.bf16.vlgmr.msra.gmra.mrb[64].mxu1 %v4896_v15  ;;  %v9057_v15 = vld [vmem:[#allocation7 + $0x220] ss:$8 sps:$4 sm:$0xff]   ;;  %8174 = vmatprep.subr.msk.bf16.mxu0 %vm10789_vm8, %v9261_v56  ;;  %v9108_v38 = vld [vmem:[#allocation7 + $0x330] ss:$8 sps:$4 sm:$0xff]   ;;  %v9131_v45 = vld [vmem:[#allocation7 + $0x3a4] ss:$8 sps:$4 sm:$0xff]  }
 0xe9b   : > { %5293 = vmatpush1.bf16.msra.mxu1 %v9003_v19  ;;  %5324 = vmatprep.mubr.bf16.mxu1 %v4820_v57  ;;  %v10793_v19 = vpack.c.bf16 %v7293_v52, %v7292_v3  ;;  %v9063_v57 = vld [vmem:[#allocation7 + $0x240] ss:$8 sps:$4 sm:$0xff]   ;;  %v9134_v3 = vld [vmem:[#allocation7 + $0x3b4] ss:$8 sps:$4 sm:$0xff]   ;;  %v9132_v52 = vld [vmem:[#allocation7 + $0x3b0] ss:$8 sps:$4 sm:$0xff]  }
 0xe9c   : > { %5294 = vmatprep.subr.bf16.mxu1 %v9008_v12  ;;  %8176 = vmatpush3.bf16.msk.msra.mxu0 %vm10789_vm8, %v9261_v56  ;;  %v9065_v12 = vld [vmem:[#allocation7 + $0x244] ss:$8 sps:$4 sm:$0xff]   ;;  %v9129_v43 = vld [vmem:[#allocation7 + $0x3a0] ss:$8 sps:$4 sm:$0xff]  }
 0xe9d   : > { %8178 = vmatprep.subr.msk.bf16.mxu0 %vm10215_vm6, %v9261_v56 }
 0xe9f   : > { %5295 = vmatpush1.bf16.msra.mxu1 %v9006_v32  ;;  %v9068_v32 = vld [vmem:[#allocation7 + $0x254] ss:$8 sps:$4 sm:$0xff]  }
 0xea0   : > { %5296 = vmatprep.subr.bf16.mxu1 %v9011_v31  ;;  %8180 = vmatpush3.bf16.msk.msra.mxu0 %vm10215_vm6, %v9261_v56  ;;  %v9066_v31 = vld [vmem:[#allocation7 + $0x250] ss:$8 sps:$4 sm:$0xff]  }
 0xea1   : > { %8182 = vmatprep.subr.msk.bf16.mxu0 %vm9535_vm4, %v9261_v56 }
 0xea3   : > { %5297 = vmatpush1.bf16.msra.mxu1 %v9009_v13  ;;  %v9071_v13 = vld [vmem:[#allocation7 + $0x264] ss:$8 sps:$4 sm:$0xff]  }
 0xea4   : > { %5298 = vmatprep.subr.bf16.mxu1 %v9014_v22  ;;  %8184 = vmatpush3.bf16.msk.msra.mxu0 %vm9535_vm4, %v9261_v56  ;;  %v9069_v22 = vld [vmem:[#allocation7 + $0x260] ss:$8 sps:$4 sm:$0xff]  }
 0xea5   : > { %8186 = vmatprep.subr.msk.bf16.mxu0 %vm10778_vm7, %v9261_v56 }
 0xea7   : > { %5299 = vmatpush1.bf16.msra.mxu1 %v9012_v47  ;;  %v9074_v47 = vld [vmem:[#allocation7 + $0x274] ss:$8 sps:$4 sm:$0xff]  }
 0xea8   : > { %5300 = vmatprep.subr.bf16.mxu1 %v9017_v7  ;;  %8188 = vmatpush3.bf16.msk.msra.mxu0 %vm10778_vm7, %v9261_v56  ;;  %v9072_v7 = vld [vmem:[#allocation7 + $0x270] ss:$8 sps:$4 sm:$0xff]  }
 0xea9   : > { %8190 = vmatprep.subr.msk.bf16.mxu0 %vm10789_vm8, %v9261_v56 }
 0xeab   : > { %5301 = vmatpush1.bf16.msra.mxu1 %v9015_v23  ;;  %v9077_v23 = vld [vmem:[#allocation7 + $0x284] ss:$8 sps:$4 sm:$0xff]  }
 0xeac   : > { %5302 = vmatprep.subr.bf16.mxu1 %v9020_v21  ;;  %8192 = vmatpush3.bf16.msk.msra.mxu0 %vm10789_vm8, %v9261_v56  ;;  %v9075_v21 = vld [vmem:[#allocation7 + $0x280] ss:$8 sps:$4 sm:$0xff]  }
 0xead   : > { %8194 = vmatprep.subr.msk.bf16.mxu0 %vm10215_vm6, %v9261_v56 }
 0xeaf   : > { %5303 = vmatpush1.bf16.msra.mxu1 %v9018_v20  ;;  %v9080_v20 = vld [vmem:[#allocation7 + $0x294] ss:$8 sps:$4 sm:$0xff]  }
 0xeb0   : > { %5304 = vmatprep.subr.bf16.mxu1 %v9023_v1  ;;  %v9078_v1 = vld [vmem:[#allocation7 + $0x290] ss:$8 sps:$4 sm:$0xff]  }
 0xeb3   : > { %5305 = vmatpush1.bf16.msra.mxu1 %v9021_v2  ;;  %v9083_v2 = vld [vmem:[#allocation7 + $0x2a4] ss:$8 sps:$4 sm:$0xff]  }
 0xeb4   : > { %5306 = vmatprep.subr.bf16.mxu1 %v9026_v48  ;;  %v9081_v48 = vld [vmem:[#allocation7 + $0x2a0] ss:$8 sps:$4 sm:$0xff]  }
 0xeb7   : > { %5307 = vmatpush1.bf16.msra.mxu1 %v9024_v37  ;;  %v9086_v37 = vld [vmem:[#allocation7 + $0x2b4] ss:$8 sps:$4 sm:$0xff]  }
 0xeb8   : > { %5308 = vmatprep.subr.bf16.mxu1 %v9029_v24  ;;  %v9084_v24 = vld [vmem:[#allocation7 + $0x2b0] ss:$8 sps:$4 sm:$0xff]  }
 0xebb   : > { %5309 = vmatpush1.bf16.msra.mxu1 %v9027_v14  ;;  %v9089_v14 = vld [vmem:[#allocation7 + $0x2c4] ss:$8 sps:$4 sm:$0xff]  }
 0xebc   : > { %5310 = vmatprep.subr.bf16.mxu1 %v9032_v27  ;;  %v9087_v27 = vld [vmem:[#allocation7 + $0x2c0] ss:$8 sps:$4 sm:$0xff]  }
 0xebf   : > { %5311 = vmatpush1.bf16.msra.mxu1 %v9030_v46  ;;  %v9092_v46 = vld [vmem:[#allocation7 + $0x2d4] ss:$8 sps:$4 sm:$0xff]  }
 0xec0   : > { %5312 = vmatprep.subr.bf16.mxu1 %v9035_v60  ;;  %v9090_v60 = vld [vmem:[#allocation7 + $0x2d0] ss:$8 sps:$4 sm:$0xff]  }
 0xec3   : > { %5313 = vmatpush1.bf16.msra.mxu1 %v9033_v34  ;;  %v9095_v34 = vld [vmem:[#allocation7 + $0x2e4] ss:$8 sps:$4 sm:$0xff]  }
 0xec4   : > { %5314 = vmatprep.subr.bf16.mxu1 %v9038_v44  ;;  %v9093_v44 = vld [vmem:[#allocation7 + $0x2e0] ss:$8 sps:$4 sm:$0xff]  }
 0xec7   : > { %5315 = vmatpush1.bf16.msra.mxu1 %v9036_v39  ;;  %v9098_v39 = vld [vmem:[#allocation7 + $0x2f4] ss:$8 sps:$4 sm:$0xff]  }
 0xec8   : > { %5316 = vmatprep.subr.bf16.mxu1 %v9041_v41  ;;  %v9096_v41 = vld [vmem:[#allocation7 + $0x2f0] ss:$8 sps:$4 sm:$0xff]  }
 0xecb   : > { %5317 = vmatpush1.bf16.msra.mxu1 %v9039_v59  ;;  %v9101_v59 = vld [vmem:[#allocation7 + $0x304] ss:$8 sps:$4 sm:$0xff]  }
 0xecc   : > { %5318 = vmatprep.subr.bf16.mxu1 %v9044_v8  ;;  %v5376_v8 = vpack.c.bf16 %v10756_v0, %v10756_v0  ;;  %v9113_v0 = vld [vmem:[#allocation7 + $0x344] ss:$8 sps:$4 sm:$0xff]  }
 0xecf   : > { %5319 = vmatpush1.bf16.msra.mxu1 %v9042_v10  ;;  %v9099_v10 = vld [vmem:[#allocation7 + $0x300] ss:$8 sps:$4 sm:$0xff]  }
 0xed0   : > { %5320 = vmatprep.subr.bf16.mxu1 %v9047_v9  ;;  %v5658_v9 = vpack.c.bf16 %v10762_v63, %v10762_v63  ;;  %v9116_v63 = vld [vmem:[#allocation7 + $0x354] ss:$8 sps:$4 sm:$0xff]  }
 0xed3   : > { %5321 = vmatpush1.bf16.msra.mxu1 %v9045_v30  ;;  %v9104_v30 = vld [vmem:[#allocation7 + $0x314] ss:$8 sps:$4 sm:$0xff]  }
 0xed4   : > { %5322 = vmatprep.subr.bf16.mxu1 %v9050_v18  ;;  %v9102_v18 = vld [vmem:[#allocation7 + $0x310] ss:$8 sps:$4 sm:$0xff]  }
 0xed7   : > { %5323 = vmatpush1.bf16.msra.mxu1 %v9048_v17  ;;  %v9107_v17 = vld [vmem:[#allocation7 + $0x324] ss:$8 sps:$4 sm:$0xff]  }
 0xed8   : > { %5571 = vmatprep.subr.bf16.mxu1 %v9053_v25  ;;  %v9105_v25 = vld [vmem:[#allocation7 + $0x320] ss:$8 sps:$4 sm:$0xff]  }
 0xeda   : > { %5325 = vmatmul.mubr.bf16.vlgmr.msra.gmra.mrb[64].mxu1 %v4819_v28  ;;  %v9119_v28 = vld [vmem:[#allocation7 + $0x364] ss:$8 sps:$4 sm:$0xff]  }
 0xedb   : > { %5572 = vmatpush1.bf16.msra.mxu1 %v9051_v40  ;;  %5603 = vmatprep.mubr.bf16.mxu1 %v5377_v33  ;;  %v9111_v40 = vld [vmem:[#allocation7 + $0x340] ss:$8 sps:$4 sm:$0xff]   ;;  %v9114_v33 = vld [vmem:[#allocation7 + $0x350] ss:$8 sps:$4 sm:$0xff]  }
 0xedc   : > { %5573 = vmatprep.subr.bf16.mxu1 %v9056_v29  ;;  %v9117_v29 = vld [vmem:[#allocation7 + $0x360] ss:$8 sps:$4 sm:$0xff]  }
 0xedf   : > { %5574 = vmatpush1.bf16.msra.mxu1 %v9054_v50  ;;  %v9128_v50 = vld [vmem:[#allocation7 + $0x394] ss:$8 sps:$4 sm:$0xff]  }
 0xee0   : > { %5575 = vmatprep.subr.bf16.mxu1 %v9059_v5  ;;  %v9126_v5 = vld [vmem:[#allocation7 + $0x390] ss:$8 sps:$4 sm:$0xff]  }
 0xee3   : > { %5576 = vmatpush1.bf16.msra.mxu1 %v9057_v15  ;;  %v9137_v15 = vld [vmem:[#allocation7 + $0x3c4] ss:$8 sps:$4 sm:$0xff]  }
 0xee4   : > { %5577 = vmatprep.subr.bf16.mxu1 %v9062_v6  ;;  %v9135_v6 = vld [vmem:[#allocation7 + $0x3c0] ss:$8 sps:$4 sm:$0xff]  }
 0xee7   : > { %5578 = vmatpush1.bf16.msra.mxu1 %v9060_v26  ;;  %v9140_v26 = vld [vmem:[#allocation7 + $0x3d4] ss:$8 sps:$4 sm:$0xff]  }
 0xee8   : > { %5579 = vmatprep.subr.bf16.mxu1 %v9065_v12  ;;  %v9138_v12 = vld [vmem:[#allocation7 + $0x3d0] ss:$8 sps:$4 sm:$0xff]  }
 0xeeb   : > { %5580 = vmatpush1.bf16.msra.mxu1 %v9063_v57  ;;  %v9143_v57 = vld [vmem:[#allocation7 + $0x3e4] ss:$8 sps:$4 sm:$0xff]  }
 0xeec   : > { %5581 = vmatprep.subr.bf16.mxu1 %v9068_v32  ;;  %v9141_v32 = vld [vmem:[#allocation7 + $0x3e0] ss:$8 sps:$4 sm:$0xff]  }
 0xeef   : > { %5582 = vmatpush1.bf16.msra.mxu1 %v9066_v31  ;;  %v9146_v31 = vld [vmem:[#allocation7 + $0x3f4] ss:$8 sps:$4 sm:$0xff]  }
 0xef0   : > { %5583 = vmatprep.subr.bf16.mxu1 %v9071_v13  ;;  %v9144_v13 = vld [vmem:[#allocation7 + $0x3f0] ss:$8 sps:$4 sm:$0xff]  }
 0xef3   : > { %5584 = vmatpush1.bf16.msra.mxu1 %v9069_v22  ;;  %v5657_v22 = vpack.c.bf16 %v10760_v62, %v10760_v62 }
 0xef4   : > { %5585 = vmatprep.subr.bf16.mxu1 %v9074_v47 }
 0xef7   : > { %5586 = vmatpush1.bf16.msra.mxu1 %v9072_v7 }
 0xef8   : > { %5587 = vmatprep.subr.bf16.mxu1 %v9077_v23 }
 0xefb   : > { %5588 = vmatpush1.bf16.msra.mxu1 %v9075_v21 }
 0xefc   : > { %5589 = vmatprep.subr.bf16.mxu1 %v9080_v20 }
 0xeff   : > { %5590 = vmatpush1.bf16.msra.mxu1 %v9078_v1 }
 0xf00   : > { %5591 = vmatprep.subr.bf16.mxu1 %v9083_v2 }
 0xf03   : > { %5592 = vmatpush1.bf16.msra.mxu1 %v9081_v48 }
 0xf04   : > { %5593 = vmatprep.subr.bf16.mxu1 %v9086_v37 }
 0xf07   : > { %5594 = vmatpush1.bf16.msra.mxu1 %v9084_v24 }
 0xf08   : > { %5595 = vmatprep.subr.bf16.mxu1 %v9089_v14 }
 0xf0b   : > { %5596 = vmatpush1.bf16.msra.mxu1 %v9087_v27 }
 0xf0c   : > { %5597 = vmatprep.subr.bf16.mxu1 %v9092_v46 }
 0xf0f   : > { %5598 = vmatpush1.bf16.msra.mxu1 %v9090_v60 }
 0xf10   : > { %5599 = vmatprep.subr.bf16.mxu1 %v9095_v34 }
 0xf13   : > { %5600 = vmatpush1.bf16.msra.mxu1 %v9093_v44 }
 0xf14   : > { %5601 = vmatprep.subr.bf16.mxu1 %v9098_v39 }
 0xf17   : > { %5602 = vmatpush1.bf16.msra.mxu1 %v9096_v41 }
 0xf18   : > { %5852 = vmatprep.subr.bf16.mxu1 %v9101_v59 }
 0xf1a   : > { %5604 = vmatmul.mubr.bf16.vlgmr.msra.gmra.mrb[64].mxu1 %v5376_v8 }
 0xf1b   : > { %5853 = vmatpush1.bf16.msra.mxu1 %v9099_v10  ;;  %5884 = vmatprep.mubr.bf16.mxu1 %v5658_v9 }
 0xf1c   : > { %5854 = vmatprep.subr.bf16.mxu1 %v9104_v30 }
 0xf1f   : > { %5855 = vmatpush1.bf16.msra.mxu1 %v9102_v18 }
 0xf20   : > { %5856 = vmatprep.subr.bf16.mxu1 %v9107_v17 }
 0xf23   : > { %5857 = vmatpush1.bf16.msra.mxu1 %v9105_v25 }
 0xf24   : > { %5858 = vmatprep.subr.bf16.mxu1 %v9110_v11 }
 0xf27   : > { %5859 = vmatpush1.bf16.msra.mxu1 %v9108_v38 }
 0xf28   : > { %5860 = vmatprep.subr.bf16.mxu1 %v9113_v0 }
 0xf2b   : > { %5861 = vmatpush1.bf16.msra.mxu1 %v9111_v40 }
 0xf2c   : > { %5862 = vmatprep.subr.bf16.mxu1 %v9116_v63 }
 0xf2f   : > { %5863 = vmatpush1.bf16.msra.mxu1 %v9114_v33 }
 0xf30   : > { %5864 = vmatprep.subr.bf16.mxu1 %v9119_v28 }
 0xf33   : > { %5865 = vmatpush1.bf16.msra.mxu1 %v9117_v29 }
 0xf34   : > { %5866 = vmatprep.subr.bf16.mxu1 %v9122_v49 }
 0xf37   : > { %5867 = vmatpush1.bf16.msra.mxu1 %v9120_v51 }
 0xf38   : > { %5868 = vmatprep.subr.bf16.mxu1 %v9125_v42 }
 0xf3b   : > { %5869 = vmatpush1.bf16.msra.mxu1 %v9123_v54 }
 0xf3c   : > { %5870 = vmatprep.subr.bf16.mxu1 %v9128_v50 }
 0xf3f   : > { %5871 = vmatpush1.bf16.msra.mxu1 %v9126_v5 }
 0xf40   : > { %5872 = vmatprep.subr.bf16.mxu1 %v9131_v45 }
 0xf43   : > { %5873 = vmatpush1.bf16.msra.mxu1 %v9129_v43  ;;  %v6087_v43 = vld [vmem:[%s11036_s10] sm:$0x1] }
 0xf44   : > { %5874 = vmatprep.subr.bf16.mxu1 %v9134_v3 }
 0xf47   : > { %5875 = vmatpush1.bf16.msra.mxu1 %v9132_v52 }
 0xf48   : > { %5876 = vmatprep.subr.bf16.mxu1 %v9137_v15  ;;  %v6091_v15 = vld [vmem:[%s11037_s11] sm:$0x1] }
 0xf4b   : > { %5877 = vmatpush1.bf16.msra.mxu1 %v9135_v6 }
 0xf4c   : > { %5878 = vmatprep.subr.bf16.mxu1 %v9140_v26 }
 0xf4f   : > { %5879 = vmatpush1.bf16.msra.mxu1 %v9138_v12 }
 0xf50   : > { %5880 = vmatprep.subr.bf16.mxu1 %v9143_v57 }
 0xf53   : > { %5881 = vmatpush1.bf16.msra.mxu1 %v9141_v32 }
 0xf54   : > { %5882 = vmatprep.subr.bf16.mxu1 %v9146_v31 }
 0xf57   : > { %5883 = vmatpush1.bf16.msra.mxu1 %v9144_v13 }
 0xf5a   : > { %5885 = vmatmul.mubr.bf16.vlgmr.msra.gmra.mrb[64].mxu1 %v5657_v22 }
0x102d   : > { %v10837_v47 = vpop.f32.mrb[64].mxu1 }
0x102e   : > { %v5911_v7 = vsel %vm4771_vm15, %v10837_v47, 0.0  ;;  %v10841_v23 = vpop.f32.mrb[65].mxu1  ;;  %v5925_v25 = vmul.f32 %v10837_v47, %v10837_v47 }
0x102f   : > { %v5912_v21 = vrot.slane %v5911_v7, 4  ;;  %v5918_v20 = vsel %vm4771_vm15, %v10841_v23, 0.0  ;;  %v5926_v1 = vmul.f32 %v10841_v23, %v10841_v23  ;;  %v5890_v2 = vpop.f32.mrb[66].mxu1 }
0x1030   : > { %v5919_v48 = vrot.slane %v5918_v20, 4  ;;  %v5891_v37 = vpop.f32.mrb[67].mxu1  ;;  %v5927_v11 = vsel %vm4771_vm15, %v5925_v25, 0.0 }
0x1031   : > { %v5913_v24 = vadd.f32 %v5912_v21, %v5911_v7  ;;  %v5934_v62 = vsel %vm4771_vm15, %v5926_v1, 0.0  ;;  %v5928_v38 = vrot.slane %v5927_v11, 4 }
0x1032   : > { %v5920_v14 = vadd.f32 %v5919_v48, %v5918_v20  ;;  %v5935_v27 = vrot.slane %v5934_v62, 4 }
0x1033   : > { %v5914_v46 = vrot.slane %v5913_v24, 2  ;;  %v5929_v0 = vadd.f32 %v5928_v38, %v5927_v11 }
0x1034   : > { %v5921_v60 = vrot.slane %v5920_v14, 2  ;;  %v5936_v34 = vadd.f32 %v5935_v27, %v5934_v62 }
0x1035   : > { %v5915_v44 = vadd.f32 %v5914_v46, %v5913_v24  ;;  %v5930_v40 = vrot.slane %v5929_v0, 2 }
0x1036   : > { %v5922_v39 = vadd.f32 %v5921_v60, %v5920_v14  ;;  %v5937_v41 = vrot.slane %v5936_v34, 2 }
0x1037   : > { %v5916_v59 = vrot.slane %v5915_v44, 1  ;;  %v5931_v63 = vadd.f32 %v5930_v40, %v5929_v0 }
0x1038   : > { %v5923_v8 = vrot.slane %v5922_v39, 1  ;;  %v5938_v10 = vadd.f32 %v5937_v41, %v5936_v34 }
0x1039   : > { %v5917_v18 = vadd.f32 %v5916_v59, %v5915_v44  ;;  %v5932_v55 = vrot.slane %v5931_v63, 1  ;;  %v6307_v59 = vld [vmem:[#allocation2] sm:$0x1] }
0x103a   : > { %v5924_v9 = vadd.f32 %v5923_v8, %v5922_v39  ;;  %v5939_v30 = vrot.slane %v5938_v10, 1 }
0x103b   : > { %v5933_v35 = vadd.f32 %v5932_v55, %v5931_v63 }
0x103c   : > { %6005 = vmatprep.mubr.f32.mxu0 %v5924_v9  ;;  %v5940_v17 = vadd.f32 %v5939_v30, %v5938_v10 }
0x103d   : > { %6006 = vmatmul.mubr.f32.vlgmr.msra.gmra.mrb[48].mxu0 %v5917_v18 }
0x103e   : > { %8196 = vmatpush3.bf16.msk.msra.mxu0 %vm10215_vm6, %v9261_v56  ;;  %6077 = vmatprep.mubr.f32.mxu0 %v5940_v17 }
0x103f   : > { %8198 = vmatprep.subr.msk.bf16.mxu0 %vm9535_vm4, %v9261_v56 }
0x1042   : > { %8200 = vmatpush3.bf16.msk.msra.mxu0 %vm9535_vm4, %v9261_v56 }
0x1043   : > { %8202 = vmatprep.subr.msk.bf16.mxu0 %vm10778_vm7, %v9261_v56 }
0x1046   : > { %8204 = vmatpush3.bf16.msk.msra.mxu0 %vm10778_vm7, %v9261_v56 }
0x1047   : > { %8206 = vmatprep.subr.msk.bf16.mxu0 %vm10789_vm8, %v9261_v56 }
0x104a   : > { %8208 = vmatpush3.bf16.msk.msra.mxu0 %vm10789_vm8, %v9261_v56 }
0x104b   : > { %8210 = vmatprep.subr.msk.bf16.mxu0 %vm10215_vm6, %v9261_v56 }
0x104e   : > { %8212 = vmatpush3.bf16.msk.msra.mxu0 %vm10215_vm6, %v9261_v56  ;;  %vm10895_vm6 = vmpackc.low %vm564_vm9, %vm564_vm9 }
0x104f   : > { %8214 = vmatprep.subr.msk.bf16.mxu0 %vm9535_vm4, %v9261_v56 }
0x1052   : > { %8216 = vmatpush3.bf16.msk.msra.mxu0 %vm9535_vm4, %v9261_v56 }
0x1053   : > { %8218 = vmatprep.subr.msk.bf16.mxu0 %vm10778_vm7, %v9261_v56 }
0x1056   : > { %8220 = vmatpush3.bf16.msk.msra.mxu0 %vm10778_vm7, %v9261_v56 }
0x1057   : > { %8222 = vmatprep.subr.msk.bf16.mxu0 %vm10789_vm8, %v9261_v56 }
0x105a   : > { %8224 = vmatpush3.bf16.msk.msra.mxu0 %vm10789_vm8, %v9261_v56 }
0x105b   : > { %8227 = vmatprep.subr.msk.bf16.mxu0 %vm10895_vm6, %v9495_v16 }
0x105d   : > { %6078 = vmatmul.mubr.f32.vlgmr.msra.gmra.mrb[50].mxu0 %v5933_v35 }
0x1063   : > { %8230 = vmatpush3.bf16.xpose.msk.msra.mxu0 %vm10895_vm6, %v9495_v16 }
0x1064   : > { %8233 = vmatprep.subr.msk.bf16.mxu0 %vm10895_vm6, %v9539_v36 }
0x106b   : > { %8236 = vmatpush3.bf16.xpose.msk.msra.mxu0 %vm10895_vm6, %v9539_v36 }
0x106c   : > { %8239 = vmatprep.subr.msk.bf16.mxu0 %vm10895_vm6, %v10787_v58 }
0x1073   : > { %8242 = vmatpush3.bf16.xpose.msk.msra.mxu0 %vm10895_vm6, %v10787_v58 }
0x1074   : > { %8245 = vmatprep.subr.msk.bf16.mxu0 %vm10895_vm6, %v10793_v19 }
0x107b   : > { %8248 = vmatpush3.bf16.xpose.msk.msra.mxu0 %vm10895_vm6, %v10793_v19 }
0x107c   : > { %8251 = vmatprep.subr.msk.bf16.mxu0 %vm10895_vm6, %v9495_v16 }
0x1083   : > { %8254 = vmatpush3.bf16.xpose.msk.msra.mxu0 %vm10895_vm6, %v9495_v16 }
0x1084   : > { %8257 = vmatprep.subr.msk.bf16.mxu0 %vm10895_vm6, %v9539_v36 }
0x108b   : > { %8260 = vmatpush3.bf16.xpose.msk.msra.mxu0 %vm10895_vm6, %v9539_v36 }
0x108c   : > { %8263 = vmatprep.subr.msk.bf16.mxu0 %vm10895_vm6, %v10787_v58 }
0x1093   : > { %8266 = vmatpush3.bf16.xpose.msk.msra.mxu0 %vm10895_vm6, %v10787_v58 }
0x1094   : > { %8269 = vmatprep.subr.msk.bf16.mxu0 %vm10895_vm6, %v10793_v19 }
0x109b   : > { %8272 = vmatpush3.bf16.xpose.msk.msra.mxu0 %vm10895_vm6, %v10793_v19 }
0x109c   : > { %8275 = vmatprep.subr.msk.bf16.mxu0 %vm10895_vm6, %v9495_v16 }
0x1110   : > { %v7735_v56 = vpop.f32.mrb[48].mxu0 }
0x1111   : > { %v7736_v53 = vpop.f32.mrb[49].mxu0 }
0x1112   : > { %v7737_v4 = vadd.f32 %v7736_v53, %v7735_v56 }
0x1114   : > { %v6012_v28 = vmul.f32 0.0625, %v7737_v4 }
0x1116   : > { %v6084_v42 = vmul.f32 %v6012_v28, %v6012_v28 }
0x1130   : > { %v7770_v29 = vpop.f32.mrb[50].mxu0 }
0x1131   : > { %v7771_v49 = vpop.f32.mrb[51].mxu0 }
0x1132   : > { %v7772_v51 = vadd.f32 %v7771_v49, %v7770_v29 }
0x1134   : > { %v6083_v54 = vmul.f32 0.0625, %v7772_v51 }
0x1136   : > { %v6085_v50 = vsub.f32 %v6083_v54, %v6084_v42 }
0x1138   : > { %v6086_v5 = vmax.f32 %v6085_v50, 0.0 }
0x113a   : > { %v6088_v45 = vadd.f32 1e-05, %v6086_v5 }
0x113c   : > { %9152 = vrsqrt.f32 %v6088_v45 }
0x1146   : > { %v9153_v3 = vpop.eup %9152 }
0x1147   : > { %v6090_v52 = vmul.f32 %v9153_v3, %v6087_v43 }
0x1149   : > { %7805 = vmatprep.mubr.msk.f32.mxu0 %vm564_vm9, %v6090_v52  ;;  %v6092_v6 = vmul.f32 %v6090_v52, %v6012_v28 }
0x114a   : > { %7806 = vmatmul.mubr.msk.f32.vlgmr.msra.gmra.mrb[52].mxu0 %vm564_vm9, %v6090_v52 }
0x114b   : > { %8278 = vmatpush3.bf16.xpose.msk.msra.mxu0 %vm10895_vm6, %v9495_v16  ;;  %v6093_v26 = vsub.f32 %v6091_v15, %v6092_v6 }
0x114c   : > { %8281 = vmatprep.subr.msk.bf16.mxu0 %vm10895_vm6, %v9539_v36 }
0x114d   : > { %7839 = vmatprep.mubr.msk.f32.mxu0 %vm564_vm9, %v6093_v26 }
0x1153   : > { %8284 = vmatpush3.bf16.xpose.msk.msra.mxu0 %vm10895_vm6, %v9539_v36 }
0x1154   : > { %8287 = vmatprep.subr.msk.bf16.mxu0 %vm10895_vm6, %v10787_v58 }
0x115b   : > { %8290 = vmatpush3.bf16.xpose.msk.msra.mxu0 %vm10895_vm6, %v10787_v58 }
0x115c   : > { %8293 = vmatprep.subr.msk.bf16.mxu0 %vm10895_vm6, %v10793_v19 }
0x1163   : > { %8296 = vmatpush3.bf16.xpose.msk.msra.mxu0 %vm10895_vm6, %v10793_v19 }
0x1164   : > { %8299 = vmatprep.subr.msk.bf16.mxu0 %vm10895_vm6, %v9495_v16 }
0x116b   : > { %8302 = vmatpush3.bf16.xpose.msk.msra.mxu0 %vm10895_vm6, %v9495_v16 }
0x116c   : > { %8305 = vmatprep.subr.msk.bf16.mxu0 %vm10895_vm6, %v9539_v36 }
0x1173   : > { %8308 = vmatpush3.bf16.xpose.msk.msra.mxu0 %vm10895_vm6, %v9539_v36 }
0x1174   : > { %8311 = vmatprep.subr.msk.bf16.mxu0 %vm10895_vm6, %v10787_v58 }
0x117b   : > { %8314 = vmatpush3.bf16.xpose.msk.msra.mxu0 %vm10895_vm6, %v10787_v58 }
0x117c   : > { %8317 = vmatprep.subr.msk.bf16.mxu0 %vm10895_vm6, %v10793_v19 }
0x1183   : > { %8320 = vmatpush3.bf16.xpose.msk.msra.mxu0 %vm10895_vm6, %v10793_v19  ;;  %v6288_v19 = vld [vmem:[%s11038_s12] sm:$0xff] }
0x1184   : > { %v6290_v2 = vcombine.high %v6288_v19, %v6288_v19 }
0x118a   : > { %7840 = vmatmul.mubr.msk.f32.vlgmr.msra.gmra.mrb[54].mxu0 %vm564_vm9, %v6093_v26 }
0x121d   : > { %v6183_v16 = vpop.f32.mrb[52].mxu0 }
0x121e   : > { %v6265_v36 = vrot.slane %v6183_v16, %v9774_v61  ;;  %v6185_v12 = vpop.f32.mrb[53].mxu0 }
0x121f   : > { %v6269_v57 = vrot.slane %v6185_v12, %v9774_v61 }
0x1220   : > { %v6270_v32 = vmul.f32 %v6265_v36, %v10837_v47 }
0x1221   : > { %v6271_v58 = vmul.f32 %v6269_v57, %v10841_v23 }
0x125d   : > { %v6257_v31 = vpop.f32.mrb[54].mxu0 }
0x125e   : > { %v6275_v13 = vrot.slane %v6257_v31, %v9774_v61  ;;  %v6259_v22 = vpop.f32.mrb[55].mxu0 }
0x125f   : > { %v6279_v7 = vrot.slane %v6259_v22, %v9774_v61 }
0x1260   : > { %v6280_v21 = vadd.f32 %v6275_v13, %v6270_v32 }
0x1261   : > { %v6281_v20 = vadd.f32 %v6279_v7, %v6271_v58 }
0x1262   : > { %v6284_v1 = vmul.f32 0.2, %v6280_v21  ;;  %vm6282_vm4 = vcmp.gt.f32.partialorder %v6280_v21, 0.0 }
0x1263   : > { %v6285_v48 = vmul.f32 0.2, %v6281_v20  ;;  %vm6283_vm9 = vcmp.gt.f32.partialorder %v6281_v20, 0.0 }
0x1264   : > { %v6286_v47 = vsel %vm6282_vm4, %v6280_v21, %v6284_v1 }
0x1265   : > { %v6287_v37 = vsel %vm6283_vm9, %v6281_v20, %v6285_v48  ;;  %v6292_v23 = vmul.f32 %v6288_v19, %v6286_v47 }
0x1266   : > { %v6293_v24 = vmul.f32 %v6290_v2, %v6287_v37 }
0x1267   : > { %v6294_v62 = vsel %vm4771_vm15, %v6292_v23, 0.0 }
0x1268   : > { %v6295_v61 = vsel %vm4771_vm15, %v6293_v24, 0.0 }
0x1269   : > { %v6296_v14 = vadd.f32 %v6295_v61, %v6294_v62 }
0x126b   : > { %6297 = vadd.xlane.f32.xlu0 %v6296_v14 }
0x12f8   : > { %v6298_v27 = vpop.xlane.xlu0 %6297 }
0x12f9   : > { %v6299_v46 = vrot.slane %v6298_v27, 4 }
0x12fb   : > { %v6300_v60 = vadd.f32 %v6299_v46, %v6298_v27 }
0x12fd   : > { %v6301_v34 = vrot.slane %v6300_v60, 2 }
0x12ff   : > { %v6302_v44 = vadd.f32 %v6301_v34, %v6300_v60 }
0x1301   : > { %v6303_v39 = vrot.slane %v6302_v44, 1 }
0x1303   : > { %v6304_v41 = vadd.f32 %v6303_v39, %v6302_v44 }
0x1305   : > { %8381 = vpush %v6304_v41 }
0x1336   : > { %s8382_s22 = spop %8381 }
0x1337   : > { %v6306_v8 = vstv %s8382_s22 }
0x1338   : > { %v6308_v10 = vadd.f32 %v6307_v59, %v6306_v8 }
0x133a   : > { %6310 = vst.msk [vmem:[%s509_s26] sm:$0x1] %vm6309_vm10, %v6308_v10 }
0x133b PF: > { %s11069_s27 = sld [smem:[#allocation10_spill]] }
0x1341   : > { %s28_s15 = sadd.s32 1, %s11069_s27  }
0x1342   : > { %p25_p5 = scmp.ge.s32.totalorder %s28_s15, 4  }
0x1344   :  { %27 = sbr.rel (!%p25_p5) target bundleno = 5 (0x5), region = 131 }
0x134b   :  { %6328 = vsyncpa [#allocation4], 1 }
0x134c   :  { %6330 = vsyncpa [#allocation4 + $0x1], 1 }
0x134d   :  { %6331 = vsyncpa [#allocation6], 1 }

</bundles_post_ra>
